<compile_context>
chip_gen: v6e
topology: v6e:2x2x1
jax: 0.10.0
libtpu: 0.0.40
codegen_flags: <defaults>
</compile_context>

<pallas_src>
import jax
import jax.numpy as jnp
from jax import lax
from jax.experimental import pallas as pl
from jax.experimental.pallas import tpu as pltpu


# ---------------------------------------------------------------------------
# generation-gated tiling knobs
# ---------------------------------------------------------------------------
def _tpu_vmem_capacity_bytes():
    try:
        return int(pltpu.get_tpu_info().vmem_capacity_bytes)
    except Exception:
        return 64 * 1024 * 1024          # conservative (v7x-safe) fallback


_VMEM_CAP = _tpu_vmem_capacity_bytes()
if _VMEM_CAP >= 100 * 1024 * 1024:       # v5e / v6e: 128 MiB physical VMEM
    _VMEM_LIMIT = 96 * 1024 * 1024
    _MAX_TQ = 2048
    _MAX_TKV = 2048
else:                                    # v7x: 64 MiB physical VMEM (or unknown)
    _VMEM_LIMIT = 48 * 1024 * 1024
    _MAX_TQ = 1024
    _MAX_TKV = 1024
_MAX_TN = 2048                           # backbone / projection point-tile rows

_CPARAMS3 = pltpu.CompilerParams(
    dimension_semantics=("parallel", "parallel", "arbitrary"),
    vmem_limit_bytes=_VMEM_LIMIT)
_CPARAMS2 = pltpu.CompilerParams(
    dimension_semantics=("parallel", "parallel"),
    vmem_limit_bytes=_VMEM_LIMIT)


def _pick_tile(n, max_tile, multiple):
    """Largest divisor of n that is <= max_tile and a multiple of `multiple`."""
    if n <= max_tile:
        return n
    t = (max_tile // multiple) * multiple
    while t >= multiple:
        if n % t == 0:
            return t
        t -= multiple
    return n   # fallback: untiled (see TODO about masking)


# ---------------------------------------------------------------------------
# numerics helpers usable inside Pallas kernels
# ---------------------------------------------------------------------------
def _mm(a, b):
    """MXU matmul: bf16 operands, f32 accumulation."""
    return jnp.dot(a.astype(jnp.bfloat16), b.astype(jnp.bfloat16),
                   preferred_element_type=jnp.float32)


def _mm_nt(a, b):
    """a @ b.T without materializing the transpose (contract last dims)."""
    return lax.dot_general(a, b, (((1,), (1,)), ((), ())),
                           preferred_element_type=jnp.float32)


def _mm_f32(a, b):
    """f32 matmul for the small coordinate / flow accumulations."""
    return jnp.dot(a, b, preferred_element_type=jnp.float32)


def _layernorm(x, gamma, beta, eps=1e-5):
    mu = jnp.mean(x, axis=-1, keepdims=True)
    var = jnp.mean((x - mu) ** 2, axis=-1, keepdims=True)
    return (x - mu) * lax.rsqrt(var + eps) * gamma + beta


def _gelu(x):
    # tanh approximation of GELU
    return 0.5 * x * (1.0 + jnp.tanh(0.7978845608028654 * (x + 0.044715 * x * x * x)))


# ---------------------------------------------------------------------------
# Pallas kernels
# ---------------------------------------------------------------------------
def _mlp_backbone_kernel(x_ref, w1, b1, w2, b2, o_ref):
    # x_ref: (1, Tn, 3)  ->  o_ref: (1, Tn, C)
    x = x_ref[0]
    h = _gelu(_mm(x, w1[...]) + b1[...])
    o_ref[0] = (_mm(h, w2[...]) + b2[...]).astype(o_ref.dtype)


def _proj_self_kernel(x_ref, wqkv, bqkv, q_ref, kv_ref):
    # Fused QKV projection for self-attention (source == target).
    # x: (1, Tn, C) -> q: (1, Tn, C) bf16 (scale folded in), kv: (1, Tn, 2C) bf16
    x = x_ref[0]
    c = q_ref.shape[-1]
    scale = 1.0 / (c ** 0.5)
    qkv = _mm(x, wqkv[...]) + bqkv[...]            # (Tn, 3C) f32
    q_ref[0] = (qkv[:, :c] * scale).astype(q_ref.dtype)
    kv_ref[0] = qkv[:, c:].astype(kv_ref.dtype)


def _proj_cross_kernel(s_ref, t_ref, wq, bq, wkv, bkv, q_ref, kv_ref):
    # Cross-attention projection: Q from source tile, K|V (fused) from the
    # batch-swapped target tile (swap encoded in the target BlockSpec index_map).
    c = q_ref.shape[-1]
    scale = 1.0 / (c ** 0.5)
    q_ref[0] = ((_mm(s_ref[0], wq[...]) + bq[...]) * scale).astype(q_ref.dtype)
    kv_ref[0] = (_mm(t_ref[0], wkv[...]) + bkv[...]).astype(kv_ref.dtype)


def _attn_core(src_ref, q_ref, kv_ref, wm, bm, g1, be1,
               o_ref, m_sc, l_sc, acc_sc, ffn):
    """Flash inner step of the global TransformerLayer.

    Q/K/V are pre-projected (bf16, scale folded into Q); the step is only
    scores -> online softmax -> P@V, plus the finalize (merge/LayerNorm/FFN).
    """
    ki = pl.program_id(2)

    @pl.when(ki == 0)
    def _init():
        m_sc[...] = jnp.full(m_sc.shape, -jnp.inf, m_sc.dtype)
        l_sc[...] = jnp.zeros(l_sc.shape, l_sc.dtype)
        acc_sc[...] = jnp.zeros(acc_sc.shape, acc_sc.dtype)

    c = src_ref.shape[-1]
    q = q_ref[0]                                   # (Tq, C)  bf16, pre-scaled
    kv = kv_ref[0]                                 # (Tk, 2C) bf16
    k = kv[:, :c]
    v = kv[:, c:]

    scores = _mm_nt(q, k)                          # (Tq, Tk) f32
    m_prev = m_sc[...]
    m_new = jnp.maximum(m_prev, jnp.max(scores, axis=-1, keepdims=True))
    alpha = jnp.exp(m_prev - m_new)
    p = jnp.exp(scores - m_new)
    l_sc[...] = alpha * l_sc[...] + jnp.sum(p, axis=-1, keepdims=True)
    acc_sc[...] = alpha * acc_sc[...] + jnp.dot(
        p.astype(jnp.bfloat16), v, preferred_element_type=jnp.float32)
    m_sc[...] = m_new

    @pl.when(ki == pl.num_programs(2) - 1)
    def _finalize():
        msg = acc_sc[...] * pl.reciprocal(l_sc[...], approx=True)
        msg = _mm(msg, wm[...]) + bm[...]
        msg = _layernorm(msg, g1[...], be1[...])
        s = src_ref[0].astype(jnp.float32)
        if ffn is not None:
            wf1, wf2, g2, be2 = ffn
            wf1_full = wf1[...]
            # FFN( concat([source, message], -1) ) -- concat split into two matmuls
            hidden = _gelu(_mm(s, wf1_full[:c, :]) + _mm(msg, wf1_full[c:, :]))
            msg = _layernorm(_mm(hidden, wf2[...]), g2[...], be2[...])
        o_ref[0] = (s + msg).astype(o_ref.dtype)


def _attn_kernel(src_ref, q_ref, kv_ref, wm, bm, g1, be1,
                 o_ref, m_sc, l_sc, acc_sc):
    _attn_core(src_ref, q_ref, kv_ref, wm, bm, g1, be1,
               o_ref, m_sc, l_sc, acc_sc, ffn=None)


def _attn_ffn_kernel(src_ref, q_ref, kv_ref, wm, bm, g1, be1,
                     wf1, wf2, g2, be2, o_ref, m_sc, l_sc, acc_sc):
    _attn_core(src_ref, q_ref, kv_ref, wm, bm, g1, be1,
               o_ref, m_sc, l_sc, acc_sc, ffn=(wf1, wf2, g2, be2))


def _global_corr_kernel(f0_ref, f1_ref, x1t_ref, x0t_ref, o_ref,
                        m_sc, l_sc, acc_sc, f0s_sc):
    # global_correlation_softmax_3d:  softmax(f0 f1^T / sqrt(C)) @ xyz1 - xyz0
    # scores are computed transposed (Tk, Tq) so the accumulator / output is the
    # lane-dense (3, Tq) layout and the kernel writes (B, 3, N) directly.
    ki = pl.program_id(2)
    c = f0_ref.shape[-1]
    scale = 1.0 / (c ** 0.5)

    @pl.when(ki == 0)
    def _init():
        m_sc[...] = jnp.full(m_sc.shape, -jnp.inf, m_sc.dtype)
        l_sc[...] = jnp.zeros(l_sc.shape, l_sc.dtype)
        acc_sc[...] = jnp.zeros(acc_sc.shape, acc_sc.dtype)
        # hoist f0 * scale (per q-tile, reused across every kv step)
        f0s_sc[...] = (f0_ref[0].astype(jnp.float32) * scale).astype(f0s_sc.dtype)

    f1 = f1_ref[0].astype(jnp.bfloat16)             # (Tk, C)
    s_t = _mm_nt(f1, f0s_sc[...])                   # (Tk, Tq) f32
    m_prev = m_sc[...]                              # (1, Tq)
    m_new = jnp.maximum(m_prev, jnp.max(s_t, axis=0, keepdims=True))
    alpha = jnp.exp(m_prev - m_new)
    p_t = jnp.exp(s_t - m_new)                      # (Tk, Tq)
    l_sc[...] = alpha * l_sc[...] + jnp.sum(p_t, axis=0, keepdims=True)
    acc_sc[...] = alpha * acc_sc[...] + _mm_f32(x1t_ref[0], p_t)   # (3,Tk)@(Tk,Tq)
    m_sc[...] = m_new

    @pl.when(ki == pl.num_programs(2) - 1)
    def _finalize():
        corres = acc_sc[...] / l_sc[...]            # exact division for flow accuracy
        o_ref[0] = (corres - x0t_ref[0]).astype(o_ref.dtype)


def _self_corr_kernel(f0q_ref, f0k_ref, flowt_ref, wq, bq, wk, bk,
                      o_ref, m_sc, l_sc, acc_sc, q_sc):
    # SelfCorrelationSoftmax3D: softmax(Q K^T / sqrt(C)) @ flow, flow kept (3, N).
    ki = pl.program_id(2)
    c = f0q_ref.shape[-1]
    scale = 1.0 / (c ** 0.5)

    @pl.when(ki == 0)
    def _init():
        m_sc[...] = jnp.full(m_sc.shape, -jnp.inf, m_sc.dtype)
        l_sc[...] = jnp.zeros(l_sc.shape, l_sc.dtype)
        acc_sc[...] = jnp.zeros(acc_sc.shape, acc_sc.dtype)
        # hoist the Q projection (per q-tile, reused across every kv step)
        q = (_mm(f0q_ref[0], wq[...]) + bq[...]) * scale
        q_sc[...] = q.astype(q_sc.dtype)

    k = _mm(f0k_ref[0], wk[...]) + bk[...]
    s_t = _mm_nt(k.astype(jnp.bfloat16), q_sc[...])   # (Tk, Tq)
    m_prev = m_sc[...]
    m_new = jnp.maximum(m_prev, jnp.max(s_t, axis=0, keepdims=True))
    alpha = jnp.exp(m_prev - m_new)
    p_t = jnp.exp(s_t - m_new)
    l_sc[...] = alpha * l_sc[...] + jnp.sum(p_t, axis=0, keepdims=True)
    acc_sc[...] = alpha * acc_sc[...] + _mm_f32(flowt_ref[0], p_t)   # (3, Tq)
    m_sc[...] = m_new

    @pl.when(ki == pl.num_programs(2) - 1)
    def _finalize():
        o_ref[0] = (acc_sc[...] / l_sc[...]).astype(o_ref.dtype)     # exact division


# ---------------------------------------------------------------------------
# pallas_call wrappers
# ---------------------------------------------------------------------------
def _bcast_spec(arr):
    n = arr.ndim
    return pl.BlockSpec(arr.shape, lambda *_, _n=n: (0,) * _n)


def mlp_backbone(x, p):
    # x: (B', N, 3) -> (B', N, C)   (one pallas_call shared by both point clouds)
    bsz, n, _ = x.shape
    c = p["w2"].shape[1]
    tn = _pick_tile(n, _MAX_TN, 8)
    args = [x, p["w1"], p["b1"], p["w2"], p["b2"]]
    in_specs = [pl.BlockSpec((1, tn, 3), lambda b, i: (b, i, 0))]
    in_specs += [_bcast_spec(a) for a in args[1:]]
    return pl.pallas_call(
        _mlp_backbone_kernel,
        out_shape=jax.ShapeDtypeStruct((bsz, n, c), jnp.float32),
        grid=(bsz, n // tn),
        in_specs=in_specs,
        out_specs=pl.BlockSpec((1, tn, c), lambda b, i: (b, i, 0)),
        compiler_params=_CPARAMS2,
    )(*args)


def _project_self(x, p):
    # x: (2B, N, C) bf16 -> q (2B,N,C) bf16 (scaled), kv (2B,N,2C) bf16
    b2, n, c = x.shape
    tn = _pick_tile(n, _MAX_TN, 8)
    return pl.pallas_call(
        _proj_self_kernel,
        out_shape=(jax.ShapeDtypeStruct((b2, n, c), jnp.bfloat16),
                   jax.ShapeDtypeStruct((b2, n, 2 * c), jnp.bfloat16)),
        grid=(b2, n // tn),
        in_specs=[pl.BlockSpec((1, tn, c), lambda b, i: (b, i, 0)),
                  _bcast_spec(p["wqkv"]), _bcast_spec(p["bqkv"])],
        out_specs=(pl.BlockSpec((1, tn, c), lambda b, i: (b, i, 0)),
                   pl.BlockSpec((1, tn, 2 * c), lambda b, i: (b, i, 0))),
        compiler_params=_CPARAMS2,
    )(x, p["wqkv"], p["bqkv"])


def _project_cross(x, p, bsz):
    # Q from x[b], K|V from x[(b + B) % 2B]  (batch swap via the target index_map)
    b2, n, c = x.shape
    tn = _pick_tile(n, _MAX_TN, 8)
    swap = lambda b, i, _bs=bsz, _b2=b2: ((b + _bs) % _b2, i, 0)
    return pl.pallas_call(
        _proj_cross_kernel,
        out_shape=(jax.ShapeDtypeStruct((b2, n, c), jnp.bfloat16),
                   jax.ShapeDtypeStruct((b2, n, 2 * c), jnp.bfloat16)),
        grid=(b2, n // tn),
        in_specs=[pl.BlockSpec((1, tn, c), lambda b, i: (b, i, 0)),
                  pl.BlockSpec((1, tn, c), swap),
                  _bcast_spec(p["wq"]), _bcast_spec(p["bq"]),
                  _bcast_spec(p["wkv"]), _bcast_spec(p["bkv"])],
        out_specs=(pl.BlockSpec((1, tn, c), lambda b, i: (b, i, 0)),
                   pl.BlockSpec((1, tn, 2 * c), lambda b, i: (b, i, 0))),
        compiler_params=_CPARAMS2,
    )(x, x, p["wq"], p["bq"], p["wkv"], p["bkv"])


def _run_attn(src, q, kv, p, has_ffn):
    # Flash-tiled attention + merge/LayerNorm/(FFN)/residual; bf16 activations.
    b2, n, c = src.shape
    tq = _pick_tile(n, _MAX_TQ, 8)
    tkv = _pick_tile(n, _MAX_TKV, 8)

    args = [src, q, kv, p["wm"], p["bm"], p["g1"], p["b1"]]
    if has_ffn:
        args += [p["wf1"], p["wf2"], p["g2"], p["b2"]]

    in_specs = [pl.BlockSpec((1, tq, c), lambda bb, qi, ki: (bb, qi, 0)),
                pl.BlockSpec((1, tq, c), lambda bb, qi, ki: (bb, qi, 0)),
                pl.BlockSpec((1, tkv, 2 * c), lambda bb, qi, ki: (bb, ki, 0))]
    in_specs += [_bcast_spec(a) for a in args[3:]]

    kernel = _attn_ffn_kernel if has_ffn else _attn_kernel
    return pl.pallas_call(
        kernel,
        out_shape=jax.ShapeDtypeStruct((b2, n, c), jnp.bfloat16),
        grid=(b2, n // tq, n // tkv),
        in_specs=in_specs,
        out_specs=pl.BlockSpec((1, tq, c), lambda bb, qi, ki: (bb, qi, 0)),
        scratch_shapes=[pltpu.VMEM((tq, 1), jnp.float32),
                        pltpu.VMEM((tq, 1), jnp.float32),
                        pltpu.VMEM((tq, c), jnp.float32)],
        compiler_params=_CPARAMS3,
    )(*args)


def global_correlation_softmax_3d(f0, f1, xyz0, xyz1):
    # returns flow in the lane-dense (B, 3, N) layout (the PyTorch output layout).
    b, n, c = f0.shape
    tq = _pick_tile(n, _MAX_TQ, 128)
    tkv = _pick_tile(n, _MAX_TKV, 128)
    x0t = jnp.transpose(xyz0, (0, 2, 1))   # (B, 3, N)
    x1t = jnp.transpose(xyz1, (0, 2, 1))

    in_specs = [
        pl.BlockSpec((1, tq, c), lambda bb, qi, ki: (bb, qi, 0)),
        pl.BlockSpec((1, tkv, c), lambda bb, qi, ki: (bb, ki, 0)),
        pl.BlockSpec((1, 3, tkv), lambda bb, qi, ki: (bb, 0, ki)),
        pl.BlockSpec((1, 3, tq), lambda bb, qi, ki: (bb, 0, qi)),
    ]
    return pl.pallas_call(
        _global_corr_kernel,
        out_shape=jax.ShapeDtypeStruct((b, 3, n), jnp.float32),
        grid=(b, n // tq, n // tkv),
        in_specs=in_specs,
        out_specs=pl.BlockSpec((1, 3, tq), lambda bb, qi, ki: (bb, 0, qi)),
        scratch_shapes=[pltpu.VMEM((1, tq), jnp.float32),
                        pltpu.VMEM((1, tq), jnp.float32),
                        pltpu.VMEM((3, tq), jnp.float32),
                        pltpu.VMEM((tq, c), jnp.bfloat16)],
        compiler_params=_CPARAMS3,
    )(f0, f1, x1t, x0t)


def self_correlation_softmax_3d(f0, flow_t, p):
    # f0: (B, N, C), flow_t: (B, 3, N)  ->  (B, 3, N)
    b, n, c = f0.shape
    tq = _pick_tile(n, _MAX_TQ, 128)
    tkv = _pick_tile(n, _MAX_TKV, 128)

    args = [f0, f0, flow_t, p["wq"], p["bq"], p["wk"], p["bk"]]
    in_specs = [
        pl.BlockSpec((1, tq, c), lambda bb, qi, ki: (bb, qi, 0)),
        pl.BlockSpec((1, tkv, c), lambda bb, qi, ki: (bb, ki, 0)),
        pl.BlockSpec((1, 3, tkv), lambda bb, qi, ki: (bb, 0, ki)),
    ]
    in_specs += [_bcast_spec(a) for a in args[3:]]
    return pl.pallas_call(
        _self_corr_kernel,
        out_shape=jax.ShapeDtypeStruct((b, 3, n), jnp.float32),
        grid=(b, n // tq, n // tkv),
        in_specs=in_specs,
        out_specs=pl.BlockSpec((1, 3, tq), lambda bb, qi, ki: (bb, 0, qi)),
        scratch_shapes=[pltpu.VMEM((1, tq), jnp.float32),
                        pltpu.VMEM((1, tq), jnp.float32),
                        pltpu.VMEM((3, tq), jnp.float32),
                        pltpu.VMEM((tq, c), jnp.bfloat16)],
        compiler_params=_CPARAMS3,
    )(*args)


# ---------------------------------------------------------------------------
# FeatureTransformer3D (global self/cross attention, GMFlow-style blocks)
# ---------------------------------------------------------------------------
def feature_transformer_3d(f0, f1, layers):
    bsz = f0.shape[0]
    # bf16 activations in HBM between kernels; stats stay f32 inside the kernels.
    x = jnp.concatenate([f0, f1], axis=0).astype(jnp.bfloat16)   # (2B, N, C)
    for blk in layers:
        # self-attention (fused (C,3C) QKV projection), no FFN
        q, kv = _project_self(x, blk["self"])
        x = _run_attn(x, q, kv, blk["self"], has_ffn=False)
        # cross-attention: K/V taken from the swapped batch half via the
        # projection's target index_map -- no per-block concatenate
        q, kv = _project_cross(x, blk["cross"], bsz)
        x = _run_attn(x, q, kv, blk["cross"], has_ffn=True)
    return x[:bsz], x[bsz:]


# ---------------------------------------------------------------------------
# FeatureTransformer3D_PT (Point-Transformer style local vector attention)
# kNN selection + gather is data-dependent -> plain JAX (see TODO at top)
# ---------------------------------------------------------------------------
def _gather_neighbors(x, idx):
    # x: (B, N, D), idx: (B, N, K) -> (B, N, K, D)
    return jax.vmap(lambda xb, ib: xb[ib])(x, idx)


def point_transformer_layer(xyz, feat, p, k):
    # matmul-form pairwise squared distances: ||x||^2 + ||y||^2 - 2 x y^T
    sq = jnp.sum(xyz * xyz, axis=-1)                               # (B, N)
    inner = jnp.einsum('bnd,bmd->bnm', xyz, xyz,
                       preferred_element_type=jnp.float32)         # (B, N, N)
    d2 = sq[:, :, None] + sq[:, None, :] - 2.0 * inner
    _, knn_idx = lax.top_k(-d2, k)                                 # (B, N, K)
    knn_xyz = _gather_neighbors(xyz, knn_idx)                      # (B, N, K, 3)

    pre = feat
    x = feat @ p["fc1_w"] + p["fc1_b"]
    q = x @ p["wq"]
    k_knn = _gather_neighbors(x @ p["wk"], knn_idx)
    v_knn = _gather_neighbors(x @ p["wv"], knn_idx)

    rel = xyz[:, :, None, :] - knn_xyz
    pos = jax.nn.relu(rel @ p["d1_w"] + p["d1_b"]) @ p["d2_w"] + p["d2_b"]

    attn = q[:, :, None, :] - k_knn + pos
    attn = jax.nn.relu(attn @ p["g1_w"] + p["g1_b"]) @ p["g2_w"] + p["g2_b"]
    d_model = q.shape[-1]
    attn = jax.nn.softmax(attn / (d_model ** 0.5), axis=-2)

    res = jnp.sum(attn * (v_knn + pos), axis=2)
    res = res @ p["fc2_w"] + p["fc2_b"] + pre
    return res


def feature_transformer_3d_pt(xyz0, xyz1, f0, f1, layers, k):
    for p in layers:
        f0 = point_transformer_layer(xyz0, f0, p, k)
        f1 = point_transformer_layer(xyz1, f1, p, k)
    return f0, f1


# ---------------------------------------------------------------------------
# parameter init (deterministic, PyTorch-Linear-like uniform init)
# ---------------------------------------------------------------------------
def _linear(key, fan_in, fan_out, bias=True):
    kw, kb = jax.random.split(key)
    bound = fan_in ** -0.5
    w = jax.random.uniform(kw, (fan_in, fan_out), jnp.float32, -bound, bound)
    if not bias:
        return w
    b = jax.random.uniform(kb, (1, fan_out), jnp.float32, -bound, bound)
    return w, b


def init_params(key, feature_channels=32, ffn_dim_expansion=4,
                num_transformer_layers=2, num_transformer_pt_layers=1,
                backbone_hidden=64):
    c = feature_channels
    keys = list(jax.random.split(key, 160))
    it = iter(keys)
    nk = lambda: next(it)

    params = {}
    # backbone (per-point MLP)
    w1, b1 = _linear(nk(), 3, backbone_hidden)
    w2, b2 = _linear(nk(), backbone_hidden, c)
    params["mlp"] = dict(w1=w1, b1=b1, w2=w2, b2=b2)

    # point-transformer layers
    pt = []
    for _ in range(num_transformer_pt_layers):
        lp = {}
        lp["fc1_w"], lp["fc1_b"] = _linear(nk(), c, c)
        lp["fc2_w"], lp["fc2_b"] = _linear(nk(), c, c)
        lp["d1_w"], lp["d1_b"] = _linear(nk(), 3, c)
        lp["d2_w"], lp["d2_b"] = _linear(nk(), c, c)
        lp["g1_w"], lp["g1_b"] = _linear(nk(), c, c)
        lp["g2_w"], lp["g2_b"] = _linear(nk(), c, c)
        lp["wq"] = _linear(nk(), c, c, bias=False)
        lp["wk"] = _linear(nk(), c, c, bias=False)
        lp["wv"] = _linear(nk(), c, c, bias=False)
        pt.append(lp)
    params["pt_layers"] = pt

    # global transformer layers: self (fused QKV) + cross-with-FFN (fused KV)
    def attn_p_self():
        d = {}
        wq, bq = _linear(nk(), c, c)
        wk, bk = _linear(nk(), c, c)
        wv, bv = _linear(nk(), c, c)
        d["wqkv"] = jnp.concatenate([wq, wk, wv], axis=1)     # (C, 3C)
        d["bqkv"] = jnp.concatenate([bq, bk, bv], axis=1)     # (1, 3C)
        d["wm"], d["bm"] = _linear(nk(), c, c)
        d["g1"] = jnp.ones((1, c), jnp.float32)
        d["b1"] = jnp.zeros((1, c), jnp.float32)
        return d

    def attn_p_cross():
        d = {}
        d["wq"], d["bq"] = _linear(nk(), c, c)
        wk, bk = _linear(nk(), c, c)
        wv, bv = _linear(nk(), c, c)
        d["wkv"] = jnp.concatenate([wk, wv], axis=1)          # (C, 2C)
        d["bkv"] = jnp.concatenate([bk, bv], axis=1)          # (1, 2C)
        d["wm"], d["bm"] = _linear(nk(), c, c)
        d["g1"] = jnp.ones((1, c), jnp.float32)
        d["b1"] = jnp.zeros((1, c), jnp.float32)
        hdim = 2 * c * ffn_dim_expansion
        d["wf1"] = _linear(nk(), 2 * c, hdim, bias=False)
        d["wf2"] = _linear(nk(), hdim, c, bias=False)
        d["g2"] = jnp.ones((1, c), jnp.float32)
        d["b2"] = jnp.zeros((1, c), jnp.float32)
        return d

    params["tr_layers"] = [{"self": attn_p_self(), "cross": attn_p_cross()}
                           for _ in range(num_transformer_layers)]

    # SelfCorrelationSoftmax3D
    sc = {}
    sc["wq"], sc["bq"] = _linear(nk(), c, c)
    sc["wk"], sc["bk"] = _linear(nk(), c, c)
    params["selfcorr"] = sc
    return params


# ---------------------------------------------------------------------------
# GMSF forward
# ---------------------------------------------------------------------------
def gmsf_forward(params, pc0, pc1, knn_k=16):
    # pc0, pc1: (B, N, 3)
    bsz = pc0.shape[0]
    xyz0, xyz1 = pc0, pc1

    # backbone: both clouds through ONE pallas_call (grid over 2B)
    feats_all = mlp_backbone(jnp.concatenate([pc0, pc1], axis=0), params["mlp"])
    feats0_3d, feats1_3d = feats_all[:bsz], feats_all[bsz:]

    feature0, feature1 = feats0_3d, feats1_3d

    # point-transformer refinement (local kNN vector attention, plain JAX)
    if params["pt_layers"]:
        feature0, feature1 = feature_transformer_3d_pt(
            xyz0, xyz1, feature0, feature1, params["pt_layers"], knn_k)

    # global self/cross transformer (pre-projected QKV + flash-tiled Pallas kernels)
    if params["tr_layers"]:
        feature0, feature1 = feature_transformer_3d(feature0, feature1,
                                                    params["tr_layers"])

    # global correlation softmax -> initial scene flow, already (B, 3, N)
    flow_t = global_correlation_softmax_3d(feature0, feature1, xyz0, xyz1)

    # self-correlation softmax propagation of the flow, stays (B, 3, N)
    flow_t = self_correlation_softmax_3d(feature0, flow_t, params["selfcorr"])

    # PyTorch output layout: (B, 3, N) flow, (B, C, N) features
    results_dict = {
        "flow_preds": [flow_t],
        "feat_preds": [jnp.transpose(feats0_3d, (0, 2, 1))],
        "feat_gts": [jnp.transpose(feats1_3d, (0, 2, 1))],
    }
    return results_dict


# ---------------------------------------------------------------------------
if __name__ == "__main__":
    B, N, C = 2, 64, 32          # small shapes: batch=2, 64 points, 32 feature channels
    NUM_TR_LAYERS = 2            # (paper default 8; reduced for the small demo)
    NUM_PT_LAYERS = 1
    FFN_EXP = 4
    KNN_K = 16

    key = jax.random.PRNGKey(0)
    k0, k1, kp = jax.random.split(key, 3)
    pc0 = jax.random.normal(k0, (B, N, 3), jnp.float32)
    pc1 = pc0 + 0.05 * jax.random.normal(k1, (B, N, 3), jnp.float32)

    params = init_params(kp, feature_channels=C, ffn_dim_expansion=FFN_EXP,
                         num_transformer_layers=NUM_TR_LAYERS,
                         num_transformer_pt_layers=NUM_PT_LAYERS)

    fwd = jax.jit(gmsf_forward, static_argnames=("knn_k",))
    out = fwd(params, pc0, pc1, knn_k=KNN_K)
    out = jax.block_until_ready(out)

    assert out["flow_preds"][0].shape == (B, 3, N)
    assert out["feat_preds"][0].shape == (B, C, N)
    assert out["feat_gts"][0].shape == (B, C, N)
    assert bool(jnp.all(jnp.isfinite(out["flow_preds"][0])))
    assert bool(jnp.all(jnp.isfinite(out["feat_preds"][0])))

    print("KERNEL_OK")
</pallas_src>

<mosaic_0001>
module attributes {stable_mosaic.version = 11 : i64} {
  func.func @_mlp_backbone_kernel(%arg0: i32, %arg1: i32, %arg2: memref<1x64x3xf32, #tpu.memory_space<vmem>>, %arg3: memref<3x64xf32, #tpu.memory_space<vmem>>, %arg4: memref<1x64xf32, #tpu.memory_space<vmem>>, %arg5: memref<64x32xf32, #tpu.memory_space<vmem>>, %arg6: memref<1x32xf32, #tpu.memory_space<vmem>>, %arg7: memref<1x64x32xf32, #tpu.memory_space<vmem>>) attributes {dimension_semantics = [#tpu.dimension_semantics<parallel>, #tpu.dimension_semantics<parallel>], iteration_bounds = array<i64: 4, 1>, scalar_prefetch = 0 : i64, scratch_operands = 0 : i64, tpu.core_type = #tpu.core_type<tc>, window_params = [{transform_indices = @transform_0, window_bounds = array<i64: 1, 64, 3>}, {pipeline_mode = #tpu.pipeline_mode<synchronous>, transform_indices = @transform_1, window_bounds = array<i64: 3, 64>}, {pipeline_mode = #tpu.pipeline_mode<synchronous>, transform_indices = @transform_2, window_bounds = array<i64: 1, 64>}, {pipeline_mode = #tpu.pipeline_mode<synchronous>, transform_indices = @transform_3, window_bounds = array<i64: 64, 32>}, {pipeline_mode = #tpu.pipeline_mode<synchronous>, transform_indices = @transform_4, window_bounds = array<i64: 1, 32>}, {transform_indices = @transform_5, window_bounds = array<i64: 1, 64, 32>}]} {
    %c0 = arith.constant 0 : index
    %c0_0 = arith.constant 0 : index
    %c0_1 = arith.constant 0 : index
    %0 = vector.load %arg2[%c0, %c0_0, %c0_1] : memref<1x64x3xf32, #tpu.memory_space<vmem>>, vector<1x64x3xf32>
    %1 = vector.shape_cast %0 : vector<1x64x3xf32> to vector<64x3xf32>
    %c0_2 = arith.constant 0 : index
    %c0_3 = arith.constant 0 : index
    %2 = vector.load %arg3[%c0_2, %c0_3] : memref<3x64xf32, #tpu.memory_space<vmem>>, vector<3x64xf32>
    %3 = arith.truncf %1 : vector<64x3xf32> to vector<64x3xbf16>
    %4 = arith.truncf %2 : vector<3x64xf32> to vector<3x64xbf16>
    %cst = arith.constant dense<0.000000e+00> : vector<64x64xf32>
    %5 = tpu.matmul %3, %4, %cst {dimension_numbers = #tpu.dot_dimension_numbers<[1], [0], [0], [1], [0, 0, 1, 1], [], []>} : vector<64x3xbf16>, vector<3x64xbf16>, vector<64x64xf32> -> vector<64x64xf32>
    %c0_4 = arith.constant 0 : index
    %c0_5 = arith.constant 0 : index
    %6 = vector.load %arg4[%c0_4, %c0_5] : memref<1x64xf32, #tpu.memory_space<vmem>>, vector<1x64xf32>
    %7 = vector.broadcast %6 : vector<1x64xf32> to vector<64x64xf32>
    %8 = arith.addf %5, %7 : vector<64x64xf32>
    %cst_6 = arith.constant 5.000000e-01 : f32
    %9 = vector.broadcast %cst_6 : f32 to vector<64x64xf32>
    %10 = arith.mulf %9, %8 : vector<64x64xf32>
    %cst_7 = arith.constant 4.471500e-02 : f32
    %11 = vector.broadcast %cst_7 : f32 to vector<64x64xf32>
    %12 = arith.mulf %11, %8 : vector<64x64xf32>
    %13 = arith.mulf %12, %8 : vector<64x64xf32>
    %14 = arith.mulf %13, %8 : vector<64x64xf32>
    %15 = arith.addf %8, %14 : vector<64x64xf32>
    %cst_8 = arith.constant 0.797884583 : f32
    %16 = vector.broadcast %cst_8 : f32 to vector<64x64xf32>
    %17 = arith.mulf %16, %15 : vector<64x64xf32>
    %18 = math.tanh %17 : vector<64x64xf32>
    %cst_9 = arith.constant 1.000000e+00 : f32
    %19 = vector.broadcast %cst_9 : f32 to vector<64x64xf32>
    %20 = arith.addf %19, %18 : vector<64x64xf32>
    %21 = arith.mulf %10, %20 : vector<64x64xf32>
    %c0_10 = arith.constant 0 : index
    %c0_11 = arith.constant 0 : index
    %22 = vector.load %arg5[%c0_10, %c0_11] : memref<64x32xf32, #tpu.memory_space<vmem>>, vector<64x32xf32>
    %23 = arith.truncf %21 : vector<64x64xf32> to vector<64x64xbf16>
    %24 = arith.truncf %22 : vector<64x32xf32> to vector<64x32xbf16>
    %cst_12 = arith.constant dense<0.000000e+00> : vector<64x32xf32>
    %25 = tpu.matmul %23, %24, %cst_12 {dimension_numbers = #tpu.dot_dimension_numbers<[1], [0], [0], [1], [0, 0, 1, 1], [], []>} : vector<64x64xbf16>, vector<64x32xbf16>, vector<64x32xf32> -> vector<64x32xf32>
    %c0_13 = arith.constant 0 : index
    %c0_14 = arith.constant 0 : index
    %26 = vector.load %arg6[%c0_13, %c0_14] : memref<1x32xf32, #tpu.memory_space<vmem>>, vector<1x32xf32>
    %27 = vector.broadcast %26 : vector<1x32xf32> to vector<64x32xf32>
    %28 = arith.addf %25, %27 : vector<64x32xf32>
    %c0_15 = arith.constant 0 : index
    %c0_16 = arith.constant 0 : index
    %c0_17 = arith.constant 0 : index
    %29 = vector.load %arg7[%c0_15, %c0_16, %c0_17] : memref<1x64x32xf32, #tpu.memory_space<vmem>>, vector<1x64x32xf32>
    %30 = vector.shape_cast %29 : vector<1x64x32xf32> to vector<64x32xf32>
    %31 = vector.shape_cast %28 : vector<64x32xf32> to vector<1x64x32xf32>
    tpu.vector_store %arg7[%c0_15, %c0_16, %c0_17], %31 {strides = array<i32>} : memref<1x64x32xf32, #tpu.memory_space<vmem>>, vector<1x64x32xf32>,
    return
  }
  func.func @transform_0(%arg0: i32, %arg1: i32) -> (i32, i32, i32) {
    %c0_i32 = arith.constant 0 : i32
    %c0_i32_0 = arith.constant 0 : i32
    return %arg0, %arg1, %c0_i32 : i32, i32, i32
  }
  func.func @transform_1(%arg0: i32, %arg1: i32) -> (i32, i32) {
    %c0_i32 = arith.constant 0 : i32
    %c0_i32_0 = arith.constant 0 : i32
    %c0_i32_1 = arith.constant 0 : i32
    return %c0_i32, %c0_i32_0 : i32, i32
  }
  func.func @transform_2(%arg0: i32, %arg1: i32) -> (i32, i32) {
    %c0_i32 = arith.constant 0 : i32
    %c0_i32_0 = arith.constant 0 : i32
    %c0_i32_1 = arith.constant 0 : i32
    return %c0_i32, %c0_i32_0 : i32, i32
  }
  func.func @transform_3(%arg0: i32, %arg1: i32) -> (i32, i32) {
    %c0_i32 = arith.constant 0 : i32
    %c0_i32_0 = arith.constant 0 : i32
    %c0_i32_1 = arith.constant 0 : i32
    return %c0_i32, %c0_i32_0 : i32, i32
  }
  func.func @transform_4(%arg0: i32, %arg1: i32) -> (i32, i32) {
    %c0_i32 = arith.constant 0 : i32
    %c0_i32_0 = arith.constant 0 : i32
    %c0_i32_1 = arith.constant 0 : i32
    return %c0_i32, %c0_i32_0 : i32, i32
  }
  func.func @transform_5(%arg0: i32, %arg1: i32) -> (i32, i32, i32) {
    %c0_i32 = arith.constant 0 : i32
    %c0_i32_0 = arith.constant 0 : i32
    return %arg0, %arg1, %c0_i32 : i32, i32, i32
  }
}

module attributes {stable_mosaic.version = 11 : i64} {
  func.func @_proj_self_kernel(%arg0: i32, %arg1: i32, %arg2: memref<1x64x32xbf16, #tpu.memory_space<vmem>>, %arg3: memref<32x96xf32, #tpu.memory_space<vmem>>, %arg4: memref<1x96xf32, #tpu.memory_space<vmem>>, %arg5: memref<1x64x32xbf16, #tpu.memory_space<vmem>>, %arg6: memref<1x64x64xbf16, #tpu.memory_space<vmem>>) attributes {dimension_semantics = [#tpu.dimension_semantics<parallel>, #tpu.dimension_semantics<parallel>], iteration_bounds = array<i64: 4, 1>, scalar_prefetch = 0 : i64, scratch_operands = 0 : i64, tpu.core_type = #tpu.core_type<tc>, window_params = [{transform_indices = @transform_0, window_bounds = array<i64: 1, 64, 32>}, {pipeline_mode = #tpu.pipeline_mode<synchronous>, transform_indices = @transform_1, window_bounds = array<i64: 32, 96>}, {pipeline_mode = #tpu.pipeline_mode<synchronous>, transform_indices = @transform_2, window_bounds = array<i64: 1, 96>}, {transform_indices = @transform_3, window_bounds = array<i64: 1, 64, 32>}, {transform_indices = @transform_4, window_bounds = array<i64: 1, 64, 64>}]} {
    %c0 = arith.constant 0 : index
    %c0_0 = arith.constant 0 : index
    %c0_1 = arith.constant 0 : index
    %0 = vector.load %arg2[%c0, %c0_0, %c0_1] : memref<1x64x32xbf16, #tpu.memory_space<vmem>>, vector<1x64x32xbf16>
    %1 = vector.shape_cast %0 : vector<1x64x32xbf16> to vector<64x32xbf16>
    %c0_2 = arith.constant 0 : index
    %c0_3 = arith.constant 0 : index
    %2 = vector.load %arg3[%c0_2, %c0_3] : memref<32x96xf32, #tpu.memory_space<vmem>>, vector<32x96xf32>
    %3 = arith.truncf %2 : vector<32x96xf32> to vector<32x96xbf16>
    %cst = arith.constant dense<0.000000e+00> : vector<64x96xf32>
    %4 = tpu.matmul %1, %3, %cst {dimension_numbers = #tpu.dot_dimension_numbers<[1], [0], [0], [1], [0, 0, 1, 1], [], []>} : vector<64x32xbf16>, vector<32x96xbf16>, vector<64x96xf32> -> vector<64x96xf32>
    %c0_4 = arith.constant 0 : index
    %c0_5 = arith.constant 0 : index
    %5 = vector.load %arg4[%c0_4, %c0_5] : memref<1x96xf32, #tpu.memory_space<vmem>>, vector<1x96xf32>
    %6 = vector.broadcast %5 : vector<1x96xf32> to vector<64x96xf32>
    %7 = arith.addf %4, %6 : vector<64x96xf32>
    %8 = vector.extract_strided_slice %7 {offsets = [0, 0], sizes = [64, 32], strides = [1, 1]} : vector<64x96xf32> to vector<64x32xf32>
    %cst_6 = arith.constant 0.176776692 : f32
    %9 = vector.broadcast %cst_6 : f32 to vector<64x32xf32>
    %10 = arith.mulf %8, %9 : vector<64x32xf32>
    %11 = arith.truncf %10 : vector<64x32xf32> to vector<64x32xbf16>
    %c0_7 = arith.constant 0 : index
    %c0_8 = arith.constant 0 : index
    %c0_9 = arith.constant 0 : index
    %12 = vector.load %arg5[%c0_7, %c0_8, %c0_9] : memref<1x64x32xbf16, #tpu.memory_space<vmem>>, vector<1x64x32xbf16>
    %13 = vector.shape_cast %12 : vector<1x64x32xbf16> to vector<64x32xbf16>
    %14 = vector.shape_cast %11 : vector<64x32xbf16> to vector<1x64x32xbf16>
    tpu.vector_store %arg5[%c0_7, %c0_8, %c0_9], %14 {strides = array<i32>} : memref<1x64x32xbf16, #tpu.memory_space<vmem>>, vector<1x64x32xbf16>,
    %15 = vector.extract_strided_slice %7 {offsets = [0, 32], sizes = [64, 64], strides = [1, 1]} : vector<64x96xf32> to vector<64x64xf32>
    %16 = arith.truncf %15 : vector<64x64xf32> to vector<64x64xbf16>
    %c0_10 = arith.constant 0 : index
    %c0_11 = arith.constant 0 : index
    %c0_12 = arith.constant 0 : index
    %17 = vector.load %arg6[%c0_10, %c0_11, %c0_12] : memref<1x64x64xbf16, #tpu.memory_space<vmem>>, vector<1x64x64xbf16>
    %18 = vector.shape_cast %17 : vector<1x64x64xbf16> to vector<64x64xbf16>
    %19 = vector.shape_cast %16 : vector<64x64xbf16> to vector<1x64x64xbf16>
    tpu.vector_store %arg6[%c0_10, %c0_11, %c0_12], %19 {strides = array<i32>} : memref<1x64x64xbf16, #tpu.memory_space<vmem>>, vector<1x64x64xbf16>,
    return
  }
  func.func @transform_0(%arg0: i32, %arg1: i32) -> (i32, i32, i32) {
    %c0_i32 = arith.constant 0 : i32
    %c0_i32_0 = arith.constant 0 : i32
    return %arg0, %arg1, %c0_i32 : i32, i32, i32
  }
  func.func @transform_1(%arg0: i32, %arg1: i32) -> (i32, i32) {
    %c0_i32 = arith.constant 0 : i32
    %c0_i32_0 = arith.constant 0 : i32
    %c0_i32_1 = arith.constant 0 : i32
    return %c0_i32, %c0_i32_0 : i32, i32
  }
  func.func @transform_2(%arg0: i32, %arg1: i32) -> (i32, i32) {
    %c0_i32 = arith.constant 0 : i32
    %c0_i32_0 = arith.constant 0 : i32
    %c0_i32_1 = arith.constant 0 : i32
    return %c0_i32, %c0_i32_0 : i32, i32
  }
  func.func @transform_3(%arg0: i32, %arg1: i32) -> (i32, i32, i32) {
    %c0_i32 = arith.constant 0 : i32
    %c0_i32_0 = arith.constant 0 : i32
    return %arg0, %arg1, %c0_i32 : i32, i32, i32
  }
  func.func @transform_4(%arg0: i32, %arg1: i32) -> (i32, i32, i32) {
    %c0_i32 = arith.constant 0 : i32
    %c0_i32_0 = arith.constant 0 : i32
    return %arg0, %arg1, %c0_i32 : i32, i32, i32
  }
}

module attributes {stable_mosaic.version = 11 : i64} {
  func.func @_proj_cross_kernel(%arg0: i32, %arg1: i32, %arg2: memref<1x64x32xbf16, #tpu.memory_space<vmem>>, %arg3: memref<1x64x32xbf16, #tpu.memory_space<vmem>>, %arg4: memref<32x32xf32, #tpu.memory_space<vmem>>, %arg5: memref<1x32xf32, #tpu.memory_space<vmem>>, %arg6: memref<32x64xf32, #tpu.memory_space<vmem>>, %arg7: memref<1x64xf32, #tpu.memory_space<vmem>>, %arg8: memref<1x64x32xbf16, #tpu.memory_space<vmem>>, %arg9: memref<1x64x64xbf16, #tpu.memory_space<vmem>>) attributes {dimension_semantics = [#tpu.dimension_semantics<parallel>, #tpu.dimension_semantics<parallel>], iteration_bounds = array<i64: 4, 1>, scalar_prefetch = 0 : i64, scratch_operands = 0 : i64, tpu.core_type = #tpu.core_type<tc>, window_params = [{transform_indices = @transform_0, window_bounds = array<i64: 1, 64, 32>}, {transform_indices = @transform_1, window_bounds = array<i64: 1, 64, 32>}, {pipeline_mode = #tpu.pipeline_mode<synchronous>, transform_indices = @transform_2, window_bounds = array<i64: 32, 32>}, {pipeline_mode = #tpu.pipeline_mode<synchronous>, transform_indices = @transform_3, window_bounds = array<i64: 1, 32>}, {pipeline_mode = #tpu.pipeline_mode<synchronous>, transform_indices = @transform_4, window_bounds = array<i64: 32, 64>}, {pipeline_mode = #tpu.pipeline_mode<synchronous>, transform_indices = @transform_5, window_bounds = array<i64: 1, 64>}, {transform_indices = @transform_6, window_bounds = array<i64: 1, 64, 32>}, {transform_indices = @transform_7, window_bounds = array<i64: 1, 64, 64>}]} {
    %c0 = arith.constant 0 : index
    %c0_0 = arith.constant 0 : index
    %c0_1 = arith.constant 0 : index
    %0 = vector.load %arg2[%c0, %c0_0, %c0_1] : memref<1x64x32xbf16, #tpu.memory_space<vmem>>, vector<1x64x32xbf16>
    %1 = vector.shape_cast %0 : vector<1x64x32xbf16> to vector<64x32xbf16>
    %c0_2 = arith.constant 0 : index
    %c0_3 = arith.constant 0 : index
    %2 = vector.load %arg4[%c0_2, %c0_3] : memref<32x32xf32, #tpu.memory_space<vmem>>, vector<32x32xf32>
    %3 = arith.truncf %2 : vector<32x32xf32> to vector<32x32xbf16>
    %cst = arith.constant dense<0.000000e+00> : vector<64x32xf32>
    %4 = tpu.matmul %1, %3, %cst {dimension_numbers = #tpu.dot_dimension_numbers<[1], [0], [0], [1], [0, 0, 1, 1], [], []>} : vector<64x32xbf16>, vector<32x32xbf16>, vector<64x32xf32> -> vector<64x32xf32>
    %c0_4 = arith.constant 0 : index
    %c0_5 = arith.constant 0 : index
    %5 = vector.load %arg5[%c0_4, %c0_5] : memref<1x32xf32, #tpu.memory_space<vmem>>, vector<1x32xf32>
    %6 = vector.broadcast %5 : vector<1x32xf32> to vector<64x32xf32>
    %7 = arith.addf %4, %6 : vector<64x32xf32>
    %cst_6 = arith.constant 0.176776692 : f32
    %8 = vector.broadcast %cst_6 : f32 to vector<64x32xf32>
    %9 = arith.mulf %7, %8 : vector<64x32xf32>
    %10 = arith.truncf %9 : vector<64x32xf32> to vector<64x32xbf16>
    %c0_7 = arith.constant 0 : index
    %c0_8 = arith.constant 0 : index
    %c0_9 = arith.constant 0 : index
    %11 = vector.load %arg8[%c0_7, %c0_8, %c0_9] : memref<1x64x32xbf16, #tpu.memory_space<vmem>>, vector<1x64x32xbf16>
    %12 = vector.shape_cast %11 : vector<1x64x32xbf16> to vector<64x32xbf16>
    %13 = vector.shape_cast %10 : vector<64x32xbf16> to vector<1x64x32xbf16>
    tpu.vector_store %arg8[%c0_7, %c0_8, %c0_9], %13 {strides = array<i32>} : memref<1x64x32xbf16, #tpu.memory_space<vmem>>, vector<1x64x32xbf16>,
    %c0_10 = arith.constant 0 : index
    %c0_11 = arith.constant 0 : index
    %c0_12 = arith.constant 0 : index
    %14 = vector.load %arg3[%c0_10, %c0_11, %c0_12] : memref<1x64x32xbf16, #tpu.memory_space<vmem>>, vector<1x64x32xbf16>
    %15 = vector.shape_cast %14 : vector<1x64x32xbf16> to vector<64x32xbf16>
    %c0_13 = arith.constant 0 : index
    %c0_14 = arith.constant 0 : index
    %16 = vector.load %arg6[%c0_13, %c0_14] : memref<32x64xf32, #tpu.memory_space<vmem>>, vector<32x64xf32>
    %17 = arith.truncf %16 : vector<32x64xf32> to vector<32x64xbf16>
    %cst_15 = arith.constant dense<0.000000e+00> : vector<64x64xf32>
    %18 = tpu.matmul %15, %17, %cst_15 {dimension_numbers = #tpu.dot_dimension_numbers<[1], [0], [0], [1], [0, 0, 1, 1], [], []>} : vector<64x32xbf16>, vector<32x64xbf16>, vector<64x64xf32> -> vector<64x64xf32>
    %c0_16 = arith.constant 0 : index
    %c0_17 = arith.constant 0 : index
    %19 = vector.load %arg7[%c0_16, %c0_17] : memref<1x64xf32, #tpu.memory_space<vmem>>, vector<1x64xf32>
    %20 = vector.broadcast %19 : vector<1x64xf32> to vector<64x64xf32>
    %21 = arith.addf %18, %20 : vector<64x64xf32>
    %22 = arith.truncf %21 : vector<64x64xf32> to vector<64x64xbf16>
    %c0_18 = arith.constant 0 : index
    %c0_19 = arith.constant 0 : index
    %c0_20 = arith.constant 0 : index
    %23 = vector.load %arg9[%c0_18, %c0_19, %c0_20] : memref<1x64x64xbf16, #tpu.memory_space<vmem>>, vector<1x64x64xbf16>
    %24 = vector.shape_cast %23 : vector<1x64x64xbf16> to vector<64x64xbf16>
    %25 = vector.shape_cast %22 : vector<64x64xbf16> to vector<1x64x64xbf16>
    tpu.vector_store %arg9[%c0_18, %c0_19, %c0_20], %25 {strides = array<i32>} : memref<1x64x64xbf16, #tpu.memory_space<vmem>>, vector<1x64x64xbf16>,
    return
  }
  func.func @transform_0(%arg0: i32, %arg1: i32) -> (i32, i32, i32) {
    %c0_i32 = arith.constant 0 : i32
    %c0_i32_0 = arith.constant 0 : i32
    return %arg0, %arg1, %c0_i32 : i32, i32, i32
  }
  func.func @transform_1(%arg0: i32, %arg1: i32) -> (i32, i32, i32) {
    %c2_i32 = arith.constant 2 : i32
    %0 = arith.addi %arg0, %c2_i32 : i32
    %c4_i32 = arith.constant 4 : i32
    %c0_i32 = arith.constant 0 : i32
    %1 = arith.cmpi eq, %c4_i32, %c0_i32 : i32
    %c1_i32 = arith.constant 1 : i32
    %2 = arith.select %1, %c1_i32, %c4_i32 : i32
    %3 = arith.remsi %0, %2 : i32
    %c0_i32_0 = arith.constant 0 : i32
    %4 = arith.cmpi ne, %3, %c0_i32_0 : i32
    %c0_i32_1 = arith.constant 0 : i32
    %5 = arith.cmpi slt, %3, %c0_i32_1 : i32
    %c0_i32_2 = arith.constant 0 : i32
    %6 = arith.cmpi slt, %2, %c0_i32_2 : i32
    %7 = arith.xori %5, %6 : i1
    %8 = arith.andi %7, %4 : i1
    %9 = arith.addi %3, %2 : i32
    %10 = arith.select %8, %9, %3 : i32
    %c0_i32_3 = arith.constant 0 : i32
    %c0_i32_4 = arith.constant 0 : i32
    return %10, %arg1, %c0_i32_3 : i32, i32, i32
  }
  func.func @transform_2(%arg0: i32, %arg1: i32) -> (i32, i32) {
    %c0_i32 = arith.constant 0 : i32
    %c0_i32_0 = arith.constant 0 : i32
    %c0_i32_1 = arith.constant 0 : i32
    return %c0_i32, %c0_i32_0 : i32, i32
  }
  func.func @transform_3(%arg0: i32, %arg1: i32) -> (i32, i32) {
    %c0_i32 = arith.constant 0 : i32
    %c0_i32_0 = arith.constant 0 : i32
    %c0_i32_1 = arith.constant 0 : i32
    return %c0_i32, %c0_i32_0 : i32, i32
  }
  func.func @transform_4(%arg0: i32, %arg1: i32) -> (i32, i32) {
    %c0_i32 = arith.constant 0 : i32
    %c0_i32_0 = arith.constant 0 : i32
    %c0_i32_1 = arith.constant 0 : i32
    return %c0_i32, %c0_i32_0 : i32, i32
  }
  func.func @transform_5(%arg0: i32, %arg1: i32) -> (i32, i32) {
    %c0_i32 = arith.constant 0 : i32
    %c0_i32_0 = arith.constant 0 : i32
    %c0_i32_1 = arith.constant 0 : i32
    return %c0_i32, %c0_i32_0 : i32, i32
  }
  func.func @transform_6(%arg0: i32, %arg1: i32) -> (i32, i32, i32) {
    %c0_i32 = arith.constant 0 : i32
    %c0_i32_0 = arith.constant 0 : i32
    return %arg0, %arg1, %c0_i32 : i32, i32, i32
  }
  func.func @transform_7(%arg0: i32, %arg1: i32) -> (i32, i32, i32) {
    %c0_i32 = arith.constant 0 : i32
    %c0_i32_0 = arith.constant 0 : i32
    return %arg0, %arg1, %c0_i32 : i32, i32, i32
  }
}

module attributes {stable_mosaic.version = 11 : i64} {
  func.func @_attn_kernel(%arg0: i32, %arg1: i32, %arg2: i32, %arg3: memref<1x64x32xbf16, #tpu.memory_space<vmem>>, %arg4: memref<1x64x32xbf16, #tpu.memory_space<vmem>>, %arg5: memref<1x64x64xbf16, #tpu.memory_space<vmem>>, %arg6: memref<32x32xf32, #tpu.memory_space<vmem>>, %arg7: memref<1x32xf32, #tpu.memory_space<vmem>>, %arg8: memref<1x32xf32, #tpu.memory_space<vmem>>, %arg9: memref<1x32xf32, #tpu.memory_space<vmem>>, %arg10: memref<1x64x32xbf16, #tpu.memory_space<vmem>>, %arg11: memref<64x1xf32, #tpu.memory_space<vmem>>, %arg12: memref<64x1xf32, #tpu.memory_space<vmem>>, %arg13: memref<64x32xf32, #tpu.memory_space<vmem>>) attributes {dimension_semantics = [#tpu.dimension_semantics<parallel>, #tpu.dimension_semantics<parallel>, #tpu.dimension_semantics<arbitrary>], iteration_bounds = array<i64: 4, 1, 1>, scalar_prefetch = 0 : i64, scratch_operands = 3 : i64, tpu.core_type = #tpu.core_type<tc>, window_params = [{transform_indices = @transform_0, window_bounds = array<i64: 1, 64, 32>}, {transform_indices = @transform_1, window_bounds = array<i64: 1, 64, 32>}, {transform_indices = @transform_2, window_bounds = array<i64: 1, 64, 64>}, {pipeline_mode = #tpu.pipeline_mode<synchronous>, transform_indices = @transform_3, window_bounds = array<i64: 32, 32>}, {pipeline_mode = #tpu.pipeline_mode<synchronous>, transform_indices = @transform_4, window_bounds = array<i64: 1, 32>}, {pipeline_mode = #tpu.pipeline_mode<synchronous>, transform_indices = @transform_5, window_bounds = array<i64: 1, 32>}, {pipeline_mode = #tpu.pipeline_mode<synchronous>, transform_indices = @transform_6, window_bounds = array<i64: 1, 32>}, {transform_indices = @transform_7, window_bounds = array<i64: 1, 64, 32>}]} {
    %c0_i32 = arith.constant 0 : i32
    %0 = arith.cmpi eq, %arg2, %c0_i32 : i32
    %1 = arith.extui %0 : i1 to i32
    %c0_i32_0 = arith.constant 0 : i32
    %2 = arith.cmpi ne, %1, %c0_i32_0 : i32
    scf.if %2 {
      %cst_23 = arith.constant 0xFF800000 : f32
      %36 = vector.broadcast %cst_23 : f32 to vector<64x1xf32>
      %c0_24 = arith.constant 0 : index
      %c0_25 = arith.constant 0 : index
      %37 = vector.load %arg11[%c0_24, %c0_25] : memref<64x1xf32, #tpu.memory_space<vmem>>, vector<64x1xf32>
      tpu.vector_store %arg11[%c0_24, %c0_25], %36 {strides = array<i32>} : memref<64x1xf32, #tpu.memory_space<vmem>>, vector<64x1xf32>,
      %cst_26 = arith.constant 0.000000e+00 : f32
      %38 = vector.broadcast %cst_26 : f32 to vector<64x1xf32>
      %c0_27 = arith.constant 0 : index
      %c0_28 = arith.constant 0 : index
      %39 = vector.load %arg12[%c0_27, %c0_28] : memref<64x1xf32, #tpu.memory_space<vmem>>, vector<64x1xf32>
      tpu.vector_store %arg12[%c0_27, %c0_28], %38 {strides = array<i32>} : memref<64x1xf32, #tpu.memory_space<vmem>>, vector<64x1xf32>,
      %cst_29 = arith.constant 0.000000e+00 : f32
      %40 = vector.broadcast %cst_29 : f32 to vector<64x32xf32>
      %c0_30 = arith.constant 0 : index
      %c0_31 = arith.constant 0 : index
      %41 = vector.load %arg13[%c0_30, %c0_31] : memref<64x32xf32, #tpu.memory_space<vmem>>, vector<64x32xf32>
      tpu.vector_store %arg13[%c0_30, %c0_31], %40 {strides = array<i32>} : memref<64x32xf32, #tpu.memory_space<vmem>>, vector<64x32xf32>,
    } else {
    }
    %c0 = arith.constant 0 : index
    %c0_1 = arith.constant 0 : index
    %c0_2 = arith.constant 0 : index
    %3 = vector.load %arg4[%c0, %c0_1, %c0_2] : memref<1x64x32xbf16, #tpu.memory_space<vmem>>, vector<1x64x32xbf16>
    %4 = vector.shape_cast %3 : vector<1x64x32xbf16> to vector<64x32xbf16>
    %c0_3 = arith.constant 0 : index
    %c0_4 = arith.constant 0 : index
    %c0_5 = arith.constant 0 : index
    %5 = vector.load %arg5[%c0_3, %c0_4, %c0_5] : memref<1x64x64xbf16, #tpu.memory_space<vmem>>, vector<1x64x64xbf16>
    %6 = vector.shape_cast %5 : vector<1x64x64xbf16> to vector<64x64xbf16>
    %7 = vector.extract_strided_slice %6 {offsets = [0, 0], sizes = [64, 32], strides = [1, 1]} : vector<64x64xbf16> to vector<64x32xbf16>
    %8 = vector.extract_strided_slice %6 {offsets = [0, 32], sizes = [64, 32], strides = [1, 1]} : vector<64x64xbf16> to vector<64x32xbf16>
    %cst = arith.constant dense<0.000000e+00> : vector<64x64xf32>
    %9 = tpu.matmul %4, %7, %cst {dimension_numbers = #tpu.dot_dimension_numbers<[1], [1], [0], [0], [0, 0, 1, 0], [], []>} : vector<64x32xbf16>, vector<64x32xbf16>, vector<64x64xf32> -> vector<64x64xf32>
    %c0_6 = arith.constant 0 : index
    %c0_7 = arith.constant 0 : index
    %10 = vector.load %arg11[%c0_6, %c0_7] : memref<64x1xf32, #tpu.memory_space<vmem>>, vector<64x1xf32>
    %cst_8 = arith.constant dense<0xFF800000> : vector<64xf32>
    %11 = vector.multi_reduction <maximumf>, %9, %cst_8 [1] : vector<64x64xf32> to vector<64xf32>
    %12 = vector.shape_cast %11 : vector<64xf32> to vector<64x1xf32>
    %13 = arith.maximumf %10, %12 : vector<64x1xf32>
    %14 = arith.subf %10, %13 : vector<64x1xf32>
    %15 = math.exp %14 : vector<64x1xf32>
    %16 = vector.broadcast %13 : vector<64x1xf32> to vector<64x64xf32>
    %17 = arith.subf %9, %16 : vector<64x64xf32>
    %18 = math.exp %17 : vector<64x64xf32>
    %c0_9 = arith.constant 0 : index
    %c0_10 = arith.constant 0 : index
    %19 = vector.load %arg12[%c0_9, %c0_10] : memref<64x1xf32, #tpu.memory_space<vmem>>, vector<64x1xf32>
    %20 = arith.mulf %15, %19 : vector<64x1xf32>
    %cst_11 = arith.constant dense<0.000000e+00> : vector<64xf32>
    %21 = vector.multi_reduction <add>, %18, %cst_11 [1] : vector<64x64xf32> to vector<64xf32>
    %22 = vector.shape_cast %21 : vector<64xf32> to vector<64x1xf32>
    %23 = arith.addf %20, %22 : vector<64x1xf32>
    %c0_12 = arith.constant 0 : index
    %c0_13 = arith.constant 0 : index
    %24 = vector.load %arg12[%c0_12, %c0_13] : memref<64x1xf32, #tpu.memory_space<vmem>>, vector<64x1xf32>
    tpu.vector_store %arg12[%c0_12, %c0_13], %23 {strides = array<i32>} : memref<64x1xf32, #tpu.memory_space<vmem>>, vector<64x1xf32>,
    %c0_14 = arith.constant 0 : index
    %c0_15 = arith.constant 0 : index
    %25 = vector.load %arg13[%c0_14, %c0_15] : memref<64x32xf32, #tpu.memory_space<vmem>>, vector<64x32xf32>
    %26 = vector.broadcast %15 : vector<64x1xf32> to vector<64x32xf32>
    %27 = arith.mulf %26, %25 : vector<64x32xf32>
    %28 = arith.truncf %18 : vector<64x64xf32> to vector<64x64xbf16>
    %cst_16 = arith.constant dense<0.000000e+00> : vector<64x32xf32>
    %29 = tpu.matmul %28, %8, %cst_16 {dimension_numbers = #tpu.dot_dimension_numbers<[1], [0], [0], [1], [0, 0, 1, 1], [], []>} : vector<64x64xbf16>, vector<64x32xbf16>, vector<64x32xf32> -> vector<64x32xf32>
    %30 = arith.addf %27, %29 : vector<64x32xf32>
    %c0_17 = arith.constant 0 : index
    %c0_18 = arith.constant 0 : index
    %31 = vector.load %arg13[%c0_17, %c0_18] : memref<64x32xf32, #tpu.memory_space<vmem>>, vector<64x32xf32>
    tpu.vector_store %arg13[%c0_17, %c0_18], %30 {strides = array<i32>} : memref<64x32xf32, #tpu.memory_space<vmem>>, vector<64x32xf32>,
    %c0_19 = arith.constant 0 : index
    %c0_20 = arith.constant 0 : index
    %32 = vector.load %arg11[%c0_19, %c0_20] : memref<64x1xf32, #tpu.memory_space<vmem>>, vector<64x1xf32>
    tpu.vector_store %arg11[%c0_19, %c0_20], %13 {strides = array<i32>} : memref<64x1xf32, #tpu.memory_space<vmem>>, vector<64x1xf32>,
    %c0_i32_21 = arith.constant 0 : i32
    %33 = arith.cmpi eq, %arg2, %c0_i32_21 : i32
    %34 = arith.extui %33 : i1 to i32
    %c0_i32_22 = arith.constant 0 : i32
    %35 = arith.cmpi ne, %34, %c0_i32_22 : i32
    scf.if %35 {
      %c0_23 = arith.constant 0 : index
      %c0_24 = arith.constant 0 : index
      %36 = vector.load %arg13[%c0_23, %c0_24] : memref<64x32xf32, #tpu.memory_space<vmem>>, vector<64x32xf32>
      %c0_25 = arith.constant 0 : index
      %c0_26 = arith.constant 0 : index
      %37 = vector.load %arg12[%c0_25, %c0_26] : memref<64x1xf32, #tpu.memory_space<vmem>>, vector<64x1xf32>
      %38 = tpu.reciprocal %37 {approx = true} : vector<64x1xf32> -> vector<64x1xf32>
      %39 = vector.broadcast %38 : vector<64x1xf32> to vector<64x32xf32>
      %40 = arith.mulf %36, %39 : vector<64x32xf32>
      %c0_27 = arith.constant 0 : index
      %c0_28 = arith.constant 0 : index
      %41 = vector.load %arg6[%c0_27, %c0_28] : memref<32x32xf32, #tpu.memory_space<vmem>>, vector<32x32xf32>
      %42 = arith.truncf %40 : vector<64x32xf32> to vector<64x32xbf16>
      %43 = arith.truncf %41 : vector<32x32xf32> to vector<32x32xbf16>
      %cst_29 = arith.constant dense<0.000000e+00> : vector<64x32xf32>
      %44 = tpu.matmul %42, %43, %cst_29 {dimension_numbers = #tpu.dot_dimension_numbers<[1], [0], [0], [1], [0, 0, 1, 1], [], []>} : vector<64x32xbf16>, vector<32x32xbf16>, vector<64x32xf32> -> vector<64x32xf32>
      %c0_30 = arith.constant 0 : index
      %c0_31 = arith.constant 0 : index
      %45 = vector.load %arg7[%c0_30, %c0_31] : memref<1x32xf32, #tpu.memory_space<vmem>>, vector<1x32xf32>
      %46 = vector.broadcast %45 : vector<1x32xf32> to vector<64x32xf32>
      %47 = arith.addf %44, %46 : vector<64x32xf32>
      %c0_32 = arith.constant 0 : index
      %c0_33 = arith.constant 0 : index
      %48 = vector.load %arg8[%c0_32, %c0_33] : memref<1x32xf32, #tpu.memory_space<vmem>>, vector<1x32xf32>
      %c0_34 = arith.constant 0 : index
      %c0_35 = arith.constant 0 : index
      %49 = vector.load %arg9[%c0_34, %c0_35] : memref<1x32xf32, #tpu.memory_space<vmem>>, vector<1x32xf32>
      %cst_36 = arith.constant dense<0.000000e+00> : vector<64xf32>
      %50 = vector.multi_reduction <add>, %47, %cst_36 [1] : vector<64x32xf32> to vector<64xf32>
      %51 = vector.shape_cast %50 : vector<64xf32> to vector<64x1xf32>
      %cst_37 = arith.constant 3.200000e+01 : f32
      %52 = vector.broadcast %cst_37 : f32 to vector<64x1xf32>
      %53 = arith.divf %51, %52 : vector<64x1xf32>
      %54 = vector.broadcast %53 : vector<64x1xf32> to vector<64x32xf32>
      %55 = arith.subf %47, %54 : vector<64x32xf32>
      %56 = arith.mulf %55, %55 : vector<64x32xf32>
      %cst_38 = arith.constant dense<0.000000e+00> : vector<64xf32>
      %57 = vector.multi_reduction <add>, %56, %cst_38 [1] : vector<64x32xf32> to vector<64xf32>
      %58 = vector.shape_cast %57 : vector<64xf32> to vector<64x1xf32>
      %cst_39 = arith.constant 3.200000e+01 : f32
      %59 = vector.broadcast %cst_39 : f32 to vector<64x1xf32>
      %60 = arith.divf %58, %59 : vector<64x1xf32>
      %61 = vector.broadcast %53 : vector<64x1xf32> to vector<64x32xf32>
      %62 = arith.subf %47, %61 : vector<64x32xf32>
      %cst_40 = arith.constant 9.99999974E-6 : f32
      %63 = vector.broadcast %cst_40 : f32 to vector<64x1xf32>
      %64 = arith.addf %60, %63 : vector<64x1xf32>
      %65 = math.rsqrt %64 : vector<64x1xf32>
      %66 = vector.broadcast %65 : vector<64x1xf32> to vector<64x32xf32>
      %67 = arith.mulf %62, %66 : vector<64x32xf32>
      %68 = vector.broadcast %48 : vector<1x32xf32> to vector<64x32xf32>
      %69 = arith.mulf %67, %68 : vector<64x32xf32>
      %70 = vector.broadcast %49 : vector<1x32xf32> to vector<64x32xf32>
      %71 = arith.addf %69, %70 : vector<64x32xf32>
      %c0_41 = arith.constant 0 : index
      %c0_42 = arith.constant 0 : index
      %c0_43 = arith.constant 0 : index
      %72 = vector.load %arg3[%c0_41, %c0_42, %c0_43] : memref<1x64x32xbf16, #tpu.memory_space<vmem>>, vector<1x64x32xbf16>
      %73 = vector.shape_cast %72 : vector<1x64x32xbf16> to vector<64x32xbf16>
      %74 = arith.extf %73 : vector<64x32xbf16> to vector<64x32xf32>
      %75 = arith.addf %74, %71 : vector<64x32xf32>
      %76 = arith.truncf %75 : vector<64x32xf32> to vector<64x32xbf16>
      %c0_44 = arith.constant 0 : index
      %c0_45 = arith.constant 0 : index
      %c0_46 = arith.constant 0 : index
      %77 = vector.load %arg10[%c0_44, %c0_45, %c0_46] : memref<1x64x32xbf16, #tpu.memory_space<vmem>>, vector<1x64x32xbf16>
      %78 = vector.shape_cast %77 : vector<1x64x32xbf16> to vector<64x32xbf16>
      %79 = vector.shape_cast %76 : vector<64x32xbf16> to vector<1x64x32xbf16>
      tpu.vector_store %arg10[%c0_44, %c0_45, %c0_46], %79 {strides = array<i32>} : memref<1x64x32xbf16, #tpu.memory_space<vmem>>, vector<1x64x32xbf16>,
    } else {
    }
    return
  }
  func.func @transform_0(%arg0: i32, %arg1: i32, %arg2: i32) -> (i32, i32, i32) {
    %c0_i32 = arith.constant 0 : i32
    %c0_i32_0 = arith.constant 0 : i32
    return %arg0, %arg1, %c0_i32 : i32, i32, i32
  }
  func.func @transform_1(%arg0: i32, %arg1: i32, %arg2: i32) -> (i32, i32, i32) {
    %c0_i32 = arith.constant 0 : i32
    %c0_i32_0 = arith.constant 0 : i32
    return %arg0, %arg1, %c0_i32 : i32, i32, i32
  }
  func.func @transform_2(%arg0: i32, %arg1: i32, %arg2: i32) -> (i32, i32, i32) {
    %c0_i32 = arith.constant 0 : i32
    %c0_i32_0 = arith.constant 0 : i32
    return %arg0, %arg2, %c0_i32 : i32, i32, i32
  }
  func.func @transform_3(%arg0: i32, %arg1: i32, %arg2: i32) -> (i32, i32) {
    %c0_i32 = arith.constant 0 : i32
    %c0_i32_0 = arith.constant 0 : i32
    %c0_i32_1 = arith.constant 0 : i32
    return %c0_i32, %c0_i32_0 : i32, i32
  }
  func.func @transform_4(%arg0: i32, %arg1: i32, %arg2: i32) -> (i32, i32) {
    %c0_i32 = arith.constant 0 : i32
    %c0_i32_0 = arith.constant 0 : i32
    %c0_i32_1 = arith.constant 0 : i32
    return %c0_i32, %c0_i32_0 : i32, i32
  }
  func.func @transform_5(%arg0: i32, %arg1: i32, %arg2: i32) -> (i32, i32) {
    %c0_i32 = arith.constant 0 : i32
    %c0_i32_0 = arith.constant 0 : i32
    %c0_i32_1 = arith.constant 0 : i32
    return %c0_i32, %c0_i32_0 : i32, i32
  }
  func.func @transform_6(%arg0: i32, %arg1: i32, %arg2: i32) -> (i32, i32) {
    %c0_i32 = arith.constant 0 : i32
    %c0_i32_0 = arith.constant 0 : i32
    %c0_i32_1 = arith.constant 0 : i32
    return %c0_i32, %c0_i32_0 : i32, i32
  }
  func.func @transform_7(%arg0: i32, %arg1: i32, %arg2: i32) -> (i32, i32, i32) {
    %c0_i32 = arith.constant 0 : i32
    %c0_i32_0 = arith.constant 0 : i32
    return %arg0, %arg1, %c0_i32 : i32, i32, i32
  }
}

module attributes {stable_mosaic.version = 11 : i64} {
  func.func @_attn_ffn_kernel(%arg0: i32, %arg1: i32, %arg2: i32, %arg3: memref<1x64x32xbf16, #tpu.memory_space<vmem>>, %arg4: memref<1x64x32xbf16, #tpu.memory_space<vmem>>, %arg5: memref<1x64x64xbf16, #tpu.memory_space<vmem>>, %arg6: memref<32x32xf32, #tpu.memory_space<vmem>>, %arg7: memref<1x32xf32, #tpu.memory_space<vmem>>, %arg8: memref<1x32xf32, #tpu.memory_space<vmem>>, %arg9: memref<1x32xf32, #tpu.memory_space<vmem>>, %arg10: memref<64x256xf32, #tpu.memory_space<vmem>>, %arg11: memref<256x32xf32, #tpu.memory_space<vmem>>, %arg12: memref<1x32xf32, #tpu.memory_space<vmem>>, %arg13: memref<1x32xf32, #tpu.memory_space<vmem>>, %arg14: memref<1x64x32xbf16, #tpu.memory_space<vmem>>, %arg15: memref<64x1xf32, #tpu.memory_space<vmem>>, %arg16: memref<64x1xf32, #tpu.memory_space<vmem>>, %arg17: memref<64x32xf32, #tpu.memory_space<vmem>>) attributes {dimension_semantics = [#tpu.dimension_semantics<parallel>, #tpu.dimension_semantics<parallel>, #tpu.dimension_semantics<arbitrary>], iteration_bounds = array<i64: 4, 1, 1>, scalar_prefetch = 0 : i64, scratch_operands = 3 : i64, tpu.core_type = #tpu.core_type<tc>, window_params = [{transform_indices = @transform_0, window_bounds = array<i64: 1, 64, 32>}, {transform_indices = @transform_1, window_bounds = array<i64: 1, 64, 32>}, {transform_indices = @transform_2, window_bounds = array<i64: 1, 64, 64>}, {pipeline_mode = #tpu.pipeline_mode<synchronous>, transform_indices = @transform_3, window_bounds = array<i64: 32, 32>}, {pipeline_mode = #tpu.pipeline_mode<synchronous>, transform_indices = @transform_4, window_bounds = array<i64: 1, 32>}, {pipeline_mode = #tpu.pipeline_mode<synchronous>, transform_indices = @transform_5, window_bounds = array<i64: 1, 32>}, {pipeline_mode = #tpu.pipeline_mode<synchronous>, transform_indices = @transform_6, window_bounds = array<i64: 1, 32>}, {pipeline_mode = #tpu.pipeline_mode<synchronous>, transform_indices = @transform_7, window_bounds = array<i64: 64, 256>}, {pipeline_mode = #tpu.pipeline_mode<synchronous>, transform_indices = @transform_8, window_bounds = array<i64: 256, 32>}, {pipeline_mode = #tpu.pipeline_mode<synchronous>, transform_indices = @transform_9, window_bounds = array<i64: 1, 32>}, {pipeline_mode = #tpu.pipeline_mode<synchronous>, transform_indices = @transform_10, window_bounds = array<i64: 1, 32>}, {transform_indices = @transform_11, window_bounds = array<i64: 1, 64, 32>}]} {
    %c0_i32 = arith.constant 0 : i32
    %0 = arith.cmpi eq, %arg2, %c0_i32 : i32
    %1 = arith.extui %0 : i1 to i32
    %c0_i32_0 = arith.constant 0 : i32
    %2 = arith.cmpi ne, %1, %c0_i32_0 : i32
    scf.if %2 {
      %cst_23 = arith.constant 0xFF800000 : f32
      %36 = vector.broadcast %cst_23 : f32 to vector<64x1xf32>
      %c0_24 = arith.constant 0 : index
      %c0_25 = arith.constant 0 : index
      %37 = vector.load %arg15[%c0_24, %c0_25] : memref<64x1xf32, #tpu.memory_space<vmem>>, vector<64x1xf32>
      tpu.vector_store %arg15[%c0_24, %c0_25], %36 {strides = array<i32>} : memref<64x1xf32, #tpu.memory_space<vmem>>, vector<64x1xf32>,
      %cst_26 = arith.constant 0.000000e+00 : f32
      %38 = vector.broadcast %cst_26 : f32 to vector<64x1xf32>
      %c0_27 = arith.constant 0 : index
      %c0_28 = arith.constant 0 : index
      %39 = vector.load %arg16[%c0_27, %c0_28] : memref<64x1xf32, #tpu.memory_space<vmem>>, vector<64x1xf32>
      tpu.vector_store %arg16[%c0_27, %c0_28], %38 {strides = array<i32>} : memref<64x1xf32, #tpu.memory_space<vmem>>, vector<64x1xf32>,
      %cst_29 = arith.constant 0.000000e+00 : f32
      %40 = vector.broadcast %cst_29 : f32 to vector<64x32xf32>
      %c0_30 = arith.constant 0 : index
      %c0_31 = arith.constant 0 : index
      %41 = vector.load %arg17[%c0_30, %c0_31] : memref<64x32xf32, #tpu.memory_space<vmem>>, vector<64x32xf32>
      tpu.vector_store %arg17[%c0_30, %c0_31], %40 {strides = array<i32>} : memref<64x32xf32, #tpu.memory_space<vmem>>, vector<64x32xf32>,
    } else {
    }
    %c0 = arith.constant 0 : index
    %c0_1 = arith.constant 0 : index
    %c0_2 = arith.constant 0 : index
    %3 = vector.load %arg4[%c0, %c0_1, %c0_2] : memref<1x64x32xbf16, #tpu.memory_space<vmem>>, vector<1x64x32xbf16>
    %4 = vector.shape_cast %3 : vector<1x64x32xbf16> to vector<64x32xbf16>
    %c0_3 = arith.constant 0 : index
    %c0_4 = arith.constant 0 : index
    %c0_5 = arith.constant 0 : index
    %5 = vector.load %arg5[%c0_3, %c0_4, %c0_5] : memref<1x64x64xbf16, #tpu.memory_space<vmem>>, vector<1x64x64xbf16>
    %6 = vector.shape_cast %5 : vector<1x64x64xbf16> to vector<64x64xbf16>
    %7 = vector.extract_strided_slice %6 {offsets = [0, 0], sizes = [64, 32], strides = [1, 1]} : vector<64x64xbf16> to vector<64x32xbf16>
    %8 = vector.extract_strided_slice %6 {offsets = [0, 32], sizes = [64, 32], strides = [1, 1]} : vector<64x64xbf16> to vector<64x32xbf16>
    %cst = arith.constant dense<0.000000e+00> : vector<64x64xf32>
    %9 = tpu.matmul %4, %7, %cst {dimension_numbers = #tpu.dot_dimension_numbers<[1], [1], [0], [0], [0, 0, 1, 0], [], []>} : vector<64x32xbf16>, vector<64x32xbf16>, vector<64x64xf32> -> vector<64x64xf32>
    %c0_6 = arith.constant 0 : index
    %c0_7 = arith.constant 0 : index
    %10 = vector.load %arg15[%c0_6, %c0_7] : memref<64x1xf32, #tpu.memory_space<vmem>>, vector<64x1xf32>
    %cst_8 = arith.constant dense<0xFF800000> : vector<64xf32>
    %11 = vector.multi_reduction <maximumf>, %9, %cst_8 [1] : vector<64x64xf32> to vector<64xf32>
    %12 = vector.shape_cast %11 : vector<64xf32> to vector<64x1xf32>
    %13 = arith.maximumf %10, %12 : vector<64x1xf32>
    %14 = arith.subf %10, %13 : vector<64x1xf32>
    %15 = math.exp %14 : vector<64x1xf32>
    %16 = vector.broadcast %13 : vector<64x1xf32> to vector<64x64xf32>
    %17 = arith.subf %9, %16 : vector<64x64xf32>
    %18 = math.exp %17 : vector<64x64xf32>
    %c0_9 = arith.constant 0 : index
    %c0_10 = arith.constant 0 : index
    %19 = vector.load %arg16[%c0_9, %c0_10] : memref<64x1xf32, #tpu.memory_space<vmem>>, vector<64x1xf32>
    %20 = arith.mulf %15, %19 : vector<64x1xf32>
    %cst_11 = arith.constant dense<0.000000e+00> : vector<64xf32>
    %21 = vector.multi_reduction <add>, %18, %cst_11 [1] : vector<64x64xf32> to vector<64xf32>
    %22 = vector.shape_cast %21 : vector<64xf32> to vector<64x1xf32>
    %23 = arith.addf %20, %22 : vector<64x1xf32>
    %c0_12 = arith.constant 0 : index
    %c0_13 = arith.constant 0 : index
    %24 = vector.load %arg16[%c0_12, %c0_13] : memref<64x1xf32, #tpu.memory_space<vmem>>, vector<64x1xf32>
    tpu.vector_store %arg16[%c0_12, %c0_13], %23 {strides = array<i32>} : memref<64x1xf32, #tpu.memory_space<vmem>>, vector<64x1xf32>,
    %c0_14 = arith.constant 0 : index
    %c0_15 = arith.constant 0 : index
    %25 = vector.load %arg17[%c0_14, %c0_15] : memref<64x32xf32, #tpu.memory_space<vmem>>, vector<64x32xf32>
    %26 = vector.broadcast %15 : vector<64x1xf32> to vector<64x32xf32>
    %27 = arith.mulf %26, %25 : vector<64x32xf32>
    %28 = arith.truncf %18 : vector<64x64xf32> to vector<64x64xbf16>
    %cst_16 = arith.constant dense<0.000000e+00> : vector<64x32xf32>
    %29 = tpu.matmul %28, %8, %cst_16 {dimension_numbers = #tpu.dot_dimension_numbers<[1], [0], [0], [1], [0, 0, 1, 1], [], []>} : vector<64x64xbf16>, vector<64x32xbf16>, vector<64x32xf32> -> vector<64x32xf32>
    %30 = arith.addf %27, %29 : vector<64x32xf32>
    %c0_17 = arith.constant 0 : index
    %c0_18 = arith.constant 0 : index
    %31 = vector.load %arg17[%c0_17, %c0_18] : memref<64x32xf32, #tpu.memory_space<vmem>>, vector<64x32xf32>
    tpu.vector_store %arg17[%c0_17, %c0_18], %30 {strides = array<i32>} : memref<64x32xf32, #tpu.memory_space<vmem>>, vector<64x32xf32>,
    %c0_19 = arith.constant 0 : index
    %c0_20 = arith.constant 0 : index
    %32 = vector.load %arg15[%c0_19, %c0_20] : memref<64x1xf32, #tpu.memory_space<vmem>>, vector<64x1xf32>
    tpu.vector_store %arg15[%c0_19, %c0_20], %13 {strides = array<i32>} : memref<64x1xf32, #tpu.memory_space<vmem>>, vector<64x1xf32>,
    %c0_i32_21 = arith.constant 0 : i32
    %33 = arith.cmpi eq, %arg2, %c0_i32_21 : i32
    %34 = arith.extui %33 : i1 to i32
    %c0_i32_22 = arith.constant 0 : i32
    %35 = arith.cmpi ne, %34, %c0_i32_22 : i32
    scf.if %35 {
      %c0_23 = arith.constant 0 : index
      %c0_24 = arith.constant 0 : index
      %36 = vector.load %arg17[%c0_23, %c0_24] : memref<64x32xf32, #tpu.memory_space<vmem>>, vector<64x32xf32>
      %c0_25 = arith.constant 0 : index
      %c0_26 = arith.constant 0 : index
      %37 = vector.load %arg16[%c0_25, %c0_26] : memref<64x1xf32, #tpu.memory_space<vmem>>, vector<64x1xf32>
      %38 = tpu.reciprocal %37 {approx = true} : vector<64x1xf32> -> vector<64x1xf32>
      %39 = vector.broadcast %38 : vector<64x1xf32> to vector<64x32xf32>
      %40 = arith.mulf %36, %39 : vector<64x32xf32>
      %c0_27 = arith.constant 0 : index
      %c0_28 = arith.constant 0 : index
      %41 = vector.load %arg6[%c0_27, %c0_28] : memref<32x32xf32, #tpu.memory_space<vmem>>, vector<32x32xf32>
      %42 = arith.truncf %40 : vector<64x32xf32> to vector<64x32xbf16>
      %43 = arith.truncf %41 : vector<32x32xf32> to vector<32x32xbf16>
      %cst_29 = arith.constant dense<0.000000e+00> : vector<64x32xf32>
      %44 = tpu.matmul %42, %43, %cst_29 {dimension_numbers = #tpu.dot_dimension_numbers<[1], [0], [0], [1], [0, 0, 1, 1], [], []>} : vector<64x32xbf16>, vector<32x32xbf16>, vector<64x32xf32> -> vector<64x32xf32>
      %c0_30 = arith.constant 0 : index
      %c0_31 = arith.constant 0 : index
      %45 = vector.load %arg7[%c0_30, %c0_31] : memref<1x32xf32, #tpu.memory_space<vmem>>, vector<1x32xf32>
      %46 = vector.broadcast %45 : vector<1x32xf32> to vector<64x32xf32>
      %47 = arith.addf %44, %46 : vector<64x32xf32>
      %c0_32 = arith.constant 0 : index
      %c0_33 = arith.constant 0 : index
      %48 = vector.load %arg8[%c0_32, %c0_33] : memref<1x32xf32, #tpu.memory_space<vmem>>, vector<1x32xf32>
      %c0_34 = arith.constant 0 : index
      %c0_35 = arith.constant 0 : index
      %49 = vector.load %arg9[%c0_34, %c0_35] : memref<1x32xf32, #tpu.memory_space<vmem>>, vector<1x32xf32>
      %cst_36 = arith.constant dense<0.000000e+00> : vector<64xf32>
      %50 = vector.multi_reduction <add>, %47, %cst_36 [1] : vector<64x32xf32> to vector<64xf32>
      %51 = vector.shape_cast %50 : vector<64xf32> to vector<64x1xf32>
      %cst_37 = arith.constant 3.200000e+01 : f32
      %52 = vector.broadcast %cst_37 : f32 to vector<64x1xf32>
      %53 = arith.divf %51, %52 : vector<64x1xf32>
      %54 = vector.broadcast %53 : vector<64x1xf32> to vector<64x32xf32>
      %55 = arith.subf %47, %54 : vector<64x32xf32>
      %56 = arith.mulf %55, %55 : vector<64x32xf32>
      %cst_38 = arith.constant dense<0.000000e+00> : vector<64xf32>
      %57 = vector.multi_reduction <add>, %56, %cst_38 [1] : vector<64x32xf32> to vector<64xf32>
      %58 = vector.shape_cast %57 : vector<64xf32> to vector<64x1xf32>
      %cst_39 = arith.constant 3.200000e+01 : f32
      %59 = vector.broadcast %cst_39 : f32 to vector<64x1xf32>
      %60 = arith.divf %58, %59 : vector<64x1xf32>
      %61 = vector.broadcast %53 : vector<64x1xf32> to vector<64x32xf32>
      %62 = arith.subf %47, %61 : vector<64x32xf32>
      %cst_40 = arith.constant 9.99999974E-6 : f32
      %63 = vector.broadcast %cst_40 : f32 to vector<64x1xf32>
      %64 = arith.addf %60, %63 : vector<64x1xf32>
      %65 = math.rsqrt %64 : vector<64x1xf32>
      %66 = vector.broadcast %65 : vector<64x1xf32> to vector<64x32xf32>
      %67 = arith.mulf %62, %66 : vector<64x32xf32>
      %68 = vector.broadcast %48 : vector<1x32xf32> to vector<64x32xf32>
      %69 = arith.mulf %67, %68 : vector<64x32xf32>
      %70 = vector.broadcast %49 : vector<1x32xf32> to vector<64x32xf32>
      %71 = arith.addf %69, %70 : vector<64x32xf32>
      %c0_41 = arith.constant 0 : index
      %c0_42 = arith.constant 0 : index
      %c0_43 = arith.constant 0 : index
      %72 = vector.load %arg3[%c0_41, %c0_42, %c0_43] : memref<1x64x32xbf16, #tpu.memory_space<vmem>>, vector<1x64x32xbf16>
      %73 = vector.shape_cast %72 : vector<1x64x32xbf16> to vector<64x32xbf16>
      %74 = arith.extf %73 : vector<64x32xbf16> to vector<64x32xf32>
      %c0_44 = arith.constant 0 : index
      %c0_45 = arith.constant 0 : index
      %75 = vector.load %arg10[%c0_44, %c0_45] : memref<64x256xf32, #tpu.memory_space<vmem>>, vector<64x256xf32>
      %76 = vector.extract_strided_slice %75 {offsets = [0, 0], sizes = [32, 256], strides = [1, 1]} : vector<64x256xf32> to vector<32x256xf32>
      %77 = arith.truncf %74 : vector<64x32xf32> to vector<64x32xbf16>
      %78 = arith.truncf %76 : vector<32x256xf32> to vector<32x256xbf16>
      %cst_46 = arith.constant dense<0.000000e+00> : vector<64x256xf32>
      %79 = tpu.matmul %77, %78, %cst_46 {dimension_numbers = #tpu.dot_dimension_numbers<[1], [0], [0], [1], [0, 0, 1, 1], [], []>} : vector<64x32xbf16>, vector<32x256xbf16>, vector<64x256xf32> -> vector<64x256xf32>
      %80 = vector.extract_strided_slice %75 {offsets = [32, 0], sizes = [32, 256], strides = [1, 1]} : vector<64x256xf32> to vector<32x256xf32>
      %81 = arith.truncf %71 : vector<64x32xf32> to vector<64x32xbf16>
      %82 = arith.truncf %80 : vector<32x256xf32> to vector<32x256xbf16>
      %cst_47 = arith.constant dense<0.000000e+00> : vector<64x256xf32>
      %83 = tpu.matmul %81, %82, %cst_47 {dimension_numbers = #tpu.dot_dimension_numbers<[1], [0], [0], [1], [0, 0, 1, 1], [], []>} : vector<64x32xbf16>, vector<32x256xbf16>, vector<64x256xf32> -> vector<64x256xf32>
      %84 = arith.addf %79, %83 : vector<64x256xf32>
      %cst_48 = arith.constant 5.000000e-01 : f32
      %85 = vector.broadcast %cst_48 : f32 to vector<64x256xf32>
      %86 = arith.mulf %85, %84 : vector<64x256xf32>
      %cst_49 = arith.constant 4.471500e-02 : f32
      %87 = vector.broadcast %cst_49 : f32 to vector<64x256xf32>
      %88 = arith.mulf %87, %84 : vector<64x256xf32>
      %89 = arith.mulf %88, %84 : vector<64x256xf32>
      %90 = arith.mulf %89, %84 : vector<64x256xf32>
      %91 = arith.addf %84, %90 : vector<64x256xf32>
      %cst_50 = arith.constant 0.797884583 : f32
      %92 = vector.broadcast %cst_50 : f32 to vector<64x256xf32>
      %93 = arith.mulf %92, %91 : vector<64x256xf32>
      %94 = math.tanh %93 : vector<64x256xf32>
      %cst_51 = arith.constant 1.000000e+00 : f32
      %95 = vector.broadcast %cst_51 : f32 to vector<64x256xf32>
      %96 = arith.addf %95, %94 : vector<64x256xf32>
      %97 = arith.mulf %86, %96 : vector<64x256xf32>
      %c0_52 = arith.constant 0 : index
      %c0_53 = arith.constant 0 : index
      %98 = vector.load %arg11[%c0_52, %c0_53] : memref<256x32xf32, #tpu.memory_space<vmem>>, vector<256x32xf32>
      %99 = arith.truncf %97 : vector<64x256xf32> to vector<64x256xbf16>
      %100 = arith.truncf %98 : vector<256x32xf32> to vector<256x32xbf16>
      %cst_54 = arith.constant dense<0.000000e+00> : vector<64x32xf32>
      %101 = tpu.matmul %99, %100, %cst_54 {dimension_numbers = #tpu.dot_dimension_numbers<[1], [0], [0], [1], [0, 0, 1, 1], [], []>} : vector<64x256xbf16>, vector<256x32xbf16>, vector<64x32xf32> -> vector<64x32xf32>
      %c0_55 = arith.constant 0 : index
      %c0_56 = arith.constant 0 : index
      %102 = vector.load %arg12[%c0_55, %c0_56] : memref<1x32xf32, #tpu.memory_space<vmem>>, vector<1x32xf32>
      %c0_57 = arith.constant 0 : index
      %c0_58 = arith.constant 0 : index
      %103 = vector.load %arg13[%c0_57, %c0_58] : memref<1x32xf32, #tpu.memory_space<vmem>>, vector<1x32xf32>
      %cst_59 = arith.constant dense<0.000000e+00> : vector<64xf32>
      %104 = vector.multi_reduction <add>, %101, %cst_59 [1] : vector<64x32xf32> to vector<64xf32>
      %105 = vector.shape_cast %104 : vector<64xf32> to vector<64x1xf32>
      %cst_60 = arith.constant 3.200000e+01 : f32
      %106 = vector.broadcast %cst_60 : f32 to vector<64x1xf32>
      %107 = arith.divf %105, %106 : vector<64x1xf32>
      %108 = vector.broadcast %107 : vector<64x1xf32> to vector<64x32xf32>
      %109 = arith.subf %101, %108 : vector<64x32xf32>
      %110 = arith.mulf %109, %109 : vector<64x32xf32>
      %cst_61 = arith.constant dense<0.000000e+00> : vector<64xf32>
      %111 = vector.multi_reduction <add>, %110, %cst_61 [1] : vector<64x32xf32> to vector<64xf32>
      %112 = vector.shape_cast %111 : vector<64xf32> to vector<64x1xf32>
      %cst_62 = arith.constant 3.200000e+01 : f32
      %113 = vector.broadcast %cst_62 : f32 to vector<64x1xf32>
      %114 = arith.divf %112, %113 : vector<64x1xf32>
      %115 = vector.broadcast %107 : vector<64x1xf32> to vector<64x32xf32>
      %116 = arith.subf %101, %115 : vector<64x32xf32>
      %cst_63 = arith.constant 9.99999974E-6 : f32
      %117 = vector.broadcast %cst_63 : f32 to vector<64x1xf32>
      %118 = arith.addf %114, %117 : vector<64x1xf32>
      %119 = math.rsqrt %118 : vector<64x1xf32>
      %120 = vector.broadcast %119 : vector<64x1xf32> to vector<64x32xf32>
      %121 = arith.mulf %116, %120 : vector<64x32xf32>
      %122 = vector.broadcast %102 : vector<1x32xf32> to vector<64x32xf32>
      %123 = arith.mulf %121, %122 : vector<64x32xf32>
      %124 = vector.broadcast %103 : vector<1x32xf32> to vector<64x32xf32>
      %125 = arith.addf %123, %124 : vector<64x32xf32>
      %126 = arith.addf %74, %125 : vector<64x32xf32>
      %127 = arith.truncf %126 : vector<64x32xf32> to vector<64x32xbf16>
      %c0_64 = arith.constant 0 : index
      %c0_65 = arith.constant 0 : index
      %c0_66 = arith.constant 0 : index
      %128 = vector.load %arg14[%c0_64, %c0_65, %c0_66] : memref<1x64x32xbf16, #tpu.memory_space<vmem>>, vector<1x64x32xbf16>
      %129 = vector.shape_cast %128 : vector<1x64x32xbf16> to vector<64x32xbf16>
      %130 = vector.shape_cast %127 : vector<64x32xbf16> to vector<1x64x32xbf16>
      tpu.vector_store %arg14[%c0_64, %c0_65, %c0_66], %130 {strides = array<i32>} : memref<1x64x32xbf16, #tpu.memory_space<vmem>>, vector<1x64x32xbf16>,
    } else {
    }
    return
  }
  func.func @transform_0(%arg0: i32, %arg1: i32, %arg2: i32) -> (i32, i32, i32) {
    %c0_i32 = arith.constant 0 : i32
    %c0_i32_0 = arith.constant 0 : i32
    return %arg0, %arg1, %c0_i32 : i32, i32, i32
  }
  func.func @transform_1(%arg0: i32, %arg1: i32, %arg2: i32) -> (i32, i32, i32) {
    %c0_i32 = arith.constant 0 : i32
    %c0_i32_0 = arith.constant 0 : i32
    return %arg0, %arg1, %c0_i32 : i32, i32, i32
  }
  func.func @transform_2(%arg0: i32, %arg1: i32, %arg2: i32) -> (i32, i32, i32) {
    %c0_i32 = arith.constant 0 : i32
    %c0_i32_0 = arith.constant 0 : i32
    return %arg0, %arg2, %c0_i32 : i32, i32, i32
  }
  func.func @transform_3(%arg0: i32, %arg1: i32, %arg2: i32) -> (i32, i32) {
    %c0_i32 = arith.constant 0 : i32
    %c0_i32_0 = arith.constant 0 : i32
    %c0_i32_1 = arith.constant 0 : i32
    return %c0_i32, %c0_i32_0 : i32, i32
  }
  func.func @transform_4(%arg0: i32, %arg1: i32, %arg2: i32) -> (i32, i32) {
    %c0_i32 = arith.constant 0 : i32
    %c0_i32_0 = arith.constant 0 : i32
    %c0_i32_1 = arith.constant 0 : i32
    return %c0_i32, %c0_i32_0 : i32, i32
  }
  func.func @transform_5(%arg0: i32, %arg1: i32, %arg2: i32) -> (i32, i32) {
    %c0_i32 = arith.constant 0 : i32
    %c0_i32_0 = arith.constant 0 : i32
    %c0_i32_1 = arith.constant 0 : i32
    return %c0_i32, %c0_i32_0 : i32, i32
  }
  func.func @transform_6(%arg0: i32, %arg1: i32, %arg2: i32) -> (i32, i32) {
    %c0_i32 = arith.constant 0 : i32
    %c0_i32_0 = arith.constant 0 : i32
    %c0_i32_1 = arith.constant 0 : i32
    return %c0_i32, %c0_i32_0 : i32, i32
  }
  func.func @transform_7(%arg0: i32, %arg1: i32, %arg2: i32) -> (i32, i32) {
    %c0_i32 = arith.constant 0 : i32
    %c0_i32_0 = arith.constant 0 : i32
    %c0_i32_1 = arith.constant 0 : i32
    return %c0_i32, %c0_i32_0 : i32, i32
  }
  func.func @transform_8(%arg0: i32, %arg1: i32, %arg2: i32) -> (i32, i32) {
    %c0_i32 = arith.constant 0 : i32
    %c0_i32_0 = arith.constant 0 : i32
    %c0_i32_1 = arith.constant 0 : i32
    return %c0_i32, %c0_i32_0 : i32, i32
  }
  func.func @transform_9(%arg0: i32, %arg1: i32, %arg2: i32) -> (i32, i32) {
    %c0_i32 = arith.constant 0 : i32
    %c0_i32_0 = arith.constant 0 : i32
    %c0_i32_1 = arith.constant 0 : i32
    return %c0_i32, %c0_i32_0 : i32, i32
  }
  func.func @transform_10(%arg0: i32, %arg1: i32, %arg2: i32) -> (i32, i32) {
    %c0_i32 = arith.constant 0 : i32
    %c0_i32_0 = arith.constant 0 : i32
    %c0_i32_1 = arith.constant 0 : i32
    return %c0_i32, %c0_i32_0 : i32, i32
  }
  func.func @transform_11(%arg0: i32, %arg1: i32, %arg2: i32) -> (i32, i32, i32) {
    %c0_i32 = arith.constant 0 : i32
    %c0_i32_0 = arith.constant 0 : i32
    return %arg0, %arg1, %c0_i32 : i32, i32, i32
  }
}

module attributes {stable_mosaic.version = 11 : i64} {
  func.func @_global_corr_kernel(%arg0: i32, %arg1: i32, %arg2: i32, %arg3: memref<1x64x32xbf16, #tpu.memory_space<vmem>>, %arg4: memref<1x64x32xbf16, #tpu.memory_space<vmem>>, %arg5: memref<1x3x64xf32, #tpu.memory_space<vmem>>, %arg6: memref<1x3x64xf32, #tpu.memory_space<vmem>>, %arg7: memref<1x3x64xf32, #tpu.memory_space<vmem>>, %arg8: memref<1x64xf32, #tpu.memory_space<vmem>>, %arg9: memref<1x64xf32, #tpu.memory_space<vmem>>, %arg10: memref<3x64xf32, #tpu.memory_space<vmem>>, %arg11: memref<64x32xbf16, #tpu.memory_space<vmem>>) attributes {dimension_semantics = [#tpu.dimension_semantics<parallel>, #tpu.dimension_semantics<parallel>, #tpu.dimension_semantics<arbitrary>], iteration_bounds = array<i64: 2, 1, 1>, scalar_prefetch = 0 : i64, scratch_operands = 4 : i64, tpu.core_type = #tpu.core_type<tc>, window_params = [{transform_indices = @transform_0, window_bounds = array<i64: 1, 64, 32>}, {transform_indices = @transform_1, window_bounds = array<i64: 1, 64, 32>}, {transform_indices = @transform_2, window_bounds = array<i64: 1, 3, 64>}, {transform_indices = @transform_3, window_bounds = array<i64: 1, 3, 64>}, {transform_indices = @transform_4, window_bounds = array<i64: 1, 3, 64>}]} {
    %c0_i32 = arith.constant 0 : i32
    %0 = arith.cmpi eq, %arg2, %c0_i32 : i32
    %1 = arith.extui %0 : i1 to i32
    %c0_i32_0 = arith.constant 0 : i32
    %2 = arith.cmpi ne, %1, %c0_i32_0 : i32
    scf.if %2 {
      %cst_25 = arith.constant 0xFF800000 : f32
      %34 = vector.broadcast %cst_25 : f32 to vector<1x64xf32>
      %c0_26 = arith.constant 0 : index
      %c0_27 = arith.constant 0 : index
      %35 = vector.load %arg8[%c0_26, %c0_27] : memref<1x64xf32, #tpu.memory_space<vmem>>, vector<1x64xf32>
      tpu.vector_store %arg8[%c0_26, %c0_27], %34 {strides = array<i32>} : memref<1x64xf32, #tpu.memory_space<vmem>>, vector<1x64xf32>,
      %cst_28 = arith.constant 0.000000e+00 : f32
      %36 = vector.broadcast %cst_28 : f32 to vector<1x64xf32>
      %c0_29 = arith.constant 0 : index
      %c0_30 = arith.constant 0 : index
      %37 = vector.load %arg9[%c0_29, %c0_30] : memref<1x64xf32, #tpu.memory_space<vmem>>, vector<1x64xf32>
      tpu.vector_store %arg9[%c0_29, %c0_30], %36 {strides = array<i32>} : memref<1x64xf32, #tpu.memory_space<vmem>>, vector<1x64xf32>,
      %cst_31 = arith.constant 0.000000e+00 : f32
      %38 = vector.broadcast %cst_31 : f32 to vector<3x64xf32>
      %c0_32 = arith.constant 0 : index
      %c0_33 = arith.constant 0 : index
      %39 = vector.load %arg10[%c0_32, %c0_33] : memref<3x64xf32, #tpu.memory_space<vmem>>, vector<3x64xf32>
      tpu.vector_store %arg10[%c0_32, %c0_33], %38 {strides = array<i32>} : memref<3x64xf32, #tpu.memory_space<vmem>>, vector<3x64xf32>,
      %c0_34 = arith.constant 0 : index
      %c0_35 = arith.constant 0 : index
      %c0_36 = arith.constant 0 : index
      %40 = vector.load %arg3[%c0_34, %c0_35, %c0_36] : memref<1x64x32xbf16, #tpu.memory_space<vmem>>, vector<1x64x32xbf16>
      %41 = vector.shape_cast %40 : vector<1x64x32xbf16> to vector<64x32xbf16>
      %42 = arith.extf %41 : vector<64x32xbf16> to vector<64x32xf32>
      %cst_37 = arith.constant 0.176776692 : f32
      %43 = vector.broadcast %cst_37 : f32 to vector<64x32xf32>
      %44 = arith.mulf %42, %43 : vector<64x32xf32>
      %45 = arith.truncf %44 : vector<64x32xf32> to vector<64x32xbf16>
      %c0_38 = arith.constant 0 : index
      %c0_39 = arith.constant 0 : index
      %46 = vector.load %arg11[%c0_38, %c0_39] : memref<64x32xbf16, #tpu.memory_space<vmem>>, vector<64x32xbf16>
      tpu.vector_store %arg11[%c0_38, %c0_39], %45 {strides = array<i32>} : memref<64x32xbf16, #tpu.memory_space<vmem>>, vector<64x32xbf16>,
    } else {
    }
    %c0 = arith.constant 0 : index
    %c0_1 = arith.constant 0 : index
    %c0_2 = arith.constant 0 : index
    %3 = vector.load %arg4[%c0, %c0_1, %c0_2] : memref<1x64x32xbf16, #tpu.memory_space<vmem>>, vector<1x64x32xbf16>
    %4 = vector.shape_cast %3 : vector<1x64x32xbf16> to vector<64x32xbf16>
    %c0_3 = arith.constant 0 : index
    %c0_4 = arith.constant 0 : index
    %5 = vector.load %arg11[%c0_3, %c0_4] : memref<64x32xbf16, #tpu.memory_space<vmem>>, vector<64x32xbf16>
    %cst = arith.constant dense<0.000000e+00> : vector<64x64xf32>
    %6 = tpu.matmul %4, %5, %cst {dimension_numbers = #tpu.dot_dimension_numbers<[1], [1], [0], [0], [0, 0, 1, 0], [], []>} : vector<64x32xbf16>, vector<64x32xbf16>, vector<64x64xf32> -> vector<64x64xf32>
    %c0_5 = arith.constant 0 : index
    %c0_6 = arith.constant 0 : index
    %7 = vector.load %arg8[%c0_5, %c0_6] : memref<1x64xf32, #tpu.memory_space<vmem>>, vector<1x64xf32>
    %cst_7 = arith.constant dense<0xFF800000> : vector<64xf32>
    %8 = vector.multi_reduction <maximumf>, %6, %cst_7 [0] : vector<64x64xf32> to vector<64xf32>
    %9 = vector.shape_cast %8 : vector<64xf32> to vector<1x64xf32>
    %10 = arith.maximumf %7, %9 : vector<1x64xf32>
    %11 = arith.subf %7, %10 : vector<1x64xf32>
    %12 = math.exp %11 : vector<1x64xf32>
    %13 = vector.broadcast %10 : vector<1x64xf32> to vector<64x64xf32>
    %14 = arith.subf %6, %13 : vector<64x64xf32>
    %15 = math.exp %14 : vector<64x64xf32>
    %c0_8 = arith.constant 0 : index
    %c0_9 = arith.constant 0 : index
    %16 = vector.load %arg9[%c0_8, %c0_9] : memref<1x64xf32, #tpu.memory_space<vmem>>, vector<1x64xf32>
    %17 = arith.mulf %12, %16 : vector<1x64xf32>
    %cst_10 = arith.constant dense<0.000000e+00> : vector<64xf32>
    %18 = vector.multi_reduction <add>, %15, %cst_10 [0] : vector<64x64xf32> to vector<64xf32>
    %19 = vector.shape_cast %18 : vector<64xf32> to vector<1x64xf32>
    %20 = arith.addf %17, %19 : vector<1x64xf32>
    %c0_11 = arith.constant 0 : index
    %c0_12 = arith.constant 0 : index
    %21 = vector.load %arg9[%c0_11, %c0_12] : memref<1x64xf32, #tpu.memory_space<vmem>>, vector<1x64xf32>
    tpu.vector_store %arg9[%c0_11, %c0_12], %20 {strides = array<i32>} : memref<1x64xf32, #tpu.memory_space<vmem>>, vector<1x64xf32>,
    %c0_13 = arith.constant 0 : index
    %c0_14 = arith.constant 0 : index
    %22 = vector.load %arg10[%c0_13, %c0_14] : memref<3x64xf32, #tpu.memory_space<vmem>>, vector<3x64xf32>
    %23 = vector.broadcast %12 : vector<1x64xf32> to vector<3x64xf32>
    %24 = arith.mulf %23, %22 : vector<3x64xf32>
    %c0_15 = arith.constant 0 : index
    %c0_16 = arith.constant 0 : index
    %c0_17 = arith.constant 0 : index
    %25 = vector.load %arg5[%c0_15, %c0_16, %c0_17] : memref<1x3x64xf32, #tpu.memory_space<vmem>>, vector<1x3x64xf32>
    %26 = vector.shape_cast %25 : vector<1x3x64xf32> to vector<3x64xf32>
    %cst_18 = arith.constant dense<0.000000e+00> : vector<3x64xf32>
    %27 = tpu.matmul %26, %15, %cst_18 {dimension_numbers = #tpu.dot_dimension_numbers<[1], [0], [0], [1], [0, 0, 1, 1], [], []>} : vector<3x64xf32>, vector<64x64xf32>, vector<3x64xf32> -> vector<3x64xf32>
    %28 = arith.addf %24, %27 : vector<3x64xf32>
    %c0_19 = arith.constant 0 : index
    %c0_20 = arith.constant 0 : index
    %29 = vector.load %arg10[%c0_19, %c0_20] : memref<3x64xf32, #tpu.memory_space<vmem>>, vector<3x64xf32>
    tpu.vector_store %arg10[%c0_19, %c0_20], %28 {strides = array<i32>} : memref<3x64xf32, #tpu.memory_space<vmem>>, vector<3x64xf32>,
    %c0_21 = arith.constant 0 : index
    %c0_22 = arith.constant 0 : index
    %30 = vector.load %arg8[%c0_21, %c0_22] : memref<1x64xf32, #tpu.memory_space<vmem>>, vector<1x64xf32>
    tpu.vector_store %arg8[%c0_21, %c0_22], %10 {strides = array<i32>} : memref<1x64xf32, #tpu.memory_space<vmem>>, vector<1x64xf32>,
    %c0_i32_23 = arith.constant 0 : i32
    %31 = arith.cmpi eq, %arg2, %c0_i32_23 : i32
    %32 = arith.extui %31 : i1 to i32
    %c0_i32_24 = arith.constant 0 : i32
    %33 = arith.cmpi ne, %32, %c0_i32_24 : i32
    scf.if %33 {
      %c0_25 = arith.constant 0 : index
      %c0_26 = arith.constant 0 : index
      %34 = vector.load %arg10[%c0_25, %c0_26] : memref<3x64xf32, #tpu.memory_space<vmem>>, vector<3x64xf32>
      %c0_27 = arith.constant 0 : index
      %c0_28 = arith.constant 0 : index
      %35 = vector.load %arg9[%c0_27, %c0_28] : memref<1x64xf32, #tpu.memory_space<vmem>>, vector<1x64xf32>
      %36 = vector.broadcast %35 : vector<1x64xf32> to vector<3x64xf32>
      %37 = arith.divf %34, %36 : vector<3x64xf32>
      %c0_29 = arith.constant 0 : index
      %c0_30 = arith.constant 0 : index
      %c0_31 = arith.constant 0 : index
      %38 = vector.load %arg6[%c0_29, %c0_30, %c0_31] : memref<1x3x64xf32, #tpu.memory_space<vmem>>, vector<1x3x64xf32>
      %39 = vector.shape_cast %38 : vector<1x3x64xf32> to vector<3x64xf32>
      %40 = arith.subf %37, %39 : vector<3x64xf32>
      %c0_32 = arith.constant 0 : index
      %c0_33 = arith.constant 0 : index
      %c0_34 = arith.constant 0 : index
      %41 = vector.load %arg7[%c0_32, %c0_33, %c0_34] : memref<1x3x64xf32, #tpu.memory_space<vmem>>, vector<1x3x64xf32>
      %42 = vector.shape_cast %41 : vector<1x3x64xf32> to vector<3x64xf32>
      %43 = vector.shape_cast %40 : vector<3x64xf32> to vector<1x3x64xf32>
      tpu.vector_store %arg7[%c0_32, %c0_33, %c0_34], %43 {strides = array<i32>} : memref<1x3x64xf32, #tpu.memory_space<vmem>>, vector<1x3x64xf32>,
    } else {
    }
    return
  }
  func.func @transform_0(%arg0: i32, %arg1: i32, %arg2: i32) -> (i32, i32, i32) {
    %c0_i32 = arith.constant 0 : i32
    %c0_i32_0 = arith.constant 0 : i32
    return %arg0, %arg1, %c0_i32 : i32, i32, i32
  }
  func.func @transform_1(%arg0: i32, %arg1: i32, %arg2: i32) -> (i32, i32, i32) {
    %c0_i32 = arith.constant 0 : i32
    %c0_i32_0 = arith.constant 0 : i32
    return %arg0, %arg2, %c0_i32 : i32, i32, i32
  }
  func.func @transform_2(%arg0: i32, %arg1: i32, %arg2: i32) -> (i32, i32, i32) {
    %c0_i32 = arith.constant 0 : i32
    %c0_i32_0 = arith.constant 0 : i32
    return %arg0, %c0_i32, %arg2 : i32, i32, i32
  }
  func.func @transform_3(%arg0: i32, %arg1: i32, %arg2: i32) -> (i32, i32, i32) {
    %c0_i32 = arith.constant 0 : i32
    %c0_i32_0 = arith.constant 0 : i32
    return %arg0, %c0_i32, %arg1 : i32, i32, i32
  }
  func.func @transform_4(%arg0: i32, %arg1: i32, %arg2: i32) -> (i32, i32, i32) {
    %c0_i32 = arith.constant 0 : i32
    %c0_i32_0 = arith.constant 0 : i32
    return %arg0, %c0_i32, %arg1 : i32, i32, i32
  }
}

module attributes {stable_mosaic.version = 11 : i64} {
  func.func @_self_corr_kernel(%arg0: i32, %arg1: i32, %arg2: i32, %arg3: memref<1x64x32xbf16, #tpu.memory_space<vmem>>, %arg4: memref<1x64x32xbf16, #tpu.memory_space<vmem>>, %arg5: memref<1x3x64xf32, #tpu.memory_space<vmem>>, %arg6: memref<32x32xf32, #tpu.memory_space<vmem>>, %arg7: memref<1x32xf32, #tpu.memory_space<vmem>>, %arg8: memref<32x32xf32, #tpu.memory_space<vmem>>, %arg9: memref<1x32xf32, #tpu.memory_space<vmem>>, %arg10: memref<1x3x64xf32, #tpu.memory_space<vmem>>, %arg11: memref<1x64xf32, #tpu.memory_space<vmem>>, %arg12: memref<1x64xf32, #tpu.memory_space<vmem>>, %arg13: memref<3x64xf32, #tpu.memory_space<vmem>>, %arg14: memref<64x32xbf16, #tpu.memory_space<vmem>>) attributes {dimension_semantics = [#tpu.dimension_semantics<parallel>, #tpu.dimension_semantics<parallel>, #tpu.dimension_semantics<arbitrary>], iteration_bounds = array<i64: 2, 1, 1>, scalar_prefetch = 0 : i64, scratch_operands = 4 : i64, tpu.core_type = #tpu.core_type<tc>, window_params = [{transform_indices = @transform_0, window_bounds = array<i64: 1, 64, 32>}, {transform_indices = @transform_1, window_bounds = array<i64: 1, 64, 32>}, {transform_indices = @transform_2, window_bounds = array<i64: 1, 3, 64>}, {pipeline_mode = #tpu.pipeline_mode<synchronous>, transform_indices = @transform_3, window_bounds = array<i64: 32, 32>}, {pipeline_mode = #tpu.pipeline_mode<synchronous>, transform_indices = @transform_4, window_bounds = array<i64: 1, 32>}, {pipeline_mode = #tpu.pipeline_mode<synchronous>, transform_indices = @transform_5, window_bounds = array<i64: 32, 32>}, {pipeline_mode = #tpu.pipeline_mode<synchronous>, transform_indices = @transform_6, window_bounds = array<i64: 1, 32>}, {transform_indices = @transform_7, window_bounds = array<i64: 1, 3, 64>}]} {
    %c0_i32 = arith.constant 0 : i32
    %0 = arith.cmpi eq, %arg2, %c0_i32 : i32
    %1 = arith.extui %0 : i1 to i32
    %c0_i32_0 = arith.constant 0 : i32
    %2 = arith.cmpi ne, %1, %c0_i32_0 : i32
    scf.if %2 {
      %cst_30 = arith.constant 0xFF800000 : f32
      %41 = vector.broadcast %cst_30 : f32 to vector<1x64xf32>
      %c0_31 = arith.constant 0 : index
      %c0_32 = arith.constant 0 : index
      %42 = vector.load %arg11[%c0_31, %c0_32] : memref<1x64xf32, #tpu.memory_space<vmem>>, vector<1x64xf32>
      tpu.vector_store %arg11[%c0_31, %c0_32], %41 {strides = array<i32>} : memref<1x64xf32, #tpu.memory_space<vmem>>, vector<1x64xf32>,
      %cst_33 = arith.constant 0.000000e+00 : f32
      %43 = vector.broadcast %cst_33 : f32 to vector<1x64xf32>
      %c0_34 = arith.constant 0 : index
      %c0_35 = arith.constant 0 : index
      %44 = vector.load %arg12[%c0_34, %c0_35] : memref<1x64xf32, #tpu.memory_space<vmem>>, vector<1x64xf32>
      tpu.vector_store %arg12[%c0_34, %c0_35], %43 {strides = array<i32>} : memref<1x64xf32, #tpu.memory_space<vmem>>, vector<1x64xf32>,
      %cst_36 = arith.constant 0.000000e+00 : f32
      %45 = vector.broadcast %cst_36 : f32 to vector<3x64xf32>
      %c0_37 = arith.constant 0 : index
      %c0_38 = arith.constant 0 : index
      %46 = vector.load %arg13[%c0_37, %c0_38] : memref<3x64xf32, #tpu.memory_space<vmem>>, vector<3x64xf32>
      tpu.vector_store %arg13[%c0_37, %c0_38], %45 {strides = array<i32>} : memref<3x64xf32, #tpu.memory_space<vmem>>, vector<3x64xf32>,
      %c0_39 = arith.constant 0 : index
      %c0_40 = arith.constant 0 : index
      %c0_41 = arith.constant 0 : index
      %47 = vector.load %arg3[%c0_39, %c0_40, %c0_41] : memref<1x64x32xbf16, #tpu.memory_space<vmem>>, vector<1x64x32xbf16>
      %48 = vector.shape_cast %47 : vector<1x64x32xbf16> to vector<64x32xbf16>
      %c0_42 = arith.constant 0 : index
      %c0_43 = arith.constant 0 : index
      %49 = vector.load %arg6[%c0_42, %c0_43] : memref<32x32xf32, #tpu.memory_space<vmem>>, vector<32x32xf32>
      %50 = arith.truncf %49 : vector<32x32xf32> to vector<32x32xbf16>
      %cst_44 = arith.constant dense<0.000000e+00> : vector<64x32xf32>
      %51 = tpu.matmul %48, %50, %cst_44 {dimension_numbers = #tpu.dot_dimension_numbers<[1], [0], [0], [1], [0, 0, 1, 1], [], []>} : vector<64x32xbf16>, vector<32x32xbf16>, vector<64x32xf32> -> vector<64x32xf32>
      %c0_45 = arith.constant 0 : index
      %c0_46 = arith.constant 0 : index
      %52 = vector.load %arg7[%c0_45, %c0_46] : memref<1x32xf32, #tpu.memory_space<vmem>>, vector<1x32xf32>
      %53 = vector.broadcast %52 : vector<1x32xf32> to vector<64x32xf32>
      %54 = arith.addf %51, %53 : vector<64x32xf32>
      %cst_47 = arith.constant 0.176776692 : f32
      %55 = vector.broadcast %cst_47 : f32 to vector<64x32xf32>
      %56 = arith.mulf %54, %55 : vector<64x32xf32>
      %57 = arith.truncf %56 : vector<64x32xf32> to vector<64x32xbf16>
      %c0_48 = arith.constant 0 : index
      %c0_49 = arith.constant 0 : index
      %58 = vector.load %arg14[%c0_48, %c0_49] : memref<64x32xbf16, #tpu.memory_space<vmem>>, vector<64x32xbf16>
      tpu.vector_store %arg14[%c0_48, %c0_49], %57 {strides = array<i32>} : memref<64x32xbf16, #tpu.memory_space<vmem>>, vector<64x32xbf16>,
    } else {
    }
    %c0 = arith.constant 0 : index
    %c0_1 = arith.constant 0 : index
    %c0_2 = arith.constant 0 : index
    %3 = vector.load %arg4[%c0, %c0_1, %c0_2] : memref<1x64x32xbf16, #tpu.memory_space<vmem>>, vector<1x64x32xbf16>
    %4 = vector.shape_cast %3 : vector<1x64x32xbf16> to vector<64x32xbf16>
    %c0_3 = arith.constant 0 : index
    %c0_4 = arith.constant 0 : index
    %5 = vector.load %arg8[%c0_3, %c0_4] : memref<32x32xf32, #tpu.memory_space<vmem>>, vector<32x32xf32>
    %6 = arith.truncf %5 : vector<32x32xf32> to vector<32x32xbf16>
    %cst = arith.constant dense<0.000000e+00> : vector<64x32xf32>
    %7 = tpu.matmul %4, %6, %cst {dimension_numbers = #tpu.dot_dimension_numbers<[1], [0], [0], [1], [0, 0, 1, 1], [], []>} : vector<64x32xbf16>, vector<32x32xbf16>, vector<64x32xf32> -> vector<64x32xf32>
    %c0_5 = arith.constant 0 : index
    %c0_6 = arith.constant 0 : index
    %8 = vector.load %arg9[%c0_5, %c0_6] : memref<1x32xf32, #tpu.memory_space<vmem>>, vector<1x32xf32>
    %9 = vector.broadcast %8 : vector<1x32xf32> to vector<64x32xf32>
    %10 = arith.addf %7, %9 : vector<64x32xf32>
    %11 = arith.truncf %10 : vector<64x32xf32> to vector<64x32xbf16>
    %c0_7 = arith.constant 0 : index
    %c0_8 = arith.constant 0 : index
    %12 = vector.load %arg14[%c0_7, %c0_8] : memref<64x32xbf16, #tpu.memory_space<vmem>>, vector<64x32xbf16>
    %cst_9 = arith.constant dense<0.000000e+00> : vector<64x64xf32>
    %13 = tpu.matmul %11, %12, %cst_9 {dimension_numbers = #tpu.dot_dimension_numbers<[1], [1], [0], [0], [0, 0, 1, 0], [], []>} : vector<64x32xbf16>, vector<64x32xbf16>, vector<64x64xf32> -> vector<64x64xf32>
    %c0_10 = arith.constant 0 : index
    %c0_11 = arith.constant 0 : index
    %14 = vector.load %arg11[%c0_10, %c0_11] : memref<1x64xf32, #tpu.memory_space<vmem>>, vector<1x64xf32>
    %cst_12 = arith.constant dense<0xFF800000> : vector<64xf32>
    %15 = vector.multi_reduction <maximumf>, %13, %cst_12 [0] : vector<64x64xf32> to vector<64xf32>
    %16 = vector.shape_cast %15 : vector<64xf32> to vector<1x64xf32>
    %17 = arith.maximumf %14, %16 : vector<1x64xf32>
    %18 = arith.subf %14, %17 : vector<1x64xf32>
    %19 = math.exp %18 : vector<1x64xf32>
    %20 = vector.broadcast %17 : vector<1x64xf32> to vector<64x64xf32>
    %21 = arith.subf %13, %20 : vector<64x64xf32>
    %22 = math.exp %21 : vector<64x64xf32>
    %c0_13 = arith.constant 0 : index
    %c0_14 = arith.constant 0 : index
    %23 = vector.load %arg12[%c0_13, %c0_14] : memref<1x64xf32, #tpu.memory_space<vmem>>, vector<1x64xf32>
    %24 = arith.mulf %19, %23 : vector<1x64xf32>
    %cst_15 = arith.constant dense<0.000000e+00> : vector<64xf32>
    %25 = vector.multi_reduction <add>, %22, %cst_15 [0] : vector<64x64xf32> to vector<64xf32>
    %26 = vector.shape_cast %25 : vector<64xf32> to vector<1x64xf32>
    %27 = arith.addf %24, %26 : vector<1x64xf32>
    %c0_16 = arith.constant 0 : index
    %c0_17 = arith.constant 0 : index
    %28 = vector.load %arg12[%c0_16, %c0_17] : memref<1x64xf32, #tpu.memory_space<vmem>>, vector<1x64xf32>
    tpu.vector_store %arg12[%c0_16, %c0_17], %27 {strides = array<i32>} : memref<1x64xf32, #tpu.memory_space<vmem>>, vector<1x64xf32>,
    %c0_18 = arith.constant 0 : index
    %c0_19 = arith.constant 0 : index
    %29 = vector.load %arg13[%c0_18, %c0_19] : memref<3x64xf32, #tpu.memory_space<vmem>>, vector<3x64xf32>
    %30 = vector.broadcast %19 : vector<1x64xf32> to vector<3x64xf32>
    %31 = arith.mulf %30, %29 : vector<3x64xf32>
    %c0_20 = arith.constant 0 : index
    %c0_21 = arith.constant 0 : index
    %c0_22 = arith.constant 0 : index
    %32 = vector.load %arg5[%c0_20, %c0_21, %c0_22] : memref<1x3x64xf32, #tpu.memory_space<vmem>>, vector<1x3x64xf32>
    %33 = vector.shape_cast %32 : vector<1x3x64xf32> to vector<3x64xf32>
    %cst_23 = arith.constant dense<0.000000e+00> : vector<3x64xf32>
    %34 = tpu.matmul %33, %22, %cst_23 {dimension_numbers = #tpu.dot_dimension_numbers<[1], [0], [0], [1], [0, 0, 1, 1], [], []>} : vector<3x64xf32>, vector<64x64xf32>, vector<3x64xf32> -> vector<3x64xf32>
    %35 = arith.addf %31, %34 : vector<3x64xf32>
    %c0_24 = arith.constant 0 : index
    %c0_25 = arith.constant 0 : index
    %36 = vector.load %arg13[%c0_24, %c0_25] : memref<3x64xf32, #tpu.memory_space<vmem>>, vector<3x64xf32>
    tpu.vector_store %arg13[%c0_24, %c0_25], %35 {strides = array<i32>} : memref<3x64xf32, #tpu.memory_space<vmem>>, vector<3x64xf32>,
    %c0_26 = arith.constant 0 : index
    %c0_27 = arith.constant 0 : index
    %37 = vector.load %arg11[%c0_26, %c0_27] : memref<1x64xf32, #tpu.memory_space<vmem>>, vector<1x64xf32>
    tpu.vector_store %arg11[%c0_26, %c0_27], %17 {strides = array<i32>} : memref<1x64xf32, #tpu.memory_space<vmem>>, vector<1x64xf32>,
    %c0_i32_28 = arith.constant 0 : i32
    %38 = arith.cmpi eq, %arg2, %c0_i32_28 : i32
    %39 = arith.extui %38 : i1 to i32
    %c0_i32_29 = arith.constant 0 : i32
    %40 = arith.cmpi ne, %39, %c0_i32_29 : i32
    scf.if %40 {
      %c0_30 = arith.constant 0 : index
      %c0_31 = arith.constant 0 : index
      %41 = vector.load %arg13[%c0_30, %c0_31] : memref<3x64xf32, #tpu.memory_space<vmem>>, vector<3x64xf32>
      %c0_32 = arith.constant 0 : index
      %c0_33 = arith.constant 0 : index
      %42 = vector.load %arg12[%c0_32, %c0_33] : memref<1x64xf32, #tpu.memory_space<vmem>>, vector<1x64xf32>
      %43 = vector.broadcast %42 : vector<1x64xf32> to vector<3x64xf32>
      %44 = arith.divf %41, %43 : vector<3x64xf32>
      %c0_34 = arith.constant 0 : index
      %c0_35 = arith.constant 0 : index
      %c0_36 = arith.constant 0 : index
      %45 = vector.load %arg10[%c0_34, %c0_35, %c0_36] : memref<1x3x64xf32, #tpu.memory_space<vmem>>, vector<1x3x64xf32>
      %46 = vector.shape_cast %45 : vector<1x3x64xf32> to vector<3x64xf32>
      %47 = vector.shape_cast %44 : vector<3x64xf32> to vector<1x3x64xf32>
      tpu.vector_store %arg10[%c0_34, %c0_35, %c0_36], %47 {strides = array<i32>} : memref<1x3x64xf32, #tpu.memory_space<vmem>>, vector<1x3x64xf32>,
    } else {
    }
    return
  }
  func.func @transform_0(%arg0: i32, %arg1: i32, %arg2: i32) -> (i32, i32, i32) {
    %c0_i32 = arith.constant 0 : i32
    %c0_i32_0 = arith.constant 0 : i32
    return %arg0, %arg1, %c0_i32 : i32, i32, i32
  }
  func.func @transform_1(%arg0: i32, %arg1: i32, %arg2: i32) -> (i32, i32, i32) {
    %c0_i32 = arith.constant 0 : i32
    %c0_i32_0 = arith.constant 0 : i32
    return %arg0, %arg2, %c0_i32 : i32, i32, i32
  }
  func.func @transform_2(%arg0: i32, %arg1: i32, %arg2: i32) -> (i32, i32, i32) {
    %c0_i32 = arith.constant 0 : i32
    %c0_i32_0 = arith.constant 0 : i32
    return %arg0, %c0_i32, %arg2 : i32, i32, i32
  }
  func.func @transform_3(%arg0: i32, %arg1: i32, %arg2: i32) -> (i32, i32) {
    %c0_i32 = arith.constant 0 : i32
    %c0_i32_0 = arith.constant 0 : i32
    %c0_i32_1 = arith.constant 0 : i32
    return %c0_i32, %c0_i32_0 : i32, i32
  }
  func.func @transform_4(%arg0: i32, %arg1: i32, %arg2: i32) -> (i32, i32) {
    %c0_i32 = arith.constant 0 : i32
    %c0_i32_0 = arith.constant 0 : i32
    %c0_i32_1 = arith.constant 0 : i32
    return %c0_i32, %c0_i32_0 : i32, i32
  }
  func.func @transform_5(%arg0: i32, %arg1: i32, %arg2: i32) -> (i32, i32) {
    %c0_i32 = arith.constant 0 : i32
    %c0_i32_0 = arith.constant 0 : i32
    %c0_i32_1 = arith.constant 0 : i32
    return %c0_i32, %c0_i32_0 : i32, i32
  }
  func.func @transform_6(%arg0: i32, %arg1: i32, %arg2: i32) -> (i32, i32) {
    %c0_i32 = arith.constant 0 : i32
    %c0_i32_0 = arith.constant 0 : i32
    %c0_i32_1 = arith.constant 0 : i32
    return %c0_i32, %c0_i32_0 : i32, i32
  }
  func.func @transform_7(%arg0: i32, %arg1: i32, %arg2: i32) -> (i32, i32, i32) {
    %c0_i32 = arith.constant 0 : i32
    %c0_i32_0 = arith.constant 0 : i32
    return %arg0, %c0_i32, %arg1 : i32, i32, i32
  }
}

</mosaic_0001>

<bundles_post_ra>
// kernel: gmsf_forward.11
= control target key start
LH: loop header
LB: loop body
LE: loop exit
PB: predicated region body
PF: predicated region fallthrough
CT: control target
= control target key end

     0   :  { %s806_s18 = smov 0   ;;  %s808_s19 = smov 0   ;;  %s919_s0 = inlined_call_operand.vmem [shape: f32[4,64,3], index: 0, kind: input, shape index: {}]   ;;  %s920_s1 = inlined_call_operand.vmem [shape: f32[3,64], index: 1, kind: input, shape index: {}]   ;;  %s921_s2 = inlined_call_operand.vmem [shape: f32[1,64], index: 2, kind: input, shape index: {}]   ;;  %s922_s3 = inlined_call_operand.vmem [shape: f32[64,32], index: 3, kind: input, shape index: {}]   ;;  %s923_s4 = inlined_call_operand.vmem [shape: f32[1,32], index: 4, kind: input, shape index: {}]   ;;  %s924_s5 = inlined_call_operand.vmem [shape: f32[4,64,32], index: 5, kind: output, shape index: {}]  }
   0x1   :  { %s810_s20 = smov 0  }
   0x2 LB: > { %s27_s21 = sadd.s32 1, %s769_s19  ;;  %p644_p0 = scmp.ge.s32.totalorder %s773_s20, 1  ;;  %s773_s20 = sphi %s810_s20, %s15_s20   ;;  %s769_s19 = sphi %s808_s19, %s926_s19   ;;  %s765_s18 = sphi %s806_s18, %s925_s18  }
   0x3   : > { %p29_p1 = scmp.ge.s32.totalorder %s27_s21, 4  ;;  %p208_p2 = scmp.lt.s32.totalorder %s773_s20, 5 }
   0x5   : > { %s928_s21 = smov (%p29_p1, %s27_s21), 0  ;;  %p209_p3 = pnand %p644_p0, %p208_p2 }
   0x6   : > { %p245_p4 = scmp.lt.s32.totalorder (!%p209_p3), %s765_s18, 3 }
   0x7   : > { %212 = sbr.rel (%p209_p3) target bundleno = 463 (0x1cf), region = 40 }
   0xc   : > { %v273_v0 = vld [vmem:[%s920_s1] sm:$0x7]  ;;  %vm299_vm0 = vcmask 1040384   ;;  %vm300_vm1 = vcmask 1041408   ;;  %v775_v2 = vmov 65535   ;;  %s930_s18 = smov (!%p245_p4, %s765_s18), 3 }
   0xd   : > { %v278_v1 = vpack.c.bf16 %v273_v0, %v273_v0  ;;  %v301_v3 = vsel %vm299_vm0, 4294967295, %v775_v2  ;;  %s661_s24 = sshll.u32 %s930_s18, 6  ;;  %vm286_vm2 = vcmask 23552   ;;  %v449_v18 = vld [vmem:[%s922_s3 + $0x30] sm:$0xff]  ;;  %v450_v19 = vld [vmem:[%s922_s3 + $0x38] sm:$0xff]  ;;  %v447_v21 = vld [vmem:[%s922_s3 + $0x20] sm:$0xff] }
   0xe   : > { %v302_v4 = vsel %vm300_vm1, %v301_v3, 0  ;;  %s252_s27 = scalar_lea.vmem %s919_s0, %s661_s24  ;;  %v458_v20 = vpack.c.bf16 %v450_v19, %v449_v18  ;;  %v448_v22 = vld [vmem:[%s922_s3 + $0x28] sm:$0xff]  ;;  %v445_v24 = vld [vmem:[%s922_s3 + $0x10] sm:$0xff]  ;;  %v446_v25 = vld [vmem:[%s922_s3 + $0x18] sm:$0xff]  ;;  %vm466_vm3 = vcmask 523264   ;;  %s262_s30 = scalar_lea.vmem %s924_s5, %s661_s24  ;;  %vm544_vm4 = vcmask 261120  }
   0xf   : > { %v304_v5 = vand.u32 %v302_v4, %v278_v1  ;;  %v265_v6 = vld [vmem:[%s252_s27] sm:$0xff]  ;;  %v266_v7 = vld [vmem:[%s252_s27 + $0x8] sm:$0xff]  ;;  %v267_v8 = vld [vmem:[%s252_s27 + $0x10] sm:$0xff]  ;;  %v457_v23 = vpack.c.bf16 %v448_v22, %v447_v21  ;;  %v456_v26 = vpack.c.bf16 %v446_v25, %v445_v24 }
  0x10   : > { %v274_v9 = vpack.c.bf16 %v266_v7, %v265_v6  ;;  %v268_v10 = vld [vmem:[%s252_s27 + $0x18] sm:$0xff]  ;;  %v269_v11 = vld [vmem:[%s252_s27 + $0x20] sm:$0xff]  ;;  %v270_v12 = vld [vmem:[%s252_s27 + $0x28] sm:$0xff]  ;;  %702 = vmatprep.subr.bf16.mxu1 %v458_v20 }
  0x11   : > { %676 = vmatprep.subr.bf16.mxu0 %v304_v5  ;;  %v275_v13 = vpack.c.bf16 %v268_v10, %v267_v8  ;;  %v276_v14 = vpack.c.bf16 %v270_v12, %v269_v11  ;;  %v271_v15 = vld [vmem:[%s252_s27 + $0x30] sm:$0xff]  ;;  %v272_v16 = vld [vmem:[%s252_s27 + $0x38] sm:$0xff]  ;;  %706 = vmatpush3.bf16.msra.mxu1 %v458_v20  ;;  %v443_v27 = vld [vmem:[%s922_s3] sm:$0xff] }
  0x12   : > { %677 = vmatpush3.bf16.msra.mxu0 %v304_v5  ;;  %678 = vmatprep.mubr.msk.bf16.mxu0 %vm286_vm2, %v274_v9  ;;  %v277_v17 = vpack.c.bf16 %v272_v16, %v271_v15  ;;  %v444_v28 = vld [vmem:[%s922_s3 + $0x8] sm:$0xff]  ;;  %v649_v30 = vld [vmem:[%s921_s2] ss:$0 sm:$0xff] }
  0x13   : > { %686 = vmatprep.subr.bf16.mxu0 %v458_v20  ;;  %703 = vmatprep.subr.bf16.mxu1 %v457_v23  ;;  %v455_v29 = vpack.c.bf16 %v444_v28, %v443_v27 }
  0x15   : > { %679 = vmatmul.mubr.msk.bf16.vlgmr.msra.gmra.mxu0 %vm286_vm2, %v275_v13  ;;  %707 = vmatpush3.bf16.msra.mxu1 %v457_v23 }
  0x16   : > { %682 = vmatprep.mubr.msk.bf16.mxu0 %vm286_vm2, %v276_v14  ;;  %687 = vmatpush3.bf16.msra.mxu0 %v458_v20 }
  0x17   : > { %688 = vmatprep.subr.bf16.mxu0 %v457_v23  ;;  %704 = vmatprep.subr.bf16.mxu1 %v456_v26 }
  0x19   : > { %708 = vmatpush3.bf16.msra.mxu1 %v456_v26 }
  0x1a   : > { %689 = vmatpush3.bf16.msra.mxu0 %v457_v23  ;;  %705 = vmatprep.subr.bf16.mxu1 %v455_v29 }
  0x1b   : > { %690 = vmatprep.subr.bf16.mxu0 %v456_v26 }
  0x1d   : > { %683 = vmatmul.mubr.msk.bf16.gmra.mxu0 %vm286_vm2, %v277_v17  ;;  %709 = vmatpush3.bf16.msra.mxu1 %v455_v29 }
  0x1e   : > { %691 = vmatpush3.bf16.msra.mxu0 %v456_v26 }
  0x1f   : > { %692 = vmatprep.subr.bf16.mxu0 %v455_v29 }
  0x22   : > { %693 = vmatpush3.bf16.msra.mxu0 %v455_v29 }
  0xd5   : > { %v680_v31 = vpop.f32.mrf.mxu0 }
  0xd6   : > { %v862_v32 = vadd.f32 %v680_v31, %v649_v30 }
  0xd7   : > { %v340_v33 = vpop.f32.mrf.mxu0 }
  0xd8   : > { %v381_v34 = vmul.f32 0.044715, %v862_v32  ;;  %v865_v35 = vadd.f32 %v649_v30, %v340_v33 }
  0xd9   : > { %v681_v36 = vpop.f32.mrf.mxu0 }
  0xda   : > { %v389_v37 = vmul.f32 %v381_v34, %v862_v32  ;;  %v379_v38 = vmul.f32 0.044715, %v865_v35  ;;  %v352_v39 = vadd.f32 %v681_v36, %v649_v30  ;;  %v371_v31 = vmul.f32 0.5, %v865_v35 }
  0xdb   : > { %v343_v40 = vpop.f32.mrf.mxu0  ;;  %v373_v36 = vmul.f32 0.5, %v862_v32 }
  0xdc   : > { %v397_v41 = vmul.f32 %v389_v37, %v862_v32  ;;  %v387_v42 = vmul.f32 %v379_v38, %v865_v35  ;;  %v382_v43 = vmul.f32 0.044715, %v352_v39  ;;  %v344_v44 = vadd.f32 %v649_v30, %v343_v40 }
  0xdd   : > { %v684_v45 = vpop.f32.mrf.mxu0 }
  0xde   : > { %v405_v46 = vadd.f32 %v397_v41, %v862_v32  ;;  %v395_v47 = vmul.f32 %v387_v42, %v865_v35  ;;  %v390_v48 = vmul.f32 %v382_v43, %v352_v39  ;;  %v873_v49 = vadd.f32 %v684_v45, %v649_v30 }
  0xdf   : > { %v380_v50 = vmul.f32 0.044715, %v344_v44  ;;  %v356_v51 = vpop.f32.mrf.mxu0  ;;  %v372_v33 = vmul.f32 0.5, %v344_v44 }
  0xe0   : > { %v413_v52 = vmul.f32 0.7978846, %v405_v46  ;;  %v403_v53 = vadd.f32 %v395_v47, %v865_v35  ;;  %v398_v54 = vmul.f32 %v390_v48, %v352_v39  ;;  %v385_v55 = vmul.f32 0.044715, %v873_v49 }
  0xe1   : > { %v388_v56 = vmul.f32 %v380_v50, %v344_v44  ;;  %v877_v57 = vadd.f32 %v649_v30, %v356_v51  ;;  %v685_v58 = vpop.f32.mrf.mxu0 }
  0xe2   : > { %v411_v59 = vmul.f32 0.7978846, %v403_v53  ;;  %v406_v60 = vadd.f32 %v398_v54, %v352_v39  ;;  %v393_v61 = vmul.f32 %v385_v55, %v873_v49  ;;  %v368_v0 = vadd.f32 %v685_v58, %v649_v30 }
  0xe3   : > { %v396_v62 = vmul.f32 %v388_v56, %v344_v44  ;;  %v383_v63 = vmul.f32 0.044715, %v877_v57  ;;  %v359_v1 = vpop.f32.mrf.mxu0  ;;  %735 = vtanh.f32 %v413_v52  ;;  %v375_v32 = vmul.f32 0.5, %v877_v57 }
  0xe4   : > { %v414_v2 = vmul.f32 0.7978846, %v406_v60  ;;  %v401_v3 = vmul.f32 %v393_v61, %v873_v49  ;;  %v360_v4 = vadd.f32 %v649_v30, %v359_v1  ;;  %737 = vtanh.f32 %v411_v59  ;;  %v654_v61 = vld [vmem:[%s923_s4] ss:$0 sm:$0xff] }
  0xe5   : > { %v404_v5 = vadd.f32 %v396_v62, %v344_v44  ;;  %v391_v6 = vmul.f32 %v383_v63, %v877_v57  ;;  %v386_v7 = vmul.f32 0.044715, %v368_v0  ;;  %v374_v30 = vmul.f32 0.5, %v352_v39 }
  0xe6   : > { %739 = vtanh.f32 %v414_v2  ;;  %v409_v8 = vadd.f32 %v401_v3, %v873_v49  ;;  %v384_v9 = vmul.f32 0.044715, %v360_v4  ;;  %v378_v39 = vmul.f32 0.5, %v368_v0 }
  0xe7   : > { %v412_v10 = vmul.f32 0.7978846, %v404_v5  ;;  %v394_v11 = vmul.f32 %v386_v7, %v368_v0  ;;  %v399_v12 = vmul.f32 %v391_v6, %v877_v57  ;;  %v376_v51 = vmul.f32 0.5, %v360_v4 }
  0xe8   : > { %v417_v13 = vmul.f32 0.7978846, %v409_v8  ;;  %v392_v14 = vmul.f32 %v384_v9, %v360_v4  ;;  %v377_v53 = vmul.f32 0.5, %v873_v49 }
  0xe9   : > { %741 = vtanh.f32 %v412_v10  ;;  %v402_v15 = vmul.f32 %v394_v11, %v368_v0  ;;  %v407_v16 = vadd.f32 %v399_v12, %v877_v57 }
  0xea   : > { %v400_v17 = vmul.f32 %v392_v14, %v360_v4  ;;  %743 = vtanh.f32 %v417_v13 }
  0xeb   : > { %v410_v18 = vadd.f32 %v402_v15, %v368_v0  ;;  %v415_v19 = vmul.f32 0.7978846, %v407_v16 }
  0xec   : > { %v408_v20 = vadd.f32 %v400_v17, %v360_v4 }
  0xed   : > { %v418_v21 = vmul.f32 0.7978846, %v410_v18  ;;  %745 = vtanh.f32 %v415_v19 }
  0xee   : > { %v416_v22 = vmul.f32 0.7978846, %v408_v20 }
  0xef   : > { %747 = vtanh.f32 %v418_v21 }
  0xf0   : > { %749 = vtanh.f32 %v416_v22  ;;  %v736_v23 = vpop.eup %735 }
  0xf1   : > { %v738_v24 = vpop.eup %737  ;;  %v429_v29 = vadd.f32 1.0, %v736_v23 }
  0xf2   : > { %v427_v27 = vadd.f32 1.0, %v738_v24 }
  0xf3   : > { %v740_v25 = vpop.eup %739  ;;  %v437_v43 = vmul.f32 %v429_v29, %v373_v36 }
  0xf4   : > { %v430_v26 = vadd.f32 1.0, %v740_v25  ;;  %v435_v40 = vmul.f32 %v427_v27, %v371_v31 }
  0xf6   : > { %v742_v28 = vpop.eup %741  ;;  %v438_v37 = vmul.f32 %v430_v26, %v374_v30 }
  0xf7   : > { %v428_v34 = vadd.f32 1.0, %v742_v28  ;;  %v744_v38 = vpop.eup %743 }
  0xf8   : > { %v452_v47 = vpack.c.bf16 %v438_v37, %v437_v43  ;;  %v433_v35 = vadd.f32 1.0, %v744_v38 }
  0xf9   : > { %v436_v41 = vmul.f32 %v428_v34, %v372_v33 }
  0xfa   : > { %v746_v42 = vpop.eup %745  ;;  %v441_v58 = vmul.f32 %v433_v35, %v377_v53 }
  0xfb   : > { %v451_v45 = vpack.c.bf16 %v436_v41, %v435_v40  ;;  %v431_v48 = vadd.f32 1.0, %v746_v42 }
  0xfc   : > { %v748_v46 = vpop.eup %747 }
  0xfd   : > { %v750_v50 = vpop.eup %749  ;;  %694 = vmatprep.mubr.msk.bf16.mxu0 %vm466_vm3, %v451_v45  ;;  %v434_v44 = vadd.f32 1.0, %v748_v46  ;;  %v439_v55 = vmul.f32 %v431_v48, %v375_v32 }
  0xfe   : > { %695 = vmatmul.mubr.msk.bf16.vlgmr.msra.gmra.mxu0 %vm466_vm3, %v452_v47  ;;  %v432_v52 = vadd.f32 1.0, %v750_v50 }
  0xff   : > { %v442_v54 = vmul.f32 %v434_v44, %v378_v39 }
 0x100   : > { %v440_v56 = vmul.f32 %v432_v52, %v376_v51 }
 0x101   : > { %v454_v60 = vpack.c.bf16 %v442_v54, %v441_v58 }
 0x102   : > { %v453_v59 = vpack.c.bf16 %v440_v56, %v439_v55 }
 0x104   : > { %698 = vmatprep.mubr.msk.bf16.mxu1 %vm466_vm3, %v453_v59 }
 0x105   : > { %699 = vmatmul.mubr.msk.bf16.vlgmr.msra.gmra.mxu1 %vm466_vm3, %v454_v60 }
 0x1be   : > { %v696_v49 = vpop.f32.mrf.mxu0 }
 0x1bf   : > { %v522_v57 = vadd.f32 %v696_v49, %v654_v61 }
 0x1c0   : > { %v513_v62 = vpop.f32.mrf.mxu0 }
 0x1c1   : > { %547 = vst.msk [vmem:[%s262_s30 + $0x10] sm:$0xff] %vm544_vm4, %v522_v57  ;;  %v514_v63 = vadd.f32 %v654_v61, %v513_v62 }
 0x1c2   : > { %v697_v0 = vpop.f32.mrf.mxu0 }
 0x1c3   : > { %545 = vst.msk [vmem:[%s262_s30] sm:$0xff] %vm544_vm4, %v514_v63  ;;  %v525_v1 = vadd.f32 %v697_v0, %v654_v61 }
 0x1c4   : > { %v516_v2 = vpop.f32.mrf.mxu0 }
 0x1c5   : > { %548 = vst.msk [vmem:[%s262_s30 + $0x18] sm:$0xff] %vm544_vm4, %v525_v1  ;;  %v517_v3 = vadd.f32 %v654_v61, %v516_v2  ;;  %v700_v4 = vpop.f32.mrf.mxu1 }
 0x1c6   : > { %v538_v5 = vadd.f32 %v700_v4, %v654_v61 }
 0x1c7   : > { %546 = vst.msk [vmem:[%s262_s30 + $0x8] sm:$0xff] %vm544_vm4, %v517_v3  ;;  %v529_v6 = vpop.f32.mrf.mxu1 }
 0x1c8   : > { %551 = vst.msk [vmem:[%s262_s30 + $0x30] sm:$0xff] %vm544_vm4, %v538_v5  ;;  %v530_v7 = vadd.f32 %v654_v61, %v529_v6 }
 0x1c9   : > { %v701_v8 = vpop.f32.mrf.mxu1 }
 0x1ca   : > { %549 = vst.msk [vmem:[%s262_s30 + $0x20] sm:$0xff] %vm544_vm4, %v530_v7  ;;  %v541_v9 = vadd.f32 %v701_v8, %v654_v61 }
 0x1cb   : > { %v532_v10 = vpop.f32.mrf.mxu1 }
 0x1cc   : > { %552 = vst.msk [vmem:[%s262_s30 + $0x38] sm:$0xff] %vm544_vm4, %v541_v9  ;;  %v533_v11 = vadd.f32 %v654_v61, %v532_v10 }
 0x1ce   : > { %550 = vst.msk [vmem:[%s262_s30 + $0x28] sm:$0xff] %vm544_vm4, %v533_v11 }
 0x1cf PF: > { %s15_s20 = sadd.s32 1, %s773_s20   ;;  %s925_s18 = smov %s769_s19 }
 0x1d0   : > { %p12_p5 = scmp.ge.s32.totalorder %s15_s20, 6   ;;  %s926_s19 = smov %s928_s21 }
 0x1d2   :  { %14 = sbr.rel (!%p12_p5) target bundleno = 2 (0x2), region = 70 }

// kernel: gmsf_forward.12
= control target key start
LH: loop header
LB: loop body
LE: loop exit
PB: predicated region body
PF: predicated region fallthrough
CT: control target
= control target key end

     0   :  { %s782_s15 = smov 0   ;;  %s784_s16 = smov 0   ;;  %s872_s0 = inlined_call_operand.vmem [shape: bf16[4,64,32], index: 0, kind: input, shape index: {}]   ;;  %s873_s1 = inlined_call_operand.vmem [shape: f32[32,96], index: 1, kind: input, shape index: {}]   ;;  %s874_s2 = inlined_call_operand.vmem [shape: f32[1,96], index: 2, kind: input, shape index: {}]   ;;  %s875_s3 = inlined_call_operand.vmem [shape: bf16[4,64,32], index: 3, kind: output, shape index: {0}]   ;;  %s876_s4 = inlined_call_operand.vmem [shape: bf16[4,64,64], index: 4, kind: output, shape index: {1}]  }
   0x1   :  { %s786_s17 = smov 0  }
   0x2 LB: > { %s27_s18 = sadd.s32 1, %s750_s16  ;;  %p628_p0 = scmp.ge.s32.totalorder %s754_s17, 1  ;;  %s754_s17 = sphi %s786_s17, %s15_s17   ;;  %s750_s16 = sphi %s784_s16, %s878_s16   ;;  %s746_s15 = sphi %s782_s15, %s877_s15  }
   0x3   : > { %p29_p1 = scmp.ge.s32.totalorder %s27_s18, 4  ;;  %p188_p2 = scmp.lt.s32.totalorder %s754_s17, 5 }
   0x5   : > { %s880_s18 = smov (%p29_p1, %s27_s18), 0  ;;  %p189_p3 = pnand %p628_p0, %p188_p2 }
   0x6   : > { %p232_p4 = scmp.lt.s32.totalorder (!%p189_p3), %s746_s15, 3  ;;  %s756_s10 = smov (!%p189_p3), 96  }
   0x7   : > { %192 = sbr.rel (%p189_p3) target bundleno = 351 (0x15f), region = 32 }
   0xc   : > { %v272_v0 = vld [vmem:[%s873_s1 + $0x10] sm:$0xff]  ;;  %v273_v1 = vld [vmem:[%s873_s1 + $0x18] sm:$0xff]  ;;  %v270_v2 = vld [vmem:[%s873_s1] sm:$0xff]  ;;  %s882_s15 = smov (!%p232_p4, %s746_s15), 3  ;;  %vm303_vm0 = vcmask 261120   ;;  %vm421_vm1 = vcmask 257024  }
   0xd   : > { %v275_v3 = vpack.c.bf16 %v273_v1, %v272_v0  ;;  %v271_v4 = vld [vmem:[%s873_s1 + $0x8] sm:$0xff]  ;;  %s812_s27 = sshll.u32 %s882_s15, 5  ;;  %v635_v10 = vld [vmem:[%s874_s2] ss:$0 sm:$0xff]  ;;  %vm478_vm2 = vcmask 519168  }
   0xe   : > { %v274_v5 = vpack.c.bf16 %v271_v4, %v270_v2  ;;  %s239_s30 = scalar_lea.vmem %s872_s0, %s812_s27  ;;  %s825_s9 = scalar_lea.vmem %s875_s3, %s812_s27 }
   0xf   : > { %687 = vmatprep.subr.bf16.mxu0 %v275_v3  ;;  %699 = vmatprep.subr.bf16.mxu1 %v275_v3  ;;  %v728_v6 = vld [vmem:[%s239_s30] sm:$0xff]   ;;  %v729_v7 = vld [vmem:[%s239_s30 + $0x10] sm:$0xff]   ;;  %v730_v8 = vld [vmem:[%s239_s30 + $0x8] sm:$0xff]   ;;  %s259_s13 = scalar_lea.vmem %s876_s4, %s812_s27 }
  0x10   : > { %688 = vmatpush3.bf16.msra.mxu0 %v275_v3  ;;  %701 = vmatpush3.bf16.msra.mxu1 %v275_v3  ;;  %v731_v9 = vld [vmem:[%s239_s30 + $0x18] sm:$0xff]  }
  0x11   : > { %689 = vmatprep.subr.bf16.mxu0 %v274_v5  ;;  %700 = vmatprep.subr.bf16.mxu1 %v274_v5 }
  0x12   : > { %691 = vmatprep.mubr.msk.bf16.mxu0 %vm303_vm0, %v728_v6  ;;  %695 = vmatprep.mubr.msk.bf16.mxu1 %vm303_vm0, %v729_v7 }
  0x14   : > { %690 = vmatpush3.bf16.msra.mxu0 %v274_v5  ;;  %702 = vmatpush3.bf16.msra.mxu1 %v274_v5 }
  0x17   : > { %692 = vmatmul.mubr.msk.bf16.vlgmr.msra.gmra.mxu0 %vm303_vm0, %v730_v8  ;;  %696 = vmatmul.mubr.msk.bf16.vlgmr.msra.gmra.mxu1 %vm303_vm0, %v731_v9 }
  0xd7   : > { %v693_v11 = vpop.f32.mrf.mxu0  ;;  %v697_v12 = vpop.f32.mrf.mxu1 }
  0xd8   : > { %v359_v13 = vadd.f32 %v693_v11, %v635_v10  ;;  %v375_v14 = vadd.f32 %v697_v12, %v635_v10 }
  0xd9   : > { %v350_v15 = vpop.f32.mrf.mxu0  ;;  %v366_v16 = vpop.f32.mrf.mxu1 }
  0xda   : > { %v383_v17 = vmul.f32 0.17677669, %v359_v13  ;;  %v387_v18 = vmul.f32 0.17677669, %v375_v14  ;;  %v351_v19 = vadd.f32 %v635_v10, %v350_v15  ;;  %v367_v20 = vadd.f32 %v635_v10, %v366_v16 }
  0xdb   : > { %v694_v21 = vpop.f32.mrf.mxu0  ;;  %v698_v22 = vpop.f32.mrf.mxu1  ;;  %v675_v23 = vpack.c.bf16 %v359_v13, %v359_v13  ;;  %v679_v50 = vpack.c.bf16 %v375_v14, %v375_v14 }
  0xdc   : > { %v667_v24 = vpack.c.bf16 %v383_v17, %v383_v17  ;;  %v671_v25 = vpack.c.bf16 %v387_v18, %v387_v18  ;;  %v381_v26 = vmul.f32 0.17677669, %v351_v19  ;;  %v362_v27 = vadd.f32 %v694_v21, %v635_v10 }
  0xdd   : > { %v385_v28 = vmul.f32 0.17677669, %v367_v20  ;;  %v378_v29 = vadd.f32 %v698_v22, %v635_v10  ;;  %458 = vrot.lane.b32.xlu1 %v675_v23, %s756_s10  ;;  %v353_v30 = vpop.f32.mrf.mxu0  ;;  %v369_v31 = vpop.f32.mrf.mxu1  ;;  %v673_v32 = vpack.c.bf16 %v351_v19, %v351_v19  ;;  %v677_v42 = vpack.c.bf16 %v367_v20, %v367_v20 }
  0xde   : > { %424 = vst.msk [vmem:[%s825_s9 + $0x8] sm:$0xf] %vm421_vm1, %v667_v24  ;;  %428 = vst.msk [vmem:[%s825_s9 + $0x18] sm:$0xf] %vm421_vm1, %v671_v25  ;;  %v665_v33 = vpack.c.bf16 %v381_v26, %v381_v26  ;;  %v384_v34 = vmul.f32 0.17677669, %v362_v27  ;;  %v676_v35 = vpack.c.bf16 %v362_v27, %v362_v27  ;;  %v354_v36 = vadd.f32 %v635_v10, %v353_v30 }
  0xdf   : > { %v669_v37 = vpack.c.bf16 %v385_v28, %v385_v28  ;;  %v388_v38 = vmul.f32 0.17677669, %v378_v29  ;;  %v370_v39 = vadd.f32 %v635_v10, %v369_v31  ;;  %454 = vrot.lane.b32.xlu0 %v673_v32, %s756_s10  ;;  %v680_v49 = vpack.c.bf16 %v378_v29, %v378_v29 }
  0xe0   : > { %422 = vst.msk [vmem:[%s825_s9] sm:$0xf] %vm421_vm1, %v665_v33  ;;  %v668_v40 = vpack.c.bf16 %v384_v34, %v384_v34  ;;  %v382_v41 = vmul.f32 0.17677669, %v354_v36  ;;  %v674_v48 = vpack.c.bf16 %v354_v36, %v354_v36 }
  0xe1   : > { %426 = vst.msk [vmem:[%s825_s9 + $0x10] sm:$0xf] %vm421_vm1, %v669_v37  ;;  %v672_v43 = vpack.c.bf16 %v388_v38, %v388_v38  ;;  %v386_v44 = vmul.f32 0.17677669, %v370_v39  ;;  %460 = vrot.lane.b32.xlu1 %v676_v35, %s756_s10  ;;  %v678_v47 = vpack.c.bf16 %v370_v39, %v370_v39 }
  0xe2   : > { %425 = vst.msk [vmem:[%s825_s9 + $0xc] sm:$0xf] %vm421_vm1, %v668_v40  ;;  %v666_v45 = vpack.c.bf16 %v382_v41, %v382_v41 }
  0xe3   : > { %429 = vst.msk [vmem:[%s825_s9 + $0x1c] sm:$0xf] %vm421_vm1, %v672_v43  ;;  %v670_v46 = vpack.c.bf16 %v386_v44, %v386_v44  ;;  %462 = vrot.lane.b32.xlu0 %v677_v42, %s756_s10 }
  0xe4   : > { %423 = vst.msk [vmem:[%s825_s9 + $0x4] sm:$0xf] %vm421_vm1, %v666_v45 }
  0xe5   : > { %427 = vst.msk [vmem:[%s825_s9 + $0x14] sm:$0xf] %vm421_vm1, %v670_v46  ;;  %464 = vrot.lane.b32.xlu1 %v678_v47, %s756_s10 }
  0xe7   : > { %456 = vrot.lane.b32.xlu0 %v674_v48, %s756_s10 }
  0xe9   : > { %468 = vrot.lane.b32.xlu1 %v680_v49, %s756_s10 }
  0xeb   : > { %466 = vrot.lane.b32.xlu0 %v679_v50, %s756_s10 }
 0x14f   : > { %v459_v51 = vpop.permute.xlu1 %458 }
 0x150   : > { %481 = vst.msk [vmem:[%s259_s13 + $0x8] sm:$0xf] %vm478_vm2, %v459_v51 }
 0x151   : > { %v455_v52 = vpop.permute.xlu0 %454 }
 0x152   : > { %479 = vst.msk [vmem:[%s259_s13] sm:$0xf] %vm478_vm2, %v455_v52 }
 0x153   : > { %v461_v53 = vpop.permute.xlu1 %460 }
 0x154   : > { %482 = vst.msk [vmem:[%s259_s13 + $0xc] sm:$0xf] %vm478_vm2, %v461_v53 }
 0x155   : > { %v463_v54 = vpop.permute.xlu0 %462 }
 0x156   : > { %483 = vst.msk [vmem:[%s259_s13 + $0x10] sm:$0xf] %vm478_vm2, %v463_v54 }
 0x157   : > { %v465_v55 = vpop.permute.xlu1 %464 }
 0x158   : > { %484 = vst.msk [vmem:[%s259_s13 + $0x14] sm:$0xf] %vm478_vm2, %v465_v55 }
 0x159   : > { %v457_v56 = vpop.permute.xlu0 %456 }
 0x15a   : > { %480 = vst.msk [vmem:[%s259_s13 + $0x4] sm:$0xf] %vm478_vm2, %v457_v56 }
 0x15b   : > { %v469_v57 = vpop.permute.xlu1 %468 }
 0x15c   : > { %486 = vst.msk [vmem:[%s259_s13 + $0x1c] sm:$0xf] %vm478_vm2, %v469_v57 }
 0x15d   : > { %v467_v58 = vpop.permute.xlu0 %466 }
 0x15e   : > { %485 = vst.msk [vmem:[%s259_s13 + $0x18] sm:$0xf] %vm478_vm2, %v467_v58 }
 0x15f PF: > { %s15_s17 = sadd.s32 1, %s754_s17   ;;  %s877_s15 = smov %s750_s16 }
 0x160   : > { %p12_p5 = scmp.ge.s32.totalorder %s15_s17, 6   ;;  %s878_s16 = smov %s880_s18 }
 0x162   :  { %14 = sbr.rel (!%p12_p5) target bundleno = 2 (0x2), region = 74 }

// kernel: gmsf_forward.14
= control target key start
LH: loop header
LB: loop body
LE: loop exit
PB: predicated region body
PF: predicated region fallthrough
CT: control target
= control target key end

     0   :  { %s1162_s24 = smov 0   ;;  %s1164_s25 = smov 0   ;;  %s1281_s0 = inlined_call_operand.vmem [shape: bf16[4,64,32], index: 0, kind: input, shape index: {}, may-alias: {0,1}]   ;;  %s1282_s1 = inlined_call_operand.vmem [shape: bf16[4,64,32], index: 1, kind: input, shape index: {}, may-alias: {0,1}]   ;;  %s1283_s2 = inlined_call_operand.vmem [shape: f32[32,32], index: 2, kind: input, shape index: {}]   ;;  %s1284_s3 = inlined_call_operand.vmem [shape: f32[1,32], index: 3, kind: input, shape index: {}]   ;;  %s1285_s4 = inlined_call_operand.vmem [shape: f32[32,64], index: 4, kind: input, shape index: {}]   ;;  %s1286_s5 = inlined_call_operand.vmem [shape: f32[1,64], index: 5, kind: input, shape index: {}]   ;;  %s1287_s6 = inlined_call_operand.vmem [shape: bf16[4,64,32], index: 6, kind: output, shape index: {0}]   ;;  %s1288_s7 = inlined_call_operand.vmem [shape: bf16[4,64,64], index: 7, kind: output, shape index: {1}]  }
   0x1   :  { %s1166_s26 = smov 0  }
   0x2 LB: > { %s30_s27 = sadd.s32 1, %s1116_s25  ;;  %p962_p0 = scmp.ge.s32.totalorder %s1120_s26, 1  ;;  %s1120_s26 = sphi %s1166_s26, %s18_s26   ;;  %s1116_s25 = sphi %s1164_s25, %s1290_s25   ;;  %s1112_s24 = sphi %s1162_s24, %s1289_s24  }
   0x3   : > { %p32_p1 = scmp.ge.s32.totalorder %s30_s27, 4  ;;  %p332_p2 = scmp.lt.s32.totalorder %s1120_s26, 5 }
   0x5   : > { %s1292_s27 = smov (%p32_p1, %s30_s27), 0  ;;  %p333_p3 = pnand %p962_p0, %p332_p2 }
   0x6   : > { %p404_p4 = scmp.lt.s32.totalorder (!%p333_p3), %s1112_s24, 3  ;;  %s413_s11 = sadd.s32 (!%p333_p3), 2, %s1112_s24 }
   0x7   : > { %336 = sbr.rel (%p333_p3) target bundleno = 237 (0xed), region = 44  ;;  %p414_p5 = scmp.lt.s32.totalorder (!%p333_p3), %s413_s11, 0 }
   0x8   : > { %s415_s18 = ssub.s32 (!%p333_p3), 0, %s413_s11 }
   0x9   : > { %s965_s23 = smin.u32 (!%p333_p3), %s415_s18, %s413_s11 }
   0xa   : > { %s417_s29 = sand.u32 (!%p333_p3), 3, %s965_s23  }
   0xb   : > { %s418_s10 = ssub.s32 (!%p333_p3), 0, %s417_s29 }
   0xc   : > { %v480_v0 = vld [vmem:[%s1283_s2 + $0x10] sm:$0xff]  ;;  %v481_v1 = vld [vmem:[%s1283_s2 + $0x18] sm:$0xff]  ;;  %v478_v2 = vld [vmem:[%s1283_s2] sm:$0xff]  ;;  %s1294_s24 = smov (!%p404_p4, %s1112_s24), 3  ;;  %vm511_vm0 = vcmask 261120   ;;  %s1296_s10 = smov (!%p414_p5, %s418_s10), %s417_s29  ;;  %vm629_vm1 = vcmask 257024  }
   0xd   : > { %v483_v3 = vpack.c.bf16 %v481_v1, %v480_v0  ;;  %v479_v4 = vld [vmem:[%s1283_s2 + $0x8] sm:$0xff]  ;;  %v648_v5 = vld [vmem:[%s1285_s4 + $0x10] sm:$0xff]  ;;  %v649_v6 = vld [vmem:[%s1285_s4 + $0x18] sm:$0xff]  ;;  %s1204_s28 = sshll.u32 %s1294_s24, 5  ;;  %p967_p6 = scmp.lt.s32.totalorder %s1296_s10, 0  ;;  %vm788_vm2 = vcmask 519168  }
   0xe   : > { %v482_v7 = vpack.c.bf16 %v479_v4, %v478_v2  ;;  %v651_v8 = vpack.c.bf16 %v649_v6, %v648_v5  ;;  %v646_v9 = vld [vmem:[%s1285_s4] sm:$0xff]  ;;  %v647_v10 = vld [vmem:[%s1285_s4 + $0x8] sm:$0xff]  ;;  %s411_s9 = scalar_lea.vmem %s1281_s0, %s1204_s28  ;;  %s424_s24 = sadd.s32 4, %s1296_s10 }
   0xf   : > { %1042 = vmatprep.subr.bf16.mxu0 %v483_v3  ;;  %v650_v11 = vpack.c.bf16 %v647_v10, %v646_v9  ;;  %v1090_v12 = vld [vmem:[%s411_s9] sm:$0xff]   ;;  %v1091_v13 = vld [vmem:[%s411_s9 + $0x8] sm:$0xff]   ;;  %v1092_v14 = vld [vmem:[%s411_s9 + $0x10] sm:$0xff]   ;;  %s1298_s24 = smov (!%p967_p6, %s424_s24), %s1296_s10  ;;  %s1229_s19 = scalar_lea.vmem %s1287_s6, %s1204_s28 }
  0x10   : > { %1043 = vmatpush3.bf16.msra.mxu0 %v483_v3  ;;  %1054 = vmatprep.subr.bf16.mxu1 %v651_v8  ;;  %p427_p7 = scmp.lt.s32.totalorder %s1298_s24, 3  ;;  %v1094_v15 = vld [vmem:[%s411_s9 + $0x18] sm:$0xff]   ;;  %v974_v20 = vld [vmem:[%s1284_s3] ss:$0 sm:$0xff]  ;;  %s1244_s29 = scalar_lea.vmem %s1288_s7, %s1204_s28 }
  0x11   : > { %1044 = vmatprep.subr.bf16.mxu0 %v482_v7  ;;  %1055 = vmatpush3.bf16.msra.mxu1 %v651_v8  ;;  %v991_v35 = vld [vmem:[%s1286_s5] ss:$0 sm:$0xff] }
  0x12   : > { %1056 = vmatprep.subr.bf16.mxu1 %v650_v11  ;;  %1046 = vmatprep.mubr.msk.bf16.mxu0 %vm511_vm0, %v1090_v12  ;;  %s1300_s24 = smov (!%p427_p7, %s1298_s24), 3 }
  0x13   : > { %s1011_s12 = sshll.u32 %s1300_s24, 5 }
  0x14   : > { %1045 = vmatpush3.bf16.msra.mxu0 %v482_v7  ;;  %s434_s14 = scalar_lea.vmem %s1282_s1, %s1011_s12 }
  0x15   : > { %1057 = vmatpush3.bf16.msra.mxu1 %v650_v11  ;;  %v1093_v16 = vld [vmem:[%s434_s14] sm:$0xff]   ;;  %v1095_v17 = vld [vmem:[%s434_s14 + $0x8] sm:$0xff]   ;;  %v1096_v18 = vld [vmem:[%s434_s14 + $0x10] sm:$0xff]  }
  0x16   : > { %1058 = vmatprep.mubr.msk.bf16.mxu1 %vm511_vm0, %v1093_v16  ;;  %v1097_v19 = vld [vmem:[%s434_s14 + $0x18] sm:$0xff]  }
  0x17   : > { %1047 = vmatmul.mubr.msk.bf16.vlgmr.msra.gmra.mxu0 %vm511_vm0, %v1091_v13 }
  0x18   : > { %1050 = vmatprep.mubr.msk.bf16.mxu0 %vm511_vm0, %v1092_v14  ;;  %1059 = vmatmul.mubr.msk.bf16.vlgmr.msra.gmra.mxu1 %vm511_vm0, %v1095_v17 }
  0x19   : > { %1062 = vmatprep.mubr.msk.bf16.mxu1 %vm511_vm0, %v1096_v18 }
  0x1f   : > { %1051 = vmatmul.mubr.msk.bf16.gmra.mxu0 %vm511_vm0, %v1094_v15 }
  0x20   : > { %1063 = vmatmul.mubr.msk.bf16.gmra.mxu1 %vm511_vm0, %v1097_v19 }
  0xd7   : > { %v1048_v21 = vpop.f32.mrf.mxu0 }
  0xd8   : > { %v567_v22 = vadd.f32 %v1048_v21, %v974_v20  ;;  %v1060_v39 = vpop.f32.mrf.mxu1 }
  0xd9   : > { %v558_v23 = vpop.f32.mrf.mxu0  ;;  %v734_v43 = vadd.f32 %v1060_v39, %v991_v35 }
  0xda   : > { %v591_v24 = vmul.f32 0.17677669, %v567_v22  ;;  %v559_v25 = vadd.f32 %v974_v20, %v558_v23  ;;  %v725_v45 = vpop.f32.mrf.mxu1 }
  0xdb   : > { %v1049_v26 = vpop.f32.mrf.mxu0  ;;  %v1024_v48 = vpack.c.bf16 %v734_v43, %v734_v43  ;;  %v726_v50 = vadd.f32 %v991_v35, %v725_v45 }
  0xdc   : > { %v1016_v27 = vpack.c.bf16 %v591_v24, %v591_v24  ;;  %v589_v28 = vmul.f32 0.17677669, %v559_v25  ;;  %v570_v29 = vadd.f32 %v1049_v26, %v974_v20  ;;  %v1061_v52 = vpop.f32.mrf.mxu1 }
  0xdd   : > { %v561_v30 = vpop.f32.mrf.mxu0  ;;  %791 = vst.msk [vmem:[%s1244_s29 + $0x8] sm:$0xf] %vm788_vm2, %v1024_v48  ;;  %v1022_v55 = vpack.c.bf16 %v726_v50, %v726_v50  ;;  %v737_v56 = vadd.f32 %v1061_v52, %v991_v35 }
  0xde   : > { %632 = vst.msk [vmem:[%s1229_s19 + $0x8] sm:$0xf] %vm629_vm1, %v1016_v27  ;;  %v1014_v31 = vpack.c.bf16 %v589_v28, %v589_v28  ;;  %v592_v32 = vmul.f32 0.17677669, %v570_v29  ;;  %v562_v33 = vadd.f32 %v974_v20, %v561_v30  ;;  %v728_v59 = vpop.f32.mrf.mxu1 }
  0xdf   : > { %v1052_v34 = vpop.f32.mrf.mxu0  ;;  %789 = vst.msk [vmem:[%s1244_s29] sm:$0xf] %vm788_vm2, %v1022_v55  ;;  %v1025_v60 = vpack.c.bf16 %v737_v56, %v737_v56  ;;  %v729_v62 = vadd.f32 %v991_v35, %v728_v59 }
  0xe0   : > { %630 = vst.msk [vmem:[%s1229_s19] sm:$0xf] %vm629_vm1, %v1014_v31  ;;  %v1017_v36 = vpack.c.bf16 %v592_v32, %v592_v32  ;;  %v590_v37 = vmul.f32 0.17677669, %v562_v33  ;;  %v583_v38 = vadd.f32 %v1052_v34, %v974_v20  ;;  %v1064_v0 = vpop.f32.mrf.mxu1 }
  0xe1   : > { %v574_v40 = vpop.f32.mrf.mxu0  ;;  %792 = vst.msk [vmem:[%s1244_s29 + $0xc] sm:$0xf] %vm788_vm2, %v1025_v60  ;;  %v1023_v2 = vpack.c.bf16 %v729_v62, %v729_v62  ;;  %v750_v3 = vadd.f32 %v1064_v0, %v991_v35 }
  0xe2   : > { %633 = vst.msk [vmem:[%s1229_s19 + $0xc] sm:$0xf] %vm629_vm1, %v1017_v36  ;;  %v1015_v41 = vpack.c.bf16 %v590_v37, %v590_v37  ;;  %v595_v42 = vmul.f32 0.17677669, %v583_v38  ;;  %v575_v44 = vadd.f32 %v974_v20, %v574_v40  ;;  %v741_v4 = vpop.f32.mrf.mxu1 }
  0xe3   : > { %v1053_v46 = vpop.f32.mrf.mxu0  ;;  %790 = vst.msk [vmem:[%s1244_s29 + $0x4] sm:$0xf] %vm788_vm2, %v1023_v2  ;;  %v1028_v5 = vpack.c.bf16 %v750_v3, %v750_v3  ;;  %v742_v6 = vadd.f32 %v991_v35, %v741_v4 }
  0xe4   : > { %631 = vst.msk [vmem:[%s1229_s19 + $0x4] sm:$0xf] %vm629_vm1, %v1015_v41  ;;  %v1020_v47 = vpack.c.bf16 %v595_v42, %v595_v42  ;;  %v593_v49 = vmul.f32 0.17677669, %v575_v44  ;;  %v586_v51 = vadd.f32 %v1053_v46, %v974_v20  ;;  %v1065_v7 = vpop.f32.mrf.mxu1 }
  0xe5   : > { %v577_v53 = vpop.f32.mrf.mxu0  ;;  %795 = vst.msk [vmem:[%s1244_s29 + $0x18] sm:$0xf] %vm788_vm2, %v1028_v5  ;;  %v1026_v8 = vpack.c.bf16 %v742_v6, %v742_v6  ;;  %v753_v9 = vadd.f32 %v1065_v7, %v991_v35 }
  0xe6   : > { %636 = vst.msk [vmem:[%s1229_s19 + $0x18] sm:$0xf] %vm629_vm1, %v1020_v47  ;;  %v1018_v54 = vpack.c.bf16 %v593_v49, %v593_v49  ;;  %v578_v57 = vadd.f32 %v974_v20, %v577_v53  ;;  %v596_v58 = vmul.f32 0.17677669, %v586_v51  ;;  %v744_v10 = vpop.f32.mrf.mxu1 }
  0xe7   : > { %793 = vst.msk [vmem:[%s1244_s29 + $0x10] sm:$0xf] %vm788_vm2, %v1026_v8  ;;  %v1029_v11 = vpack.c.bf16 %v753_v9, %v753_v9  ;;  %v745_v12 = vadd.f32 %v991_v35, %v744_v10 }
  0xe8   : > { %634 = vst.msk [vmem:[%s1229_s19 + $0x10] sm:$0xf] %vm629_vm1, %v1018_v54  ;;  %v594_v61 = vmul.f32 0.17677669, %v578_v57  ;;  %v1021_v63 = vpack.c.bf16 %v596_v58, %v596_v58 }
  0xe9   : > { %796 = vst.msk [vmem:[%s1244_s29 + $0x1c] sm:$0xf] %vm788_vm2, %v1029_v11  ;;  %v1027_v13 = vpack.c.bf16 %v745_v12, %v745_v12 }
  0xea   : > { %v1019_v1 = vpack.c.bf16 %v594_v61, %v594_v61  ;;  %637 = vst.msk [vmem:[%s1229_s19 + $0x1c] sm:$0xf] %vm629_vm1, %v1021_v63 }
  0xeb   : > { %794 = vst.msk [vmem:[%s1244_s29 + $0x14] sm:$0xf] %vm788_vm2, %v1027_v13 }
  0xec   : > { %635 = vst.msk [vmem:[%s1229_s19 + $0x14] sm:$0xf] %vm629_vm1, %v1019_v1 }
  0xed PF: > { %s18_s26 = sadd.s32 1, %s1120_s26   ;;  %s1289_s24 = smov %s1116_s25 }
  0xee   : > { %p15_p8 = scmp.ge.s32.totalorder %s18_s26, 6   ;;  %s1290_s25 = smov %s1292_s27 }
  0xf0   :  { %17 = sbr.rel (!%p15_p8) target bundleno = 2 (0x2), region = 89 }

// kernel: gmsf_forward.13
= control target key start
LH: loop header
LB: loop body
LE: loop exit
PB: predicated region body
PF: predicated region fallthrough
CT: control target
= control target key end

     0   :  { %s1745_s24 = smov 0   ;;  %s1747_s25 = smov 0   ;;  %s2143_s0 = inlined_call_operand.vmem [shape: bf16[4,64,32], index: 0, kind: input, shape index: {}]   ;;  %s2144_s1 = inlined_call_operand.vmem [shape: bf16[4,64,32], index: 1, kind: input, shape index: {}]   ;;  %s2145_s2 = inlined_call_operand.vmem [shape: bf16[4,64,64], index: 2, kind: input, shape index: {}]   ;;  %s2146_s3 = inlined_call_operand.vmem [shape: f32[32,32], index: 3, kind: input, shape index: {}]   ;;  %s2147_s4 = inlined_call_operand.vmem [shape: f32[1,32], index: 4, kind: input, shape index: {}]   ;;  %s2148_s5 = inlined_call_operand.vmem [shape: f32[1,32], index: 5, kind: input, shape index: {}]   ;;  %s2149_s6 = inlined_call_operand.vmem [shape: f32[1,32], index: 6, kind: input, shape index: {}]   ;;  %s2150_s7 = inlined_call_operand.vmem [shape: bf16[4,64,32], index: 7, kind: output, shape index: {}]  }
   0x1   :  { %s1749_s26 = smov 0  }
   0x2 LB: > { %s36_s27 = sadd.s32 1, %s1695_s25  ;;  %p1432_p0 = scmp.ge.s32.totalorder %s1699_s26, 1  ;;  %s1699_s26 = sphi %s1749_s26, %s17_s26   ;;  %s1695_s25 = sphi %s1747_s25, %s2152_s25   ;;  %s1691_s24 = sphi %s1745_s24, %s2151_s24  }
   0x3   : > { %p38_p1 = scmp.ge.s32.totalorder %s36_s27, 4  ;;  %p299_p2 = scmp.lt.s32.totalorder %s1699_s26, 5 }
   0x5   : > { %s2154_s27 = smov (%p38_p1, %s36_s27), 0  ;;  %p300_p3 = pnand %p1432_p0, %p299_p2 }
   0x6   : > { %p358_p4 = scmp.lt.s32.totalorder (!%p300_p3), %s1691_s24, 3  ;;  %s1704_s12 = smov (!%p300_p3), 96  }
   0x7   : > { %303 = sbr.rel (%p300_p3) target bundleno = 1364 (0x554), region = 48 }
   0xc   : > { %s2156_s24 = smov (!%p358_p4, %s1691_s24), 3  ;;  %vm419_vm0 = vcmask 261120   ;;  %vm402_vm1 = vcmask 7168   ;;  %v1701_v12 = vmov -inf   ;;  %vm582_vm2 = vcmask 523264  }
   0xd   : > { %s1763_s28 = sshll.u32 %s2156_s24, 5  ;;  %405 = vst.msk [vmem:[#allocation2 + $0x10] sm:$0xff] %vm402_vm1, %v1701_v12  ;;  %403 = vst.msk [vmem:[#allocation2] sm:$0xff] %vm402_vm1, %v1701_v12  ;;  %v1702_v25 = vmov 0   ;;  %v1703_v30 = vmov 0.0   ;;  %vm1293_vm3 = vcmask 257024  }
   0xe   : > { %s385_s8 = scalar_lea.vmem %s2145_s2, %s1763_s28  ;;  %s375_s11 = scalar_lea.vmem %s2144_s1, %s1763_s28  ;;  %404 = vst.msk [vmem:[#allocation2 + $0x8] sm:$0xff] %vm402_vm1, %v1701_v12  ;;  %406 = vst.msk [vmem:[#allocation2 + $0x18] sm:$0xff] %vm402_vm1, %v1701_v12  ;;  %1604 = vset.pattern.permute.xlu1 %v1702_v25  ;;  %1603 = vset.pattern.permute.xlu0 %v1702_v25 }
   0xf   : > { %v1769_v0 = vld [vmem:[%s385_s8 + $0x18] sm:$0xff]   ;;  %v1771_v1 = vld [vmem:[%s385_s8 + $0x10] sm:$0xff]   ;;  %v1609_v3 = vld [vmem:[%s375_s11] sm:$0xff]   ;;  %407 = vst.msk [vmem:[#allocation2 + $0x20] sm:$0xff] %vm402_vm1, %v1701_v12  ;;  %s2072_s29 = scalar_lea.vmem %s2143_s0, %s1763_s28  ;;  %s2096_s13 = scalar_lea.vmem %s2150_s7, %s1763_s28 }
  0x10   : > { %1571 = vmatprep.subr.msk.bf16.mxu0 %vm419_vm0, %v1769_v0  ;;  %v507_v2 = vsel %vm419_vm0, %v1769_v0, 0  ;;  %1535 = vmatprep.mubr.msk.bf16.mxu0 %vm419_vm0, %v1609_v3  ;;  %v504_v4 = vsel %vm419_vm0, %v1771_v1, 0  ;;  %v1786_v5 = vld [vmem:[%s385_s8 + $0x8] sm:$0xff]   ;;  %v1792_v7 = vld [vmem:[%s385_s8] sm:$0xff]   ;;  %v1611_v10 = vld [vmem:[%s375_s11 + $0x10] sm:$0xff]   ;;  %408 = vst.msk [vmem:[#allocation2 + $0x28] sm:$0xff] %vm402_vm1, %v1701_v12 }
  0x11   : > { %1528 = vmatpush3.bf16.xpose.msra.mxu0 %v507_v2  ;;  %v501_v6 = vsel %vm419_vm0, %v1786_v5, 0  ;;  %v498_v8 = vsel %vm419_vm0, %v1792_v7, 0  ;;  %v1610_v9 = vld [vmem:[%s375_s11 + $0x8] sm:$0xff]   ;;  %v1612_v11 = vld [vmem:[%s375_s11 + $0x18] sm:$0xff]   ;;  %409 = vst.msk [vmem:[#allocation2 + $0x30] sm:$0xff] %vm402_vm1, %v1701_v12  ;;  %410 = vst.msk [vmem:[#allocation2 + $0x38] sm:$0xff] %vm402_vm1, %v1701_v12 }
  0x12   : > { %1572 = vmatprep.subr.msk.bf16.mxu0 %vm419_vm0, %v1771_v1  ;;  %411 = vst.msk [vmem:[#allocation3] sm:$0xff] %vm402_vm1, %v1703_v30  ;;  %412 = vst.msk [vmem:[#allocation3 + $0x8] sm:$0xff] %vm402_vm1, %v1703_v30 }
  0x13   : > { %413 = vst.msk [vmem:[#allocation3 + $0x10] sm:$0xff] %vm402_vm1, %v1703_v30  ;;  %414 = vst.msk [vmem:[#allocation3 + $0x18] sm:$0xff] %vm402_vm1, %v1703_v30 }
  0x14   : > { %415 = vst.msk [vmem:[#allocation3 + $0x20] sm:$0xff] %vm402_vm1, %v1703_v30  ;;  %416 = vst.msk [vmem:[#allocation3 + $0x28] sm:$0xff] %vm402_vm1, %v1703_v30  ;;  %v1857_v31 = vld [vmem:[#allocation2 + $0x10] sm:$0xff]  ;;  %v1859_v33 = vld [vmem:[#allocation2] sm:$0xff] }
  0x15   : > { %417 = vst.msk [vmem:[#allocation3 + $0x30] sm:$0xff] %vm402_vm1, %v1703_v30  ;;  %418 = vst.msk [vmem:[#allocation3 + $0x38] sm:$0xff] %vm402_vm1, %v1703_v30  ;;  %v1864_v36 = vld [vmem:[#allocation2 + $0x18] sm:$0xff]  ;;  %v1874_v40 = vld [vmem:[#allocation2 + $0x8] sm:$0xff] }
  0x16   : > { %420 = vst.msk [vmem:[#allocation4] sm:$0xff] %vm419_vm0, %v1703_v30  ;;  %421 = vst.msk [vmem:[#allocation4 + $0x8] sm:$0xff] %vm419_vm0, %v1703_v30  ;;  %v1892_v46 = vld [vmem:[#allocation2 + $0x20] sm:$0xff] }
  0x17   : > { %422 = vst.msk [vmem:[#allocation4 + $0x10] sm:$0xff] %vm419_vm0, %v1703_v30  ;;  %423 = vst.msk [vmem:[#allocation4 + $0x18] sm:$0xff] %vm419_vm0, %v1703_v30  ;;  %v1905_v51 = vld [vmem:[#allocation2 + $0x28] sm:$0xff] }
  0x18   : > { %424 = vst.msk [vmem:[#allocation4 + $0x20] sm:$0xff] %vm419_vm0, %v1703_v30  ;;  %425 = vst.msk [vmem:[#allocation4 + $0x28] sm:$0xff] %vm419_vm0, %v1703_v30  ;;  %v1903_v50 = vld [vmem:[#allocation2 + $0x30] sm:$0xff]  ;;  %v1918_v57 = vld [vmem:[#allocation2 + $0x38] sm:$0xff] }
  0x19   : > { %1530 = vmatpush3.bf16.xpose.msra.mxu0 %v504_v4  ;;  %426 = vst.msk [vmem:[#allocation4 + $0x30] sm:$0xff] %vm419_vm0, %v1703_v30  ;;  %427 = vst.msk [vmem:[#allocation4 + $0x38] sm:$0xff] %vm419_vm0, %v1703_v30 }
  0x1a   : > { %1573 = vmatprep.subr.msk.bf16.mxu0 %vm419_vm0, %v1786_v5 }
  0x21   : > { %1532 = vmatpush3.bf16.xpose.msra.mxu0 %v501_v6 }
  0x22   : > { %1574 = vmatprep.subr.msk.bf16.mxu0 %vm419_vm0, %v1792_v7 }
  0x29   : > { %1534 = vmatpush3.bf16.xpose.msra.mxu0 %v498_v8 }
  0x30   : > { %1536 = vmatmul.mubr.msk.bf16.vlgmr.msra.gmra.mxu0 %vm419_vm0, %v1610_v9 }
  0x31   : > { %1539 = vmatprep.mubr.msk.bf16.mxu0 %vm419_vm0, %v1611_v10 }
  0x38   : > { %1540 = vmatmul.mubr.msk.bf16.gmra.mxu0 %vm419_vm0, %v1612_v11 }
  0xf0   : > { %v1809_v13 = vpop.f32.mrf.mxu0 }
  0xf1   : > { %v589_v14 = vsel %vm582_vm2, %v1809_v13, -inf }
  0xf2   : > { %590 = vmax.xlane.f32.xlu1 %v589_v14  ;;  %v1813_v15 = vpop.f32.mrf.mxu0 }
  0xf3   : > { %v583_v16 = vsel %vm582_vm2, %v1813_v15, -inf }
  0xf4   : > { %584 = vmax.xlane.f32.xlu0 %v583_v16  ;;  %v1817_v17 = vpop.f32.mrf.mxu0 }
  0xf5   : > { %v592_v18 = vsel %vm582_vm2, %v1817_v17, -inf }
  0xf6   : > { %593 = vmax.xlane.f32.xlu1 %v592_v18  ;;  %v1821_v19 = vpop.f32.mrf.mxu0 }
  0xf7   : > { %v586_v20 = vsel %vm582_vm2, %v1821_v19, -inf }
  0xf8   : > { %587 = vmax.xlane.f32.xlu0 %v586_v20  ;;  %v1825_v21 = vpop.f32.mrf.mxu0 }
  0xf9   : > { %v601_v27 = vsel %vm582_vm2, %v1825_v21, -inf }
  0xfa   : > { %v1827_v22 = vpop.f32.mrf.mxu0 }
  0xfb   : > { %v595_v23 = vsel %vm582_vm2, %v1827_v22, -inf }
  0xfc   : > { %596 = vmax.xlane.f32.xlu0 %v595_v23  ;;  %v1831_v24 = vpop.f32.mrf.mxu0 }
  0xfd   : > { %v604_v29 = vsel %vm582_vm2, %v1831_v24, -inf }
  0xfe   : > { %v1833_v26 = vpop.f32.mrf.mxu0 }
  0xff   : > { %v598_v28 = vsel %vm582_vm2, %v1833_v26, -inf }
 0x100   : > { %602 = vmax.xlane.f32.xlu0 %v601_v27  ;;  %599 = vmax.xlane.f32.xlu1 %v598_v28 }
 0x104   : > { %605 = vmax.xlane.f32.xlu1 %v604_v29 }
 0x17b   : > { %v591_v32 = vpop.xlane.xlu1 %590 }
 0x17c   : > { %v1862_v34 = vmax.f32 %v1857_v31, %v591_v32 }
 0x17d   : > { %v585_v35 = vpop.xlane.xlu0 %584 }
 0x17e   : > { %v617_v37 = vsub.f32 %v1857_v31, %v1862_v34  ;;  %927 = vst.msk [vmem:[#allocation2 + $0x10] sm:$0xff] %vm402_vm1, %v1862_v34  ;;  %v1871_v38 = vmax.f32 %v1859_v33, %v585_v35  ;;  %651 = vperm.xlu1 %1604, %v1862_v34  }
 0x17f   : > { %v594_v39 = vpop.xlane.xlu1 %593 }
 0x180   : > { %v615_v41 = vsub.f32 %v1859_v33, %v1871_v38  ;;  %925 = vst.msk [vmem:[#allocation2] sm:$0xff] %vm402_vm1, %v1871_v38  ;;  %v1881_v42 = vmax.f32 %v1864_v36, %v594_v39  ;;  %641 = vperm.xlu0 %1603, %v1871_v38   ;;  %v627_v33 = vmul.f32 1.442695, %v617_v37 }
 0x181   : > { %v588_v43 = vpop.xlane.xlu0 %587 }
 0x182   : > { %v618_v44 = vsub.f32 %v1864_v36, %v1881_v42  ;;  %928 = vst.msk [vmem:[#allocation2 + $0x18] sm:$0xff] %vm402_vm1, %v1881_v42  ;;  %v1889_v45 = vmax.f32 %v1874_v40, %v588_v43  ;;  %656 = vperm.xlu1 %1604, %v1881_v42  }
 0x184   : > { %v616_v47 = vsub.f32 %v1874_v40, %v1889_v45  ;;  %926 = vst.msk [vmem:[#allocation2 + $0x8] sm:$0xff] %vm402_vm1, %v1889_v45  ;;  %824 = vrot.lane.b32.xlu0 %v1771_v1, %s1704_s12 }
 0x185   : > { %v597_v48 = vpop.xlane.xlu0 %596 }
 0x186   : > { %v1900_v49 = vmax.f32 %v1892_v46, %v597_v48  ;;  %646 = vperm.xlu1 %1604, %v1889_v45  }
 0x188   : > { %v619_v52 = vsub.f32 %v1892_v46, %v1900_v49  ;;  %929 = vst.msk [vmem:[#allocation2 + $0x20] sm:$0xff] %vm402_vm1, %v1900_v49  ;;  %820 = vrot.lane.b32.xlu0 %v1792_v7, %s1704_s12 }
 0x189   : > { %v603_v53 = vpop.xlane.xlu0 %602  ;;  %v600_v54 = vpop.xlane.xlu1 %599 }
 0x18a   : > { %v1913_v55 = vmax.f32 %v1903_v50, %v603_v53  ;;  %v1916_v56 = vmax.f32 %v1905_v51, %v600_v54  ;;  %v631_v36 = vmul.f32 1.442695, %v619_v52 }
 0x18c   : > { %v621_v58 = vsub.f32 %v1903_v50, %v1913_v55  ;;  %931 = vst.msk [vmem:[#allocation2 + $0x30] sm:$0xff] %vm402_vm1, %v1913_v55  ;;  %v620_v59 = vsub.f32 %v1905_v51, %v1916_v56  ;;  %930 = vst.msk [vmem:[#allocation2 + $0x28] sm:$0xff] %vm402_vm1, %v1916_v56  ;;  %671 = vperm.xlu1 %1604, %v1913_v55   ;;  %v703_v50 = vld [vmem:[#allocation3] sm:$0xff]  ;;  %v706_v55 = vld [vmem:[#allocation3 + $0x18] sm:$0xff] }
 0x18d   : > { %v606_v60 = vpop.xlane.xlu1 %605 }
 0x18e   : > { %v1930_v61 = vmax.f32 %v1918_v57, %v606_v60  ;;  %v633_v40 = vmul.f32 1.442695, %v620_v59  ;;  %v635_v34 = vmul.f32 1.442695, %v621_v58 }
 0x190   : > { %v622_v62 = vsub.f32 %v1918_v57, %v1930_v61  ;;  %932 = vst.msk [vmem:[#allocation2 + $0x38] sm:$0xff] %vm402_vm1, %v1930_v61  ;;  %661 = vperm.xlu1 %1604, %v1900_v49   ;;  %v704_v57 = vld [vmem:[#allocation3 + $0x8] sm:$0xff] }
 0x192   : > { %v637_v31 = vmul.f32 1.442695, %v622_v62 }
 0x194   : > { %676 = vperm.xlu1 %1604, %v1930_v61  }
 0x198   : > { %666 = vperm.xlu1 %1604, %v1916_v56  }
 0x19c   : > { %826 = vrot.lane.b32.xlu1 %v1769_v0, %s1704_s12 }
 0x1a0   : > { %822 = vrot.lane.b32.xlu1 %v1786_v5, %s1704_s12 }
 0x1f9   : > { %v652_v63 = vpop.permute.xlu1 %651 }
 0x1fa   : > { %v681_v7 = vsub.f32 %v1809_v13, %v652_v63 }
 0x1fb   : > { %v642_v1 = vpop.permute.xlu0 %641 }
 0x1fc   : > { %v679_v2 = vsub.f32 %v1813_v15, %v642_v1  ;;  %v691_v11 = vmul.f32 1.442695, %v681_v7  ;;  %v623_v7 = vmul.f32 1.442695, %v615_v41 }
 0x1fd   : > { %v657_v3 = vpop.permute.xlu1 %656 }
 0x1fe   : > { %v687_v4 = vmul.f32 1.442695, %v679_v2  ;;  %v682_v6 = vsub.f32 %v1817_v17, %v657_v3 }
 0x1ff   : > { %v825_v43 = vpop.permute.xlu0 %824 }
 0x200   : > { %1613 = vpow2.f32 %v687_v4  ;;  %v693_v8 = vmul.f32 1.442695, %v682_v6 }
 0x201   : > { %v647_v9 = vpop.permute.xlu1 %646 }
 0x202   : > { %1615 = vpow2.f32 %v693_v8  ;;  %v680_v10 = vsub.f32 %v1821_v19, %v647_v9  ;;  %v625_v8 = vmul.f32 1.442695, %v616_v47 }
 0x203   : > { %v821_v60 = vpop.permute.xlu0 %820 }
 0x204   : > { %v689_v0 = vmul.f32 1.442695, %v680_v10  ;;  %v629_v10 = vmul.f32 1.442695, %v618_v44 }
 0x206   : > { %1617 = vpow2.f32 %v689_v0  ;;  %v705_v0 = vld [vmem:[#allocation3 + $0x10] sm:$0xff] }
 0x207   : > { %v672_v5 = vpop.permute.xlu1 %671  ;;  %1619 = vpow2.f32 %v691_v11 }
 0x208   : > { %v685_v12 = vsub.f32 %v1825_v21, %v672_v5 }
 0x20a   : > { %v699_v17 = vmul.f32 1.442695, %v685_v12 }
 0x20b   : > { %v662_v14 = vpop.permute.xlu1 %661 }
 0x20c   : > { %v683_v15 = vsub.f32 %v1827_v22, %v662_v14 }
 0x20d   : > { %v1614_v16 = vpop.eup %1613 }
 0x20e   : > { %v695_v18 = vmul.f32 1.442695, %v683_v15  ;;  %v719_v13 = vsel %vm582_vm2, %v1614_v16, 0.0 }
 0x20f   : > { %v1616_v20 = vpop.eup %1615  ;;  %720 = vadd.xlane.f32.xlu1 %v719_v13  ;;  %v677_v23 = vpop.permute.xlu1 %676 }
 0x210   : > { %1621 = vpow2.f32 %v695_v18  ;;  %v686_v19 = vsub.f32 %v1831_v24, %v677_v23  ;;  %v728_v25 = vsel %vm582_vm2, %v1616_v20, 0.0 }
 0x211   : > { %1623 = vpow2.f32 %v699_v17  ;;  %v707_v17 = vld [vmem:[#allocation3 + $0x20] sm:$0xff] }
 0x212   : > { %v701_v32 = vmul.f32 1.442695, %v686_v19 }
 0x213   : > { %v1618_v27 = vpop.eup %1617  ;;  %729 = vadd.xlane.f32.xlu1 %v728_v25  ;;  %v667_v21 = vpop.permute.xlu1 %666 }
 0x214   : > { %v684_v28 = vsub.f32 %v1833_v26, %v667_v21  ;;  %v722_v22 = vsel %vm582_vm2, %v1618_v27, 0.0  ;;  %v816_v29 = vpack.c.bf16 %v1618_v27, %v1614_v16  ;;  %v1620_v30 = vpop.eup %1619 }
 0x215   : > { %723 = vadd.xlane.f32.xlu0 %v722_v22  ;;  %v725_v24 = vsel %vm582_vm2, %v1620_v30, 0.0  ;;  %v817_v3 = vpack.c.bf16 %v1616_v20, %v1620_v30  ;;  %v709_v20 = vld [vmem:[#allocation3 + $0x30] sm:$0xff] }
 0x216   : > { %v697_v35 = vmul.f32 1.442695, %v684_v28  ;;  %1551 = vmatprep.mubr.msk.bf16.mxu1 %vm582_vm2, %v816_v29  ;;  %v708_v28 = vld [vmem:[#allocation3 + $0x28] sm:$0xff] }
 0x217   : > { %v827_v39 = vpop.permute.xlu1 %826 }
 0x218   : > { %1625 = vpow2.f32 %v697_v35  ;;  %1543 = vmatprep.subr.bf16.mxu1 %v827_v39 }
 0x219   : > { %726 = vadd.xlane.f32.xlu0 %v725_v24  ;;  %1544 = vmatpush3.bf16.msra.mxu1 %v827_v39  ;;  %1627 = vpow2.f32 %v701_v32  ;;  %v710_v39 = vld [vmem:[#allocation3 + $0x38] sm:$0xff]  ;;  %v1010_v24 = vld [vmem:[%s2146_s3 + $0x10] sm:$0xff] }
 0x21a   : > { %1545 = vmatprep.subr.bf16.mxu1 %v825_v43  ;;  %1629 = vpow2.f32 %v623_v7 }
 0x21b   : > { %v823_v26 = vpop.permute.xlu1 %822  ;;  %1631 = vpow2.f32 %v625_v8 }
 0x21c   : > { %1633 = vpow2.f32 %v629_v10 }
 0x21d   : > { %v1622_v48 = vpop.eup %1621  ;;  %1546 = vmatpush3.bf16.msra.mxu1 %v825_v43  ;;  %1635 = vpow2.f32 %v627_v33 }
 0x21e   : > { %v731_v53 = vsel %vm582_vm2, %v1622_v48, 0.0  ;;  %1547 = vmatprep.subr.bf16.mxu1 %v823_v26  ;;  %v1624_v54 = vpop.eup %1623  ;;  %1637 = vpow2.f32 %v633_v40 }
 0x21f   : > { %732 = vadd.xlane.f32.xlu0 %v731_v53  ;;  %v737_v63 = vsel %vm582_vm2, %v1624_v54, 0.0  ;;  %1639 = vpow2.f32 %v631_v36 }
 0x220   : > { %1641 = vpow2.f32 %v637_v31 }
 0x221   : > { %1548 = vmatpush3.bf16.msra.mxu1 %v823_v26  ;;  %1643 = vpow2.f32 %v635_v34  ;;  %v1011_v26 = vld [vmem:[%s2146_s3 + $0x18] sm:$0xff] }
 0x222   : > { %1549 = vmatprep.subr.bf16.mxu1 %v821_v60  ;;  %v1017_v53 = vpack.c.bf16 %v1011_v26, %v1010_v24 }
 0x223   : > { %738 = vadd.xlane.f32.xlu0 %v737_v63 }
 0x225   : > { %v1626_v1 = vpop.eup %1625  ;;  %1550 = vmatpush3.bf16.msra.mxu1 %v821_v60 }
 0x226   : > { %v734_v2 = vsel %vm582_vm2, %v1626_v1, 0.0  ;;  %v818_v4 = vpack.c.bf16 %v1626_v1, %v1622_v48  ;;  %v1628_v6 = vpop.eup %1627  ;;  %1559 = vmatprep.subr.bf16.mxu1 %v1017_v53  ;;  %v1008_v1 = vld [vmem:[%s2146_s3] sm:$0xff] }
 0x227   : > { %735 = vadd.xlane.f32.xlu1 %v734_v2  ;;  %v740_v9 = vsel %vm582_vm2, %v1628_v6, 0.0  ;;  %v819_v38 = vpack.c.bf16 %v1628_v6, %v1624_v54  ;;  %v1630_v37 = vpop.eup %1629  ;;  %v1009_v2 = vld [vmem:[%s2146_s3 + $0x8] sm:$0xff] }
 0x228   : > { %1552 = vmatmul.mubr.msk.bf16.vlgmr.msra.gmra.mxu1 %vm582_vm2, %v817_v3  ;;  %v1632_v41 = vpop.eup %1631  ;;  %v711_v51 = vmul.f32 %v1630_v37, %v703_v50  ;;  %v1016_v6 = vpack.c.bf16 %v1009_v2, %v1008_v1 }
 0x229   : > { %1555 = vmatprep.mubr.msk.bf16.mxu1 %vm582_vm2, %v818_v4  ;;  %v1634_v42 = vpop.eup %1633  ;;  %v712_v62 = vmul.f32 %v1632_v41, %v704_v57  ;;  %1560 = vmatpush3.bf16.msra.mxu1 %v1017_v53 }
 0x22a   : > { %v1636_v44 = vpop.eup %1635  ;;  %v714_v58 = vmul.f32 %v1634_v42, %v706_v55  ;;  %1561 = vmatprep.subr.bf16.mxu1 %v1016_v6 }
 0x22b   : > { %741 = vadd.xlane.f32.xlu1 %v740_v9  ;;  %v1638_v45 = vpop.eup %1637  ;;  %v713_v12 = vmul.f32 %v1636_v44, %v705_v0 }
 0x22c   : > { %v1640_v46 = vpop.eup %1639  ;;  %v716_v30 = vmul.f32 %v1638_v45, %v708_v28 }
 0x22d   : > { %v1642_v47 = vpop.eup %1641  ;;  %v715_v18 = vmul.f32 %v1640_v46, %v707_v17  ;;  %1562 = vmatpush3.bf16.msra.mxu1 %v1016_v6 }
 0x22e   : > { %v1644_v49 = vpop.eup %1643  ;;  %v718_v54 = vmul.f32 %v1642_v47, %v710_v39 }
 0x22f   : > { %v717_v27 = vmul.f32 %v1644_v49, %v709_v20 }
 0x230   : > { %1556 = vmatmul.mubr.msk.bf16.gmra.mxu1 %vm582_vm2, %v819_v38 }
 0x239   : > { %770 = vperm.xlu0 %1603, %v1630_v37  }
 0x23c   : > { %775 = vperm.xlu1 %1604, %v1632_v41  }
 0x23d   : > { %785 = vperm.xlu0 %1603, %v1634_v42   ;;  %v762_v42 = vld [vmem:[#allocation4 + $0x10] sm:$0xff] }
 0x240   : > { %780 = vperm.xlu1 %1604, %v1636_v44   ;;  %v760_v44 = vld [vmem:[#allocation4] sm:$0xff] }
 0x241   : > { %795 = vperm.xlu0 %1603, %v1638_v45  }
 0x244   : > { %790 = vperm.xlu1 %1604, %v1640_v46  }
 0x245   : > { %805 = vperm.xlu0 %1603, %v1642_v47   ;;  %v763_v47 = vld [vmem:[#allocation4 + $0x18] sm:$0xff] }
 0x248   : > { %800 = vperm.xlu1 %1604, %v1644_v49  }
 0x298   : > { %v721_v52 = vpop.xlane.xlu1 %720 }
 0x299   : > { %v743_v56 = vadd.f32 %v721_v52, %v711_v51  ;;  %v761_v52 = vld [vmem:[#allocation4 + $0x8] sm:$0xff] }
 0x29b   : > { %752 = vst.msk [vmem:[#allocation3] sm:$0xff] %vm402_vm1, %v743_v56 }
 0x29c   : > { %v730_v59 = vpop.xlane.xlu1 %729 }
 0x29d   : > { %v746_v61 = vadd.f32 %v730_v59, %v714_v58  ;;  %v766_v59 = vld [vmem:[#allocation4 + $0x30] sm:$0xff] }
 0x29e   : > { %v724_v11 = vpop.xlane.xlu0 %723 }
 0x29f   : > { %755 = vst.msk [vmem:[#allocation3 + $0x18] sm:$0xff] %vm402_vm1, %v746_v61  ;;  %v744_v5 = vadd.f32 %v724_v11, %v712_v62 }
 0x2a1   : > { %753 = vst.msk [vmem:[#allocation3 + $0x8] sm:$0xff] %vm402_vm1, %v744_v5  ;;  %v764_v5 = vld [vmem:[#allocation4 + $0x20] sm:$0xff] }
 0x2a2   : > { %v727_v14 = vpop.xlane.xlu0 %726  ;;  %v944_v15 = vld [vmem:[#allocation3] sm:$0xff] }
 0x2a3   : > { %v745_v16 = vadd.f32 %v727_v14, %v713_v12  ;;  %1645 = vrcp.f32 %v944_v15 }
 0x2a5   : > { %754 = vst.msk [vmem:[#allocation3 + $0x10] sm:$0xff] %vm402_vm1, %v745_v16  ;;  %v767_v16 = vld [vmem:[#allocation4 + $0x38] sm:$0xff] }
 0x2a6   : > { %v947_v25 = vld [vmem:[#allocation3 + $0x18] sm:$0xff] }
 0x2a8   : > { %v733_v13 = vpop.xlane.xlu0 %732  ;;  %v945_v23 = vld [vmem:[#allocation3 + $0x8] sm:$0xff] }
 0x2a9   : > { %v747_v19 = vadd.f32 %v733_v13, %v715_v18  ;;  %1647 = vrcp.f32 %v945_v23  ;;  %v765_v23 = vld [vmem:[#allocation4 + $0x28] sm:$0xff] }
 0x2aa   : > { %1649 = vrcp.f32 %v947_v25 }
 0x2ab   : > { %756 = vst.msk [vmem:[#allocation3 + $0x20] sm:$0xff] %vm402_vm1, %v747_v19 }
 0x2ac   : > { %v739_v21 = vpop.xlane.xlu0 %738  ;;  %v946_v22 = vld [vmem:[#allocation3 + $0x10] sm:$0xff] }
 0x2ad   : > { %v749_v29 = vadd.f32 %v739_v21, %v717_v27  ;;  %1651 = vrcp.f32 %v946_v22 }
 0x2af   : > { %758 = vst.msk [vmem:[#allocation3 + $0x30] sm:$0xff] %vm402_vm1, %v749_v29 }
 0x2b0   : > { %v1646_v32 = vpop.eup %1645  ;;  %v736_v35 = vpop.xlane.xlu1 %735 }
 0x2b1   : > { %v748_v43 = vadd.f32 %v736_v35, %v716_v30  ;;  %962 = vperm.xlu1 %1604, %v1646_v32  }
 0x2b2   : > { %v948_v48 = vld [vmem:[#allocation3 + $0x20] sm:$0xff] }
 0x2b3   : > { %757 = vst.msk [vmem:[#allocation3 + $0x28] sm:$0xff] %vm402_vm1, %v748_v43  ;;  %1653 = vrcp.f32 %v948_v48 }
 0x2b4   : > { %v742_v60 = vpop.xlane.xlu1 %741  ;;  %v771_v34 = vpop.permute.xlu0 %770 }
 0x2b5   : > { %v750_v63 = vadd.f32 %v742_v60, %v718_v54  ;;  %v808_v50 = vmul.f32 %v771_v34, %v760_v44 }
 0x2b6   : > { %v1648_v3 = vpop.eup %1647  ;;  %v950_v4 = vld [vmem:[#allocation3 + $0x30] sm:$0xff] }
 0x2b7   : > { %759 = vst.msk [vmem:[#allocation3 + $0x38] sm:$0xff] %vm402_vm1, %v750_v63  ;;  %967 = vperm.xlu0 %1603, %v1648_v3   ;;  %1655 = vrcp.f32 %v950_v4  ;;  %v1650_v7 = vpop.eup %1649 }
 0x2b8   : > { %v776_v31 = vpop.permute.xlu1 %775  ;;  %v786_v41 = vpop.permute.xlu0 %785 }
 0x2b9   : > { %v811_v57 = vmul.f32 %v786_v41, %v763_v47  ;;  %v809_v11 = vmul.f32 %v776_v31, %v761_v52 }
 0x2ba   : > { %v1652_v8 = vpop.eup %1651  ;;  %v949_v9 = vld [vmem:[#allocation3 + $0x28] sm:$0xff] }
 0x2bb   : > { %972 = vperm.xlu1 %1604, %v1652_v8   ;;  %977 = vperm.xlu0 %1603, %v1650_v7   ;;  %1657 = vrcp.f32 %v949_v9 }
 0x2bc   : > { %v781_v37 = vpop.permute.xlu1 %780  ;;  %v796_v55 = vpop.permute.xlu0 %795 }
 0x2bd   : > { %v810_v46 = vmul.f32 %v781_v37, %v762_v42  ;;  %v813_v28 = vmul.f32 %v796_v55, %v765_v23  ;;  %v1457_v42 = vld [vmem:[%s2147_s4] ss:$0 sm:$0xff] }
 0x2be   : > { %v951_v10 = vld [vmem:[#allocation3 + $0x38] sm:$0xff] }
 0x2bf   : > { %1659 = vrcp.f32 %v951_v10 }
 0x2c0   : > { %v1654_v33 = vpop.eup %1653  ;;  %v791_v45 = vpop.permute.xlu1 %790 }
 0x2c1   : > { %982 = vperm.xlu1 %1604, %v1654_v33   ;;  %v806_v17 = vpop.permute.xlu0 %805  ;;  %v812_v13 = vmul.f32 %v791_v45, %v764_v5 }
 0x2c2   : > { %v815_v25 = vmul.f32 %v806_v17, %v767_v16 }
 0x2c4   : > { %v1656_v38 = vpop.eup %1655  ;;  %v801_v61 = vpop.permute.xlu1 %800 }
 0x2c5   : > { %992 = vperm.xlu1 %1604, %v1656_v38   ;;  %v814_v14 = vmul.f32 %v801_v61, %v766_v59 }
 0x2c8   : > { %v1658_v40 = vpop.eup %1657 }
 0x2c9   : > { %987 = vperm.xlu0 %1603, %v1658_v40  }
 0x2cc   : > { %v1660_v36 = vpop.eup %1659 }
 0x2cd   : > { %997 = vperm.xlu0 %1603, %v1660_v36  }
 0x2e8   : > { %v1553_v49 = vpop.f32.mrf.mxu1 }
 0x2e9   : > { %v911_v51 = vadd.f32 %v1553_v49, %v810_v46 }
 0x2ea   : > { %v878_v56 = vpop.f32.mrf.mxu1 }
 0x2eb   : > { %919 = vst.msk [vmem:[#allocation4 + $0x10] sm:$0xff] %vm419_vm0, %v911_v51  ;;  %v909_v58 = vadd.f32 %v878_v56, %v808_v50 }
 0x2ec   : > { %v1554_v62 = vpop.f32.mrf.mxu1 }
 0x2ed   : > { %917 = vst.msk [vmem:[#allocation4] sm:$0xff] %vm419_vm0, %v909_v58  ;;  %v912_v0 = vadd.f32 %v1554_v62, %v811_v57 }
 0x2ee   : > { %v881_v12 = vpop.f32.mrf.mxu1 }
 0x2ef   : > { %920 = vst.msk [vmem:[#allocation4 + $0x18] sm:$0xff] %vm419_vm0, %v912_v0  ;;  %v910_v15 = vadd.f32 %v881_v12, %v809_v11 }
 0x2f0   : > { %v1557_v18 = vpop.f32.mrf.mxu1 }
 0x2f1   : > { %918 = vst.msk [vmem:[#allocation4 + $0x8] sm:$0xff] %vm419_vm0, %v910_v15  ;;  %v915_v20 = vadd.f32 %v1557_v18, %v814_v14 }
 0x2f2   : > { %v894_v19 = vpop.f32.mrf.mxu1  ;;  %v938_v60 = vld [vmem:[#allocation4 + $0x10] sm:$0xff] }
 0x2f3   : > { %923 = vst.msk [vmem:[#allocation4 + $0x30] sm:$0xff] %vm419_vm0, %v915_v20  ;;  %v913_v27 = vadd.f32 %v894_v19, %v812_v13 }
 0x2f4   : > { %v1558_v21 = vpop.f32.mrf.mxu1  ;;  %v936_v35 = vld [vmem:[#allocation4] sm:$0xff] }
 0x2f5   : > { %921 = vst.msk [vmem:[#allocation4 + $0x20] sm:$0xff] %vm419_vm0, %v913_v27  ;;  %v916_v22 = vadd.f32 %v1558_v21, %v815_v25 }
 0x2f6   : > { %v897_v29 = vpop.f32.mrf.mxu1  ;;  %v939_v53 = vld [vmem:[#allocation4 + $0x18] sm:$0xff] }
 0x2f7   : > { %924 = vst.msk [vmem:[#allocation4 + $0x38] sm:$0xff] %vm419_vm0, %v916_v22  ;;  %v914_v30 = vadd.f32 %v897_v29, %v813_v28 }
 0x2f8   : > { %v937_v43 = vld [vmem:[#allocation4 + $0x8] sm:$0xff] }
 0x2f9   : > { %922 = vst.msk [vmem:[#allocation4 + $0x28] sm:$0xff] %vm419_vm0, %v914_v30 }
 0x2fa   : > { %v942_v40 = vld [vmem:[#allocation4 + $0x30] sm:$0xff] }
 0x2fc   : > { %v940_v6 = vld [vmem:[#allocation4 + $0x20] sm:$0xff] }
 0x2fe   : > { %v943_v36 = vld [vmem:[#allocation4 + $0x38] sm:$0xff] }
 0x300   : > { %v941_v7 = vld [vmem:[#allocation4 + $0x28] sm:$0xff] }
 0x32c   : > { %v963_v32 = vpop.permute.xlu1 %962 }
 0x32d   : > { %v1000_v24 = vmul.f32 %v963_v32, %v936_v35 }
 0x332   : > { %v968_v39 = vpop.permute.xlu0 %967 }
 0x333   : > { %v1001_v26 = vmul.f32 %v968_v39, %v937_v43 }
 0x335   : > { %v1012_v48 = vpack.c.bf16 %v1001_v26, %v1000_v24 }
 0x336   : > { %v978_v54 = vpop.permute.xlu0 %977  ;;  %v973_v63 = vpop.permute.xlu1 %972 }
 0x337   : > { %v1003_v1 = vmul.f32 %v978_v54, %v939_v53  ;;  %v1002_v2 = vmul.f32 %v973_v63, %v938_v60  ;;  %1563 = vmatprep.mubr.msk.bf16.mxu1 %vm419_vm0, %v1012_v48 }
 0x339   : > { %v1013_v3 = vpack.c.bf16 %v1003_v1, %v1002_v2 }
 0x33b   : > { %1564 = vmatmul.mubr.msk.bf16.vlgmr.msra.gmra.mxu1 %vm419_vm0, %v1013_v3 }
 0x33c   : > { %v983_v4 = vpop.permute.xlu1 %982 }
 0x33d   : > { %v1004_v9 = vmul.f32 %v983_v4, %v940_v6 }
 0x340   : > { %v993_v33 = vpop.permute.xlu1 %992 }
 0x341   : > { %v1006_v34 = vmul.f32 %v993_v33, %v942_v40 }
 0x344   : > { %v988_v8 = vpop.permute.xlu0 %987 }
 0x345   : > { %v1005_v10 = vmul.f32 %v988_v8, %v941_v7 }
 0x347   : > { %v1014_v38 = vpack.c.bf16 %v1005_v10, %v1004_v9 }
 0x348   : > { %v998_v31 = vpop.permute.xlu0 %997 }
 0x349   : > { %v1007_v37 = vmul.f32 %v998_v31, %v943_v36  ;;  %1567 = vmatprep.mubr.msk.bf16.mxu1 %vm419_vm0, %v1014_v38 }
 0x34b   : > { %v1015_v41 = vpack.c.bf16 %v1007_v37, %v1006_v34 }
 0x34d   : > { %1568 = vmatmul.mubr.msk.bf16.gmra.mxu1 %vm419_vm0, %v1015_v41 }
 0x3fb   : > { %v1565_v44 = vpop.f32.mrf.mxu1 }
 0x3fc   : > { %v1080_v45 = vadd.f32 %v1565_v44, %v1457_v42 }
 0x3fd   : > { %v1071_v46 = vpop.f32.mrf.mxu1 }
 0x3fe   : > { %v1072_v47 = vadd.f32 %v1457_v42, %v1071_v46  ;;  %v1110_v49 = vsel %vm419_vm0, %v1080_v45, 0.0 }
 0x3ff   : > { %1111 = vadd.xlane.f32.xlu0 %v1110_v49  ;;  %v1566_v50 = vpop.f32.mrf.mxu1 }
 0x400   : > { %v1083_v51 = vadd.f32 %v1566_v50, %v1457_v42  ;;  %v1104_v52 = vsel %vm419_vm0, %v1072_v47, 0.0 }
 0x401   : > { %v1074_v55 = vpop.f32.mrf.mxu1  ;;  %1105 = vadd.xlane.f32.xlu1 %v1104_v52 }
 0x402   : > { %v1075_v56 = vadd.f32 %v1457_v42, %v1074_v55  ;;  %v1113_v58 = vsel %vm419_vm0, %v1083_v51, 0.0 }
 0x404   : > { %v1107_v57 = vsel %vm419_vm0, %v1075_v56, 0.0 }
 0x405   : > { %1108 = vadd.xlane.f32.xlu0 %v1107_v57  ;;  %1114 = vadd.xlane.f32.xlu1 %v1113_v58 }
 0x40d   : > { %v1569_v59 = vpop.f32.mrf.mxu1 }
 0x40e   : > { %v1096_v0 = vadd.f32 %v1569_v59, %v1457_v42 }
 0x40f   : > { %v1087_v61 = vpop.f32.mrf.mxu1 }
 0x410   : > { %v1088_v62 = vadd.f32 %v1457_v42, %v1087_v61  ;;  %v1122_v17 = vsel %vm419_vm0, %v1096_v0, 0.0  ;;  %v2077_v61 = vld [vmem:[%s2148_s5] ss:$0 sm:$0xff] }
 0x411   : > { %v1570_v11 = vpop.f32.mrf.mxu1 }
 0x412   : > { %v1116_v5 = vsel %vm419_vm0, %v1088_v62, 0.0  ;;  %v1099_v15 = vadd.f32 %v1570_v11, %v1457_v42 }
 0x413   : > { %v1090_v12 = vpop.f32.mrf.mxu1  ;;  %1117 = vadd.xlane.f32.xlu0 %v1116_v5 }
 0x414   : > { %v1091_v14 = vadd.f32 %v1457_v42, %v1090_v12  ;;  %v1125_v18 = vsel %vm419_vm0, %v1099_v15, 0.0 }
 0x416   : > { %v1119_v16 = vsel %vm419_vm0, %v1091_v14, 0.0 }
 0x417   : > { %1120 = vadd.xlane.f32.xlu1 %v1119_v16  ;;  %1123 = vadd.xlane.f32.xlu0 %v1122_v17 }
 0x41b   : > { %1126 = vadd.xlane.f32.xlu1 %v1125_v18 }
 0x488   : > { %v1112_v13 = vpop.xlane.xlu0 %1111 }
 0x489   : > { %v1131_v20 = vmul.f32 0.03125, %v1112_v13 }
 0x48a   : > { %v1106_v23 = vpop.xlane.xlu1 %1105 }
 0x48b   : > { %v2028_v19 = vsub.f32 %v1080_v45, %v1131_v20  ;;  %v1129_v25 = vmul.f32 0.03125, %v1106_v23 }
 0x48d   : > { %v2030_v27 = vsub.f32 %v1072_v47, %v1129_v25  ;;  %v1147_v21 = vmul.f32 %v2028_v19, %v2028_v19 }
 0x48e   : > { %v1109_v28 = vpop.xlane.xlu0 %1108  ;;  %v1115_v22 = vpop.xlane.xlu1 %1114 }
 0x48f   : > { %v1130_v29 = vmul.f32 0.03125, %v1109_v28  ;;  %v1132_v30 = vmul.f32 0.03125, %v1115_v22  ;;  %v1159_v32 = vsel %vm419_vm0, %v1147_v21, 0.0  ;;  %v1145_v35 = vmul.f32 %v2030_v27, %v2030_v27 }
 0x490   : > { %1160 = vadd.xlane.f32.xlu0 %v1159_v32 }
 0x491   : > { %v2037_v39 = vsub.f32 %v1075_v56, %v1130_v29  ;;  %v2039_v43 = vsub.f32 %v1083_v51, %v1132_v30  ;;  %v1153_v24 = vsel %vm419_vm0, %v1145_v35, 0.0 }
 0x493   : > { %v1148_v26 = vmul.f32 %v2039_v43, %v2039_v43  ;;  %v1146_v53 = vmul.f32 %v2037_v39, %v2037_v39 }
 0x494   : > { %1154 = vadd.xlane.f32.xlu0 %v1153_v24 }
 0x495   : > { %v1162_v48 = vsel %vm419_vm0, %v1148_v26, 0.0  ;;  %v1156_v54 = vsel %vm419_vm0, %v1146_v53, 0.0 }
 0x496   : > { %1163 = vadd.xlane.f32.xlu1 %v1162_v48 }
 0x49a   : > { %1157 = vadd.xlane.f32.xlu1 %v1156_v54 }
 0x49c   : > { %v1118_v60 = vpop.xlane.xlu0 %1117 }
 0x49d   : > { %v1133_v63 = vmul.f32 0.03125, %v1118_v60 }
 0x49f   : > { %v2048_v1 = vsub.f32 %v1088_v62, %v1133_v63  ;;  %v1502_v62 = vld [vmem:[%s2072_s29 + $0x8] sm:$0xff]  }
 0x4a0   : > { %v1124_v2 = vpop.xlane.xlu0 %1123  ;;  %v1121_v3 = vpop.xlane.xlu1 %1120  ;;  %v1493_v26 = vunpack.c.h.bf16 %v1502_v62 }
 0x4a1   : > { %v1135_v4 = vmul.f32 0.03125, %v1124_v2  ;;  %v1134_v6 = vmul.f32 0.03125, %v1121_v3  ;;  %v1149_v7 = vmul.f32 %v2048_v1, %v2048_v1 }
 0x4a3   : > { %v2052_v8 = vsub.f32 %v1096_v0, %v1135_v4  ;;  %v2054_v9 = vsub.f32 %v1091_v14, %v1134_v6  ;;  %v1165_v10 = vsel %vm419_vm0, %v1149_v7, 0.0  ;;  %v2084_v0 = vld [vmem:[%s2149_s6] ss:$0 sm:$0xff]  ;;  %v1492_v14 = vunpack.c.l.bf16 %v1502_v62 }
 0x4a4   : > { %1166 = vadd.xlane.f32.xlu0 %v1165_v10  ;;  %v1127_v33 = vpop.xlane.xlu1 %1126 }
 0x4a5   : > { %v1136_v38 = vmul.f32 0.03125, %v1127_v33  ;;  %v1151_v40 = vmul.f32 %v2052_v8, %v2052_v8  ;;  %v1150_v36 = vmul.f32 %v2054_v9, %v2054_v9 }
 0x4a7   : > { %v2061_v31 = vsub.f32 %v1099_v15, %v1136_v38  ;;  %v1171_v34 = vsel %vm419_vm0, %v1151_v40, 0.0  ;;  %v1168_v37 = vsel %vm419_vm0, %v1150_v36, 0.0  ;;  %v1487_v15 = vld [vmem:[%s2072_s29] sm:$0xff]  }
 0x4a8   : > { %1172 = vadd.xlane.f32.xlu0 %v1171_v34  ;;  %1169 = vadd.xlane.f32.xlu1 %v1168_v37  ;;  %v1489_v4 = vunpack.c.h.bf16 %v1487_v15  ;;  %v1503_v37 = vld [vmem:[%s2072_s29 + $0x10] sm:$0xff]  }
 0x4a9   : > { %v1152_v41 = vmul.f32 %v2061_v31, %v2061_v31 }
 0x4ab   : > { %v1174_v42 = vsel %vm419_vm0, %v1152_v41, 0.0 }
 0x4ac   : > { %1175 = vadd.xlane.f32.xlu1 %v1174_v42 }
 0x519   : > { %v1161_v44 = vpop.xlane.xlu0 %1160 }
 0x51a   : > { %v1179_v45 = vmul.f32 0.03125, %v1161_v44  ;;  %v1496_v44 = vunpack.c.l.bf16 %v1503_v37 }
 0x51c   : > { %v1187_v46 = vadd.f32 1e-05, %v1179_v45 }
 0x51d   : > { %v1155_v47 = vpop.xlane.xlu0 %1154 }
 0x51e   : > { %1661 = vrsqrt.f32 %v1187_v46  ;;  %v1177_v49 = vmul.f32 0.03125, %v1155_v47  ;;  %v1504_v47 = vld [vmem:[%s2072_s29 + $0x18] sm:$0xff]  }
 0x51f   : > { %v1164_v50 = vpop.xlane.xlu1 %1163 }
 0x520   : > { %v1185_v51 = vadd.f32 1e-05, %v1177_v49  ;;  %v1180_v52 = vmul.f32 0.03125, %v1164_v50 }
 0x522   : > { %1663 = vrsqrt.f32 %v1185_v51  ;;  %v1188_v55 = vadd.f32 1e-05, %v1180_v52 }
 0x523   : > { %v1158_v56 = vpop.xlane.xlu1 %1157 }
 0x524   : > { %1665 = vrsqrt.f32 %v1188_v55  ;;  %v1178_v57 = vmul.f32 0.03125, %v1158_v56  ;;  %v1500_v56 = vunpack.c.l.bf16 %v1504_v47 }
 0x526   : > { %v1186_v58 = vadd.f32 1e-05, %v1178_v57 }
 0x528   : > { %1667 = vrsqrt.f32 %v1186_v58 }
 0x52b   : > { %v1662_v59 = vpop.eup %1661 }
 0x52c   : > { %v1203_v11 = vmul.f32 %v1662_v59, %v2028_v19  ;;  %v1488_v19 = vunpack.c.l.bf16 %v1487_v15  ;;  %v1497_v59 = vunpack.c.h.bf16 %v1503_v37 }
 0x52d   : > { %v1167_v5 = vpop.xlane.xlu0 %1166 }
 0x52e   : > { %v1217_v12 = vmul.f32 %v2077_v61, %v1203_v11  ;;  %v1181_v16 = vmul.f32 0.03125, %v1167_v5 }
 0x52f   : > { %v1664_v17 = vpop.eup %1663 }
 0x530   : > { %v1231_v18 = vadd.f32 %v2084_v0, %v1217_v12  ;;  %v1201_v13 = vmul.f32 %v1664_v17, %v2030_v27  ;;  %v1189_v20 = vadd.f32 1e-05, %v1181_v16  ;;  %v1501_v12 = vunpack.c.h.bf16 %v1504_v47 }
 0x531   : > { %v1666_v23 = vpop.eup %1665  ;;  %v1173_v25 = vpop.xlane.xlu0 %1172 }
 0x532   : > { %v1170_v21 = vpop.xlane.xlu1 %1169  ;;  %v1255_v28 = vadd.f32 %v1492_v14, %v1231_v18  ;;  %v1215_v22 = vmul.f32 %v2077_v61, %v1201_v13  ;;  %v1204_v29 = vmul.f32 %v1666_v23, %v2039_v43  ;;  %1669 = vrsqrt.f32 %v1189_v20 }
 0x533   : > { %v1183_v30 = vmul.f32 0.03125, %v1173_v25  ;;  %v1182_v27 = vmul.f32 0.03125, %v1170_v21 }
 0x534   : > { %v1480_v32 = vpack.c.bf16 %v1255_v28, %v1255_v28  ;;  %v1229_v35 = vadd.f32 %v2084_v0, %v1215_v22  ;;  %v1218_v24 = vmul.f32 %v2077_v61, %v1204_v29 }
 0x535   : > { %v1668_v48 = vpop.eup %1667  ;;  %v1191_v53 = vadd.f32 1e-05, %v1183_v30  ;;  %v1190_v43 = vadd.f32 1e-05, %v1182_v27 }
 0x536   : > { %v1176_v54 = vpop.xlane.xlu1 %1175  ;;  %1296 = vst.msk [vmem:[%s2096_s13 + $0x8] sm:$0xf] %vm1293_vm3, %v1480_v32  ;;  %v1253_v60 = vadd.f32 %v1488_v19, %v1229_v35  ;;  %v1232_v63 = vadd.f32 %v2084_v0, %v1218_v24  ;;  %v1202_v2 = vmul.f32 %v1668_v48, %v2037_v39 }
 0x537   : > { %v1184_v3 = vmul.f32 0.03125, %v1176_v54  ;;  %1671 = vrsqrt.f32 %v1191_v53 }
 0x538   : > { %v1478_v6 = vpack.c.bf16 %v1253_v60, %v1253_v60  ;;  %v1256_v7 = vadd.f32 %v1493_v26, %v1232_v63  ;;  %v1216_v10 = vmul.f32 %v2077_v61, %v1202_v2  ;;  %1673 = vrsqrt.f32 %v1190_v43 }
 0x539   : > { %v1192_v33 = vadd.f32 1e-05, %v1184_v3 }
 0x53a   : > { %1294 = vst.msk [vmem:[%s2096_s13] sm:$0xf] %vm1293_vm3, %v1478_v6  ;;  %v1481_v38 = vpack.c.bf16 %v1256_v7, %v1256_v7  ;;  %v1230_v40 = vadd.f32 %v2084_v0, %v1216_v10 }
 0x53b   : > { %1675 = vrsqrt.f32 %v1192_v33 }
 0x53c   : > { %1297 = vst.msk [vmem:[%s2096_s13 + $0xc] sm:$0xf] %vm1293_vm3, %v1481_v38  ;;  %v1254_v39 = vadd.f32 %v1489_v4, %v1230_v40 }
 0x53e   : > { %v1479_v36 = vpack.c.bf16 %v1254_v39, %v1254_v39 }
 0x53f   : > { %v1670_v34 = vpop.eup %1669 }
 0x540   : > { %1295 = vst.msk [vmem:[%s2096_s13 + $0x4] sm:$0xf] %vm1293_vm3, %v1479_v36  ;;  %v1205_v41 = vmul.f32 %v1670_v34, %v2048_v1 }
 0x542   : > { %v1219_v42 = vmul.f32 %v2077_v61, %v1205_v41 }
 0x544   : > { %v1672_v45 = vpop.eup %1671  ;;  %v1233_v46 = vadd.f32 %v2084_v0, %v1219_v42 }
 0x545   : > { %v1674_v49 = vpop.eup %1673  ;;  %v1207_v50 = vmul.f32 %v1672_v45, %v2052_v8 }
 0x546   : > { %v1257_v51 = vadd.f32 %v1496_v44, %v1233_v46  ;;  %v1206_v52 = vmul.f32 %v1674_v49, %v2054_v9 }
 0x547   : > { %v1221_v55 = vmul.f32 %v2077_v61, %v1207_v50 }
 0x548   : > { %v1676_v57 = vpop.eup %1675  ;;  %v1482_v1 = vpack.c.bf16 %v1257_v51, %v1257_v51  ;;  %v1220_v58 = vmul.f32 %v2077_v61, %v1206_v52 }
 0x549   : > { %v1235_v62 = vadd.f32 %v2084_v0, %v1221_v55  ;;  %v1208_v11 = vmul.f32 %v1676_v57, %v2061_v31 }
 0x54a   : > { %1298 = vst.msk [vmem:[%s2096_s13 + $0x10] sm:$0xf] %vm1293_vm3, %v1482_v1  ;;  %v1234_v8 = vadd.f32 %v2084_v0, %v1220_v58 }
 0x54b   : > { %v1259_v9 = vadd.f32 %v1500_v56, %v1235_v62  ;;  %v1222_v5 = vmul.f32 %v2077_v61, %v1208_v11 }
 0x54c   : > { %v1258_v14 = vadd.f32 %v1497_v59, %v1234_v8 }
 0x54d   : > { %v1484_v15 = vpack.c.bf16 %v1259_v9, %v1259_v9  ;;  %v1236_v16 = vadd.f32 %v2084_v0, %v1222_v5 }
 0x54e   : > { %v1483_v17 = vpack.c.bf16 %v1258_v14, %v1258_v14 }
 0x54f   : > { %1300 = vst.msk [vmem:[%s2096_s13 + $0x18] sm:$0xf] %vm1293_vm3, %v1484_v15  ;;  %v1260_v18 = vadd.f32 %v1501_v12, %v1236_v16 }
 0x550   : > { %1299 = vst.msk [vmem:[%s2096_s13 + $0x14] sm:$0xf] %vm1293_vm3, %v1483_v17 }
 0x551   : > { %v1485_v13 = vpack.c.bf16 %v1260_v18, %v1260_v18 }
 0x553   : > { %1301 = vst.msk [vmem:[%s2096_s13 + $0x1c] sm:$0xf] %vm1293_vm3, %v1485_v13 }
 0x554 PF: > { %s17_s26 = sadd.s32 1, %s1699_s26   ;;  %s2151_s24 = smov %s1695_s25 }
 0x555   : > { %p14_p5 = scmp.ge.s32.totalorder %s17_s26, 6   ;;  %s2152_s25 = smov %s2154_s27 }
 0x557   :  { %16 = sbr.rel (!%p14_p5) target bundleno = 2 (0x2), region = 92 }

// kernel: gmsf_forward.20
= control target key start
LH: loop header
LB: loop body
LE: loop exit
PB: predicated region body
PF: predicated region fallthrough
CT: control target
= control target key end

     0   :  { %s1093_s15 = smov 0   ;;  %s1095_s16 = smov 0   ;;  %s1205_s0 = inlined_call_operand.vmem [shape: bf16[2,64,32], index: 0, kind: input, shape index: {}]   ;;  %s1206_s1 = inlined_call_operand.vmem [shape: bf16[2,64,32], index: 1, kind: input, shape index: {}]   ;;  %s1207_s2 = inlined_call_operand.vmem [shape: f32[2,3,64], index: 2, kind: input, shape index: {}]   ;;  %s1208_s3 = inlined_call_operand.vmem [shape: f32[2,3,64], index: 3, kind: input, shape index: {}]   ;;  %s1209_s4 = inlined_call_operand.vmem [shape: f32[2,3,64], index: 4, kind: output, shape index: {}]  }
   0x1   :  { %s1097_s17 = smov 0  }
   0x2 LB: > { %s33_s18 = sadd.s32 1, %s1059_s16  ;;  %p869_p0 = scmp.ge.s32.totalorder %s1063_s17, 1  ;;  %s1063_s17 = sphi %s1097_s17, %s14_s17   ;;  %s1059_s16 = sphi %s1095_s16, %s1211_s16   ;;  %s1055_s15 = sphi %s1093_s15, %s1210_s15  }
   0x3   : > { %p35_p1 = scmp.ge.s32.totalorder %s33_s18, 2  ;;  %p235_p2 = scmp.lt.s32.totalorder %s1063_s17, 3 }
   0x5   : > { %s1213_s18 = smov (%p35_p1, %s33_s18), 0  ;;  %p236_p3 = pnand %p869_p0, %p235_p2 }
   0x6   : > { %p291_p4 = scmp.lt.s32.totalorder (!%p236_p3), %s1055_s15, 1 }
   0x7   : > { %239 = sbr.rel (%p236_p3) target bundleno = 539 (0x21b), region = 36 }
   0xc   : > { %s1215_s15 = smov (!%p291_p4, %s1055_s15), 1  ;;  %vm397_vm0 = vcmask 257024   ;;  %vm462_vm1 = vcmask 261120   ;;  %vm336_vm2 = vcmask 516096   ;;  %v1065_v40 = vmov -inf  }
   0xd   : > { %s901_s19 = sshll.u32 %s1215_s15, 5  ;;  %337 = vst.msk [vmem:[#allocation2] sm:$0x1] %vm336_vm2, %v1065_v40  ;;  %v1066_v41 = vmov 0.0   ;;  %vm339_vm3 = vcmask 518144   ;;  %vm1067_vm4 = vmmov 0  }
   0xe   : > { %s298_s22 = scalar_lea.vmem %s1205_s0, %s901_s19  ;;  %s1120_s25 = scalar_lea.vmem %s1206_s1, %s901_s19  ;;  %338 = vst.msk [vmem:[#allocation3] sm:$0x1] %vm336_vm2, %v1066_v41  ;;  %963 = vmatprep.subr.mxu1 %v1066_v41  ;;  %979 = vmatprep.mubr.msk.f32.mxu1 %vm1067_vm4, %v1066_v41  ;;  %vm553_vm5 = vcmask 523264  }
   0xf   : > { %v929_v0 = vld [vmem:[%s298_s22 + $0x18] sm:$0xff]   ;;  %v928_v1 = vld [vmem:[%s298_s22 + $0x10] sm:$0xff]   ;;  %v927_v2 = vld [vmem:[%s298_s22 + $0x8] sm:$0xff]   ;;  %340 = vst.msk [vmem:[#allocation4] sm:$0x7] %vm339_vm3, %v1066_v41  ;;  %s1174_s26 = sshll.u32 %s1215_s15, 2 }
  0x10   : > { %v925_v3 = vunpack.c.l.bf16 %v929_v0  ;;  %v926_v4 = vunpack.c.h.bf16 %v929_v0  ;;  %v921_v5 = vunpack.c.l.bf16 %v928_v1  ;;  %v922_v6 = vunpack.c.h.bf16 %v928_v1  ;;  %v912_v7 = vld [vmem:[%s298_s22] sm:$0xff]   ;;  %v1018_v37 = vld [vmem:[%s1120_s25 + $0x8] sm:$0xff]   ;;  %v1019_v38 = vld [vmem:[%s1120_s25 + $0x10] sm:$0xff]   ;;  %s316_s29 = scalar_lea.vmem %s1207_s2, %s1174_s26  ;;  %s323_s6 = scalar_lea.vmem %s1208_s3, %s1174_s26 }
  0x11   : > { %v917_v8 = vunpack.c.l.bf16 %v927_v2  ;;  %v918_v9 = vunpack.c.h.bf16 %v927_v2  ;;  %v913_v10 = vunpack.c.l.bf16 %v912_v7  ;;  %v914_v11 = vunpack.c.h.bf16 %v912_v7  ;;  %v1017_v12 = vld [vmem:[%s1120_s25] sm:$0xff]   ;;  %v1020_v39 = vld [vmem:[%s1120_s25 + $0x18] sm:$0xff]   ;;  %s330_s9 = scalar_lea.vmem %s1209_s4, %s1174_s26 }
  0x12   : > { %v363_v13 = vmul.f32 0.17677669, %v925_v3  ;;  %v364_v14 = vmul.f32 0.17677669, %v926_v4  ;;  %v361_v15 = vmul.f32 0.17677669, %v921_v5  ;;  %955 = vmatprep.mubr.msk.bf16.mxu0 %vm462_vm1, %v1017_v12  ;;  %v580_v3 = vlaneseq }
  0x13   : > { %v362_v16 = vmul.f32 0.17677669, %v922_v6  ;;  %v359_v17 = vmul.f32 0.17677669, %v917_v8  ;;  %v360_v18 = vmul.f32 0.17677669, %v918_v9 }
  0x14   : > { %v909_v19 = vpack.c.bf16 %v363_v13, %v363_v13  ;;  %v910_v20 = vpack.c.bf16 %v364_v14, %v364_v14  ;;  %v907_v21 = vpack.c.bf16 %v361_v15, %v361_v15  ;;  %v357_v22 = vmul.f32 0.17677669, %v913_v10  ;;  %v552_v8 = vld [vmem:[#allocation2] sm:$0x1] }
  0x15   : > { %v908_v23 = vpack.c.bf16 %v362_v16, %v362_v16  ;;  %v905_v24 = vpack.c.bf16 %v359_v17, %v359_v17  ;;  %v906_v25 = vpack.c.bf16 %v360_v18, %v360_v18  ;;  %v358_v26 = vmul.f32 0.17677669, %v914_v11 }
  0x16   : > { %404 = vst.msk [vmem:[#allocation5 + $0x18] sm:$0xf] %vm397_vm0, %v909_v19  ;;  %405 = vst.msk [vmem:[#allocation5 + $0x1c] sm:$0xf] %vm397_vm0, %v910_v20  ;;  %v903_v27 = vpack.c.bf16 %v357_v22, %v357_v22  ;;  %v581_v6 = vshrl.u32 %v580_v3, 7 }
  0x17   : > { %402 = vst.msk [vmem:[#allocation5 + $0x10] sm:$0xf] %vm397_vm0, %v907_v21  ;;  %403 = vst.msk [vmem:[#allocation5 + $0x14] sm:$0xf] %vm397_vm0, %v908_v23  ;;  %v904_v28 = vpack.c.bf16 %v358_v26, %v358_v26 }
  0x18   : > { %400 = vst.msk [vmem:[#allocation5 + $0x8] sm:$0xf] %vm397_vm0, %v905_v24  ;;  %401 = vst.msk [vmem:[#allocation5 + $0xc] sm:$0xf] %vm397_vm0, %v906_v25  ;;  %v582_v10 = vsub.s32 0, %v581_v6 }
  0x19   : > { %398 = vst.msk [vmem:[#allocation5] sm:$0xf] %vm397_vm0, %v903_v27  ;;  %399 = vst.msk [vmem:[#allocation5 + $0x4] sm:$0xf] %vm397_vm0, %v904_v28 }
  0x1d   : > { %v1013_v29 = vld [vmem:[#allocation5 + $0x18] sm:$0xff]  }
  0x1e   : > { %v1014_v30 = vld [vmem:[#allocation5 + $0x10] sm:$0xff]   ;;  %982 = vmatprep.subr.msk.bf16.mxu0 %vm462_vm1, %v1013_v29  ;;  %v485_v31 = vsel %vm462_vm1, %v1013_v29, 0 }
  0x1f   : > { %948 = vmatpush3.bf16.xpose.msra.mxu0 %v485_v31  ;;  %v482_v32 = vsel %vm462_vm1, %v1014_v30, 0  ;;  %v1015_v33 = vld [vmem:[#allocation5 + $0x8] sm:$0xff]  }
  0x20   : > { %983 = vmatprep.subr.msk.bf16.mxu0 %vm462_vm1, %v1014_v30  ;;  %v479_v34 = vsel %vm462_vm1, %v1015_v33, 0  ;;  %v1016_v35 = vld [vmem:[#allocation5] sm:$0xff]  }
  0x21   : > { %v476_v36 = vsel %vm462_vm1, %v1016_v35, 0 }
  0x27   : > { %950 = vmatpush3.bf16.xpose.msra.mxu0 %v482_v32 }
  0x28   : > { %984 = vmatprep.subr.msk.bf16.mxu0 %vm462_vm1, %v1015_v33 }
  0x2f   : > { %952 = vmatpush3.bf16.xpose.msra.mxu0 %v479_v34 }
  0x30   : > { %985 = vmatprep.subr.msk.bf16.mxu0 %vm462_vm1, %v1016_v35 }
  0x37   : > { %954 = vmatpush3.bf16.xpose.msra.mxu0 %v476_v36 }
  0x3e   : > { %956 = vmatmul.mubr.msk.bf16.vlgmr.msra.gmra.mxu0 %vm462_vm1, %v1018_v37 }
  0x3f   : > { %959 = vmatprep.mubr.msk.bf16.mxu0 %vm462_vm1, %v1019_v38 }
  0x46   : > { %960 = vmatmul.mubr.msk.bf16.gmra.mxu0 %vm462_vm1, %v1020_v39 }
  0xfe   : > { %v957_v42 = vpop.f32.mrf.mxu0 }
  0xff   : > { %v556_v55 = vsel %vm553_vm5, %v957_v42, -inf }
 0x100   : > { %v521_v43 = vpop.f32.mrf.mxu0 }
 0x101   : > { %v554_v56 = vsel %vm553_vm5, %v521_v43, -inf }
 0x102   : > { %v958_v44 = vpop.f32.mrf.mxu0 }
 0x103   : > { %v557_v49 = vsel %vm553_vm5, %v958_v44, -inf }
 0x104   : > { %v524_v45 = vpop.f32.mrf.mxu0 }
 0x105   : > { %v555_v57 = vsel %vm553_vm5, %v524_v45, -inf }
 0x106   : > { %v961_v46 = vpop.f32.mrf.mxu0 }
 0x107   : > { %v562_v50 = vsel %vm553_vm5, %v961_v46, -inf }
 0x108   : > { %v537_v47 = vpop.f32.mrf.mxu0  ;;  %v563_v59 = vmax.f32 %v556_v55, %v562_v50 }
 0x109   : > { %v558_v51 = vsel %vm553_vm5, %v537_v47, -inf }
 0x10a   : > { %v962_v48 = vpop.f32.mrf.mxu0  ;;  %v559_v60 = vmax.f32 %v554_v56, %v558_v51 }
 0x10b   : > { %v564_v52 = vsel %vm553_vm5, %v962_v48, -inf }
 0x10c   : > { %v565_v53 = vmax.f32 %v557_v49, %v564_v52  ;;  %v540_v54 = vpop.f32.mrf.mxu0 }
 0x10d   : > { %v560_v58 = vsel %vm553_vm5, %v540_v54, -inf }
 0x10e   : > { %v561_v61 = vmax.f32 %v555_v57, %v560_v58  ;;  %v567_v62 = vmax.f32 %v563_v59, %v565_v53  ;;  %v643_v59 = vld [vmem:[%s316_s29] sm:$0x7] }
 0x110   : > { %v566_v63 = vmax.f32 %v559_v60, %v561_v61 }
 0x112   : > { %v568_v0 = vmax.f32 %v566_v63, %v567_v62  ;;  %v609_v62 = vld [vmem:[#allocation3] sm:$0x1] }
 0x114   : > { %v569_v1 = vrot.slane %v568_v0, 4 }
 0x116   : > { %v570_v2 = vmax.f32 %v568_v0, %v569_v1 }
 0x118   : > { %v571_v4 = vrot.slane %v570_v2, 2 }
 0x11a   : > { %v572_v5 = vmax.f32 %v570_v2, %v571_v4  ;;  %v635_v4 = vld [vmem:[#allocation4] sm:$0x7] }
 0x11c   : > { %v573_v7 = vrot.slane %v572_v5, 1 }
 0x11e   : > { %v574_v9 = vmax.f32 %v572_v5, %v573_v7 }
 0x120   : > { %v575_v11 = vmax.f32 %v552_v8, %v574_v9  ;;  %v734_v9 = vld [vmem:[%s323_s6] sm:$0x7] }
 0x122   : > { %v576_v12 = vsub.f32 %v552_v8, %v575_v11  ;;  %v583_v13 = vrot.slane %v575_v11, %v582_v10  ;;  %720 = vst.msk [vmem:[#allocation2] sm:$0x1] %vm336_vm2, %v575_v11 }
 0x124   : > { %v577_v14 = vmul.f32 1.442695, %v576_v12  ;;  %v585_v15 = vsub.f32 %v521_v43, %v583_v13  ;;  %v586_v16 = vsub.f32 %v524_v45, %v583_v13  ;;  %v587_v17 = vsub.f32 %v957_v42, %v583_v13 }
 0x125   : > { %v588_v18 = vsub.f32 %v958_v44, %v583_v13  ;;  %v589_v19 = vsub.f32 %v537_v47, %v583_v13  ;;  %v590_v20 = vsub.f32 %v540_v54, %v583_v13  ;;  %v592_v25 = vsub.f32 %v962_v48, %v583_v13 }
 0x126   : > { %v593_v21 = vmul.f32 1.442695, %v585_v15  ;;  %v595_v22 = vmul.f32 1.442695, %v586_v16  ;;  %v597_v23 = vmul.f32 1.442695, %v587_v17  ;;  %1021 = vpow2.f32 %v577_v14 }
 0x127   : > { %v599_v24 = vmul.f32 1.442695, %v588_v18  ;;  %v591_v26 = vsub.f32 %v961_v46, %v583_v13  ;;  %v601_v27 = vmul.f32 1.442695, %v589_v19  ;;  %v603_v28 = vmul.f32 1.442695, %v590_v20 }
 0x128   : > { %1023 = vpow2.f32 %v593_v21  ;;  %v607_v29 = vmul.f32 1.442695, %v592_v25 }
 0x129   : > { %1025 = vpow2.f32 %v595_v22  ;;  %v605_v30 = vmul.f32 1.442695, %v591_v26 }
 0x12a   : > { %1027 = vpow2.f32 %v597_v23 }
 0x12b   : > { %1029 = vpow2.f32 %v599_v24 }
 0x12c   : > { %1031 = vpow2.f32 %v601_v27 }
 0x12d   : > { %1033 = vpow2.f32 %v603_v28 }
 0x12e   : > { %1035 = vpow2.f32 %v607_v29 }
 0x12f   : > { %1037 = vpow2.f32 %v605_v30 }
 0x133   : > { %v1022_v31 = vpop.eup %1021 }
 0x134   : > { %v640_v33 = vrot.slane %v1022_v31, %v582_v10  ;;  %v610_v1 = vmul.f32 %v1022_v31, %v609_v62 }
 0x135   : > { %v1024_v32 = vpop.eup %1023 }
 0x136   : > { %v1026_v34 = vpop.eup %1025  ;;  %v611_v35 = vsel %vm553_vm5, %v1024_v32, 0.0  ;;  %v642_v5 = vmul.f32 %v640_v33, %v635_v4 }
 0x137   : > { %v1028_v36 = vpop.eup %1027  ;;  %v612_v37 = vsel %vm553_vm5, %v1026_v34, 0.0 }
 0x138   : > { %v1030_v38 = vpop.eup %1029  ;;  %v613_v39 = vadd.f32 %v612_v37, %v611_v35  ;;  %v614_v40 = vsel %vm553_vm5, %v1028_v36, 0.0 }
 0x139   : > { %v1032_v42 = vpop.eup %1031  ;;  %v616_v45 = vsel %vm553_vm5, %v1030_v38, 0.0 }
 0x13a   : > { %v615_v43 = vadd.f32 %v614_v40, %v613_v39  ;;  %v1034_v44 = vpop.eup %1033  ;;  %v618_v48 = vsel %vm553_vm5, %v1032_v42, 0.0 }
 0x13b   : > { %v1036_v46 = vpop.eup %1035  ;;  %v620_v51 = vsel %vm553_vm5, %v1034_v44, 0.0 }
 0x13c   : > { %v617_v47 = vadd.f32 %v616_v45, %v615_v43  ;;  %964 = vmatpush3.msra.mxu1 %v1036_v46  ;;  %v1038_v49 = vpop.eup %1037  ;;  %v624_v55 = vsel %vm553_vm5, %v1036_v46, 0.0 }
 0x13d   : > { %965 = vmatprep.subr.mxu1 %v1066_v41  ;;  %v622_v53 = vsel %vm553_vm5, %v1038_v49, 0.0 }
 0x13e   : > { %v619_v50 = vadd.f32 %v618_v48, %v617_v47  ;;  %966 = vmatpush3.msra.mxu1 %v1038_v49 }
 0x13f   : > { %967 = vmatprep.subr.mxu1 %v1066_v41 }
 0x140   : > { %v621_v52 = vadd.f32 %v620_v51, %v619_v50  ;;  %968 = vmatpush3.msra.mxu1 %v1034_v44 }
 0x141   : > { %969 = vmatprep.subr.mxu1 %v1066_v41 }
 0x142   : > { %v623_v54 = vadd.f32 %v622_v53, %v621_v52  ;;  %970 = vmatpush3.msra.mxu1 %v1032_v42 }
 0x143   : > { %971 = vmatprep.subr.mxu1 %v1066_v41 }
 0x144   : > { %v625_v56 = vadd.f32 %v624_v55, %v623_v54  ;;  %972 = vmatpush3.msra.mxu1 %v1030_v38 }
 0x145   : > { %973 = vmatprep.subr.mxu1 %v1066_v41 }
 0x146   : > { %v626_v57 = vrot.slane %v625_v56, 4  ;;  %974 = vmatpush3.msra.mxu1 %v1028_v36 }
 0x147   : > { %975 = vmatprep.subr.mxu1 %v1066_v41 }
 0x148   : > { %v627_v58 = vadd.f32 %v626_v57, %v625_v56  ;;  %976 = vmatpush3.msra.mxu1 %v1026_v34 }
 0x149   : > { %977 = vmatprep.subr.mxu1 %v1066_v41 }
 0x14a   : > { %v628_v60 = vrot.slane %v627_v58, 2  ;;  %978 = vmatpush3.msra.mxu1 %v1024_v32 }
 0x14b   : > { %980 = vmatmul.mubr.msk.f32.vlgmr.msra.gmra.mxu1 %vm553_vm5, %v643_v59 }
 0x14c   : > { %v629_v61 = vadd.f32 %v628_v60, %v627_v58 }
 0x14e   : > { %v630_v63 = vrot.slane %v629_v61, 1 }
 0x150   : > { %v631_v0 = vadd.f32 %v630_v63, %v629_v61 }
 0x152   : > { %v632_v2 = vadd.f32 %v631_v0, %v610_v1 }
 0x154   : > { %634 = vst.msk [vmem:[#allocation3] sm:$0x1] %vm336_vm2, %v632_v2 }
 0x15b   : > { %v898_v3 = vld [vmem:[#allocation3] ss:$0 sm:$0xff] }
 0x15c   : > { %1039 = vrcp.f32 %v898_v3 }
 0x169   : > { %v1040_v8 = vpop.eup %1039 }
 0x20b   : > { %v713_v6 = vpop.f32.mrf.mxu1 }
 0x20c   : > { %v717_v7 = vadd.f32 %v713_v6, %v642_v5 }
 0x20d   : > { %v981_v41 = vpop.f32.mrf.mxu1 }
 0x20e   : > { %719 = vst.msk [vmem:[#allocation4] sm:$0x7] %vm339_vm3, %v717_v7 }
 0x215   : > { %v724_v10 = vld [vmem:[#allocation4] sm:$0x7] }
 0x216   : > { %v733_v11 = vmul.f32 %v1040_v8, %v724_v10 }
 0x218   : > { %v735_v12 = vsub.f32 %v733_v11, %v734_v9 }
 0x21a   : > { %736 = vst.msk [vmem:[%s330_s9] sm:$0x7] %vm339_vm3, %v735_v12 }
 0x21b PF: > { %s14_s17 = sadd.s32 1, %s1063_s17   ;;  %s1210_s15 = smov %s1059_s16 }
 0x21c   : > { %p11_p5 = scmp.ge.s32.totalorder %s14_s17, 4   ;;  %s1211_s16 = smov %s1213_s18 }
 0x21e   :  { %13 = sbr.rel (!%p11_p5) target bundleno = 2 (0x2), region = 83 }

// kernel: gmsf_forward.15
= control target key start
LH: loop header
LB: loop body
LE: loop exit
PB: predicated region body
PF: predicated region fallthrough
CT: control target
= control target key end

     0   :  { %s2601_s17 = smov 0   ;;  %s2603_s18 = smov 0   ;;  %s3350_s0 = inlined_call_operand.vmem [shape: bf16[4,64,32], index: 0, kind: input, shape index: {}]   ;;  %s3351_s1 = inlined_call_operand.vmem [shape: bf16[4,64,32], index: 1, kind: input, shape index: {}]   ;;  %s3352_s2 = inlined_call_operand.vmem [shape: bf16[4,64,64], index: 2, kind: input, shape index: {}]   ;;  %s3353_s3 = inlined_call_operand.vmem [shape: f32[32,32], index: 3, kind: input, shape index: {}]   ;;  %s3354_s4 = inlined_call_operand.vmem [shape: f32[1,32], index: 4, kind: input, shape index: {}]   ;;  %s3355_s5 = inlined_call_operand.vmem [shape: f32[1,32], index: 5, kind: input, shape index: {}]   ;;  %s3356_s6 = inlined_call_operand.vmem [shape: f32[1,32], index: 6, kind: input, shape index: {}]   ;;  %s3357_s7 = inlined_call_operand.vmem [shape: f32[64,256], index: 7, kind: input, shape index: {}]   ;;  %s3358_s8 = inlined_call_operand.vmem [shape: f32[256,32], index: 8, kind: input, shape index: {}]   ;;  %s3359_s9 = inlined_call_operand.vmem [shape: f32[1,32], index: 9, kind: input, shape index: {}]   ;;  %s3360_s10 = inlined_call_operand.vmem [shape: f32[1,32], index: 10, kind: input, shape index: {}]   ;;  %s3361_s11 = inlined_call_operand.vmem [shape: bf16[4,64,32], index: 11, kind: output, shape index: {}]  }
   0x1   :  { %s2605_s19 = smov 0  }
   0x2 LB: > { %s40_s20 = sadd.s32 1, %s2531_s18  ;;  %p2157_p0 = scmp.ge.s32.totalorder %s2535_s19, 1  ;;  %s2535_s19 = sphi %s2605_s19, %s21_s19   ;;  %s2531_s18 = sphi %s2603_s18, %s3363_s18   ;;  %s2527_s17 = sphi %s2601_s17, %s3362_s17  }
   0x3   : > { %p42_p1 = scmp.ge.s32.totalorder %s40_s20, 4  ;;  %p399_p2 = scmp.lt.s32.totalorder %s2535_s19, 5 }
   0x5   : > { %s3365_s20 = smov (%p42_p1, %s40_s20), 0  ;;  %p400_p3 = pnand %p2157_p0, %p399_p2 }
   0x6   : > { %p466_p4 = scmp.lt.s32.totalorder (!%p400_p3), %s2527_s17, 3  ;;  %s2540_s28 = smov (!%p400_p3), 96  }
   0x7   : > { %403 = sbr.rel (%p400_p3) target bundleno = 2122 (0x84a), region = 64 }
   0xc   : > { %s3367_s17 = smov (!%p466_p4, %s2527_s17), 3  ;;  %vm527_vm0 = vcmask 261120   ;;  %vm510_vm1 = vcmask 7168   ;;  %v2537_v12 = vmov -inf   ;;  %vm690_vm2 = vcmask 523264  }
   0xd   : > { %s2619_s21 = sshll.u32 %s3367_s17, 5  ;;  %513 = vst.msk [vmem:[#allocation2 + $0x10] sm:$0xff] %vm510_vm1, %v2537_v12  ;;  %511 = vst.msk [vmem:[#allocation2] sm:$0xff] %vm510_vm1, %v2537_v12  ;;  %v2538_v26 = vmov 0   ;;  %v2539_v30 = vmov 0.0   ;;  %vm2018_vm3 = vcmask 257024  }
   0xe   : > { %s493_s24 = scalar_lea.vmem %s3352_s2, %s2619_s21  ;;  %s483_s27 = scalar_lea.vmem %s3351_s1, %s2619_s21  ;;  %512 = vst.msk [vmem:[#allocation2 + $0x8] sm:$0xff] %vm510_vm1, %v2537_v12  ;;  %514 = vst.msk [vmem:[#allocation2 + $0x18] sm:$0xff] %vm510_vm1, %v2537_v12  ;;  %2380 = vset.pattern.permute.xlu1 %v2538_v26  ;;  %2379 = vset.pattern.permute.xlu0 %v2538_v26 }
   0xf   : > { %v2625_v0 = vld [vmem:[%s493_s24 + $0x18] sm:$0xff]   ;;  %v2627_v1 = vld [vmem:[%s493_s24 + $0x10] sm:$0xff]   ;;  %v2385_v3 = vld [vmem:[%s483_s27] sm:$0xff]   ;;  %515 = vst.msk [vmem:[#allocation2 + $0x20] sm:$0xff] %vm510_vm1, %v2537_v12  ;;  %s2963_s29 = scalar_lea.vmem %s3350_s0, %s2619_s21  ;;  %s3301_s15 = scalar_lea.vmem %s3361_s11, %s2619_s21 }
  0x10   : > { %2347 = vmatprep.subr.msk.bf16.mxu0 %vm527_vm0, %v2625_v0  ;;  %v615_v2 = vsel %vm527_vm0, %v2625_v0, 0  ;;  %2295 = vmatprep.mubr.msk.bf16.mxu0 %vm527_vm0, %v2385_v3  ;;  %v612_v4 = vsel %vm527_vm0, %v2627_v1, 0  ;;  %v2642_v5 = vld [vmem:[%s493_s24 + $0x8] sm:$0xff]   ;;  %v2648_v7 = vld [vmem:[%s493_s24] sm:$0xff]   ;;  %v2387_v10 = vld [vmem:[%s483_s27 + $0x10] sm:$0xff]   ;;  %516 = vst.msk [vmem:[#allocation2 + $0x28] sm:$0xff] %vm510_vm1, %v2537_v12 }
  0x11   : > { %2288 = vmatpush3.bf16.xpose.msra.mxu0 %v615_v2  ;;  %v609_v6 = vsel %vm527_vm0, %v2642_v5, 0  ;;  %v606_v8 = vsel %vm527_vm0, %v2648_v7, 0  ;;  %v2386_v9 = vld [vmem:[%s483_s27 + $0x8] sm:$0xff]   ;;  %v2388_v11 = vld [vmem:[%s483_s27 + $0x18] sm:$0xff]   ;;  %517 = vst.msk [vmem:[#allocation2 + $0x30] sm:$0xff] %vm510_vm1, %v2537_v12  ;;  %518 = vst.msk [vmem:[#allocation2 + $0x38] sm:$0xff] %vm510_vm1, %v2537_v12 }
  0x12   : > { %2348 = vmatprep.subr.msk.bf16.mxu0 %vm527_vm0, %v2627_v1  ;;  %519 = vst.msk [vmem:[#allocation3] sm:$0xff] %vm510_vm1, %v2539_v30  ;;  %520 = vst.msk [vmem:[#allocation3 + $0x8] sm:$0xff] %vm510_vm1, %v2539_v30 }
  0x13   : > { %521 = vst.msk [vmem:[#allocation3 + $0x10] sm:$0xff] %vm510_vm1, %v2539_v30  ;;  %522 = vst.msk [vmem:[#allocation3 + $0x18] sm:$0xff] %vm510_vm1, %v2539_v30 }
  0x14   : > { %523 = vst.msk [vmem:[#allocation3 + $0x20] sm:$0xff] %vm510_vm1, %v2539_v30  ;;  %524 = vst.msk [vmem:[#allocation3 + $0x28] sm:$0xff] %vm510_vm1, %v2539_v30  ;;  %v2716_v31 = vld [vmem:[#allocation2 + $0x10] sm:$0xff]  ;;  %v2718_v33 = vld [vmem:[#allocation2] sm:$0xff] }
  0x15   : > { %525 = vst.msk [vmem:[#allocation3 + $0x30] sm:$0xff] %vm510_vm1, %v2539_v30  ;;  %526 = vst.msk [vmem:[#allocation3 + $0x38] sm:$0xff] %vm510_vm1, %v2539_v30  ;;  %v2723_v36 = vld [vmem:[#allocation2 + $0x18] sm:$0xff]  ;;  %v2733_v40 = vld [vmem:[#allocation2 + $0x8] sm:$0xff] }
  0x16   : > { %528 = vst.msk [vmem:[#allocation4] sm:$0xff] %vm527_vm0, %v2539_v30  ;;  %529 = vst.msk [vmem:[#allocation4 + $0x8] sm:$0xff] %vm527_vm0, %v2539_v30  ;;  %v2752_v46 = vld [vmem:[#allocation2 + $0x20] sm:$0xff] }
  0x17   : > { %530 = vst.msk [vmem:[#allocation4 + $0x10] sm:$0xff] %vm527_vm0, %v2539_v30  ;;  %531 = vst.msk [vmem:[#allocation4 + $0x18] sm:$0xff] %vm527_vm0, %v2539_v30  ;;  %v2762_v50 = vld [vmem:[#allocation2 + $0x28] sm:$0xff] }
  0x18   : > { %532 = vst.msk [vmem:[#allocation4 + $0x20] sm:$0xff] %vm527_vm0, %v2539_v30  ;;  %533 = vst.msk [vmem:[#allocation4 + $0x28] sm:$0xff] %vm527_vm0, %v2539_v30  ;;  %v2764_v51 = vld [vmem:[#allocation2 + $0x30] sm:$0xff]  ;;  %v2777_v57 = vld [vmem:[#allocation2 + $0x38] sm:$0xff] }
  0x19   : > { %2290 = vmatpush3.bf16.xpose.msra.mxu0 %v612_v4  ;;  %534 = vst.msk [vmem:[#allocation4 + $0x30] sm:$0xff] %vm527_vm0, %v2539_v30  ;;  %535 = vst.msk [vmem:[#allocation4 + $0x38] sm:$0xff] %vm527_vm0, %v2539_v30 }
  0x1a   : > { %2349 = vmatprep.subr.msk.bf16.mxu0 %vm527_vm0, %v2642_v5 }
  0x21   : > { %2292 = vmatpush3.bf16.xpose.msra.mxu0 %v609_v6 }
  0x22   : > { %2350 = vmatprep.subr.msk.bf16.mxu0 %vm527_vm0, %v2648_v7 }
  0x29   : > { %2294 = vmatpush3.bf16.xpose.msra.mxu0 %v606_v8 }
  0x30   : > { %2296 = vmatmul.mubr.msk.bf16.vlgmr.msra.gmra.mxu0 %vm527_vm0, %v2386_v9 }
  0x31   : > { %2299 = vmatprep.mubr.msk.bf16.mxu0 %vm527_vm0, %v2387_v10 }
  0x38   : > { %2300 = vmatmul.mubr.msk.bf16.gmra.mxu0 %vm527_vm0, %v2388_v11 }
  0x39   : > { %1433 = vmatprep.mubr.bf16.mxu0 %v2538_v26 }
  0xf0   : > { %v2665_v13 = vpop.f32.mrf.mxu0 }
  0xf1   : > { %v697_v14 = vsel %vm690_vm2, %v2665_v13, -inf }
  0xf2   : > { %698 = vmax.xlane.f32.xlu1 %v697_v14  ;;  %v2669_v15 = vpop.f32.mrf.mxu0 }
  0xf3   : > { %v691_v16 = vsel %vm690_vm2, %v2669_v15, -inf }
  0xf4   : > { %692 = vmax.xlane.f32.xlu0 %v691_v16  ;;  %v2673_v17 = vpop.f32.mrf.mxu0 }
  0xf5   : > { %v700_v18 = vsel %vm690_vm2, %v2673_v17, -inf }
  0xf6   : > { %701 = vmax.xlane.f32.xlu1 %v700_v18  ;;  %v2677_v19 = vpop.f32.mrf.mxu0 }
  0xf7   : > { %v694_v20 = vsel %vm690_vm2, %v2677_v19, -inf }
  0xf8   : > { %695 = vmax.xlane.f32.xlu0 %v694_v20  ;;  %v2681_v21 = vpop.f32.mrf.mxu0 }
  0xf9   : > { %v709_v25 = vsel %vm690_vm2, %v2681_v21, -inf }
  0xfa   : > { %v2683_v22 = vpop.f32.mrf.mxu0 }
  0xfb   : > { %v703_v23 = vsel %vm690_vm2, %v2683_v22, -inf }
  0xfc   : > { %v2687_v24 = vpop.f32.mrf.mxu0  ;;  %704 = vmax.xlane.f32.xlu0 %v703_v23 }
  0xfd   : > { %v712_v29 = vsel %vm690_vm2, %v2687_v24, -inf }
  0xfe   : > { %v2693_v27 = vpop.f32.mrf.mxu0 }
  0xff   : > { %v706_v28 = vsel %vm690_vm2, %v2693_v27, -inf }
 0x100   : > { %707 = vmax.xlane.f32.xlu1 %v706_v28  ;;  %710 = vmax.xlane.f32.xlu0 %v709_v25 }
 0x104   : > { %713 = vmax.xlane.f32.xlu1 %v712_v29 }
 0x17b   : > { %v699_v32 = vpop.xlane.xlu1 %698 }
 0x17c   : > { %v2721_v34 = vmax.f32 %v2716_v31, %v699_v32 }
 0x17d   : > { %v693_v35 = vpop.xlane.xlu0 %692 }
 0x17e   : > { %v725_v37 = vsub.f32 %v2716_v31, %v2721_v34  ;;  %1035 = vst.msk [vmem:[#allocation2 + $0x10] sm:$0xff] %vm510_vm1, %v2721_v34  ;;  %v2730_v38 = vmax.f32 %v2718_v33, %v693_v35  ;;  %759 = vperm.xlu1 %2380, %v2721_v34  }
 0x17f   : > { %v702_v39 = vpop.xlane.xlu1 %701 }
 0x180   : > { %v723_v41 = vsub.f32 %v2718_v33, %v2730_v38  ;;  %1033 = vst.msk [vmem:[#allocation2] sm:$0xff] %vm510_vm1, %v2730_v38  ;;  %v2740_v42 = vmax.f32 %v2723_v36, %v702_v39  ;;  %749 = vperm.xlu0 %2379, %v2730_v38   ;;  %v811_v38 = vld [vmem:[#allocation3] sm:$0xff] }
 0x181   : > { %v696_v43 = vpop.xlane.xlu0 %695 }
 0x182   : > { %v726_v44 = vsub.f32 %v2723_v36, %v2740_v42  ;;  %1036 = vst.msk [vmem:[#allocation2 + $0x18] sm:$0xff] %vm510_vm1, %v2740_v42  ;;  %v2748_v45 = vmax.f32 %v2733_v40, %v696_v43  ;;  %934 = vrot.lane.b32.xlu1 %v2625_v0, %s2540_s28  ;;  %v814_v36 = vld [vmem:[#allocation3 + $0x18] sm:$0xff] }
 0x184   : > { %v724_v47 = vsub.f32 %v2733_v40, %v2748_v45  ;;  %1034 = vst.msk [vmem:[#allocation2 + $0x8] sm:$0xff] %vm510_vm1, %v2748_v45 }
 0x185   : > { %v705_v48 = vpop.xlane.xlu0 %704 }
 0x186   : > { %764 = vperm.xlu1 %2380, %v2740_v42   ;;  %v2760_v49 = vmax.f32 %v2752_v46, %v705_v48 }
 0x188   : > { %v727_v52 = vsub.f32 %v2752_v46, %v2760_v49  ;;  %1037 = vst.msk [vmem:[#allocation2 + $0x20] sm:$0xff] %vm510_vm1, %v2760_v49 }
 0x189   : > { %v708_v53 = vpop.xlane.xlu1 %707  ;;  %v711_v54 = vpop.xlane.xlu0 %710 }
 0x18a   : > { %v2771_v55 = vmax.f32 %v2762_v50, %v708_v53  ;;  %754 = vperm.xlu1 %2380, %v2748_v45   ;;  %v2775_v56 = vmax.f32 %v2764_v51, %v711_v54  ;;  %v739_v34 = vmul.f32 1.442695, %v727_v52  ;;  %v813_v52 = vld [vmem:[#allocation3 + $0x10] sm:$0xff] }
 0x18c   : > { %v728_v58 = vsub.f32 %v2762_v50, %v2771_v55  ;;  %1038 = vst.msk [vmem:[#allocation2 + $0x28] sm:$0xff] %vm510_vm1, %v2771_v55  ;;  %v729_v59 = vsub.f32 %v2764_v51, %v2775_v56  ;;  %1039 = vst.msk [vmem:[#allocation2 + $0x30] sm:$0xff] %vm510_vm1, %v2775_v56 }
 0x18d   : > { %v714_v60 = vpop.xlane.xlu1 %713 }
 0x18e   : > { %v2788_v61 = vmax.f32 %v2777_v57, %v714_v60  ;;  %932 = vrot.lane.b32.xlu1 %v2627_v1, %s2540_s28  ;;  %v741_v42 = vmul.f32 1.442695, %v728_v58 }
 0x190   : > { %v730_v62 = vsub.f32 %v2777_v57, %v2788_v61  ;;  %1040 = vst.msk [vmem:[#allocation2 + $0x38] sm:$0xff] %vm510_vm1, %v2788_v61  ;;  %784 = vperm.xlu0 %2379, %v2788_v61   ;;  %v815_v57 = vld [vmem:[#allocation3 + $0x20] sm:$0xff] }
 0x192   : > { %779 = vperm.xlu1 %2380, %v2775_v56   ;;  %v745_v46 = vmul.f32 1.442695, %v730_v62 }
 0x194   : > { %928 = vrot.lane.b32.xlu0 %v2648_v7, %s2540_s28 }
 0x196   : > { %769 = vperm.xlu1 %2380, %v2760_v49  }
 0x19a   : > { %774 = vperm.xlu1 %2380, %v2771_v55  }
 0x19e   : > { %930 = vrot.lane.b32.xlu1 %v2642_v5, %s2540_s28 }
 0x1f9   : > { %v760_v63 = vpop.permute.xlu1 %759 }
 0x1fa   : > { %v789_v7 = vsub.f32 %v2665_v13, %v760_v63 }
 0x1fb   : > { %v750_v0 = vpop.permute.xlu0 %749 }
 0x1fc   : > { %v787_v1 = vsub.f32 %v2669_v15, %v750_v0  ;;  %v799_v5 = vmul.f32 1.442695, %v789_v7 }
 0x1fd   : > { %v935_v2 = vpop.permute.xlu1 %934 }
 0x1fe   : > { %v795_v3 = vmul.f32 1.442695, %v787_v1  ;;  %2303 = vmatprep.subr.bf16.mxu1 %v935_v2 }
 0x1ff   : > { %2304 = vmatpush3.bf16.msra.mxu1 %v935_v2 }
 0x200   : > { %2397 = vpow2.f32 %v795_v3 }
 0x201   : > { %v765_v4 = vpop.permute.xlu1 %764 }
 0x202   : > { %v790_v6 = vsub.f32 %v2673_v17, %v765_v4 }
 0x204   : > { %v801_v8 = vmul.f32 1.442695, %v790_v6 }
 0x205   : > { %v755_v9 = vpop.permute.xlu1 %754 }
 0x206   : > { %2399 = vpow2.f32 %v801_v8  ;;  %v788_v10 = vsub.f32 %v2677_v19, %v755_v9  ;;  %v733_v8 = vmul.f32 1.442695, %v724_v47 }
 0x208   : > { %v797_v11 = vmul.f32 1.442695, %v788_v10  ;;  %v731_v10 = vmul.f32 1.442695, %v723_v41 }
 0x209   : > { %v933_v12 = vpop.permute.xlu1 %932 }
 0x20a   : > { %2401 = vpow2.f32 %v797_v11  ;;  %2305 = vmatprep.subr.bf16.mxu1 %v933_v12  ;;  %v737_v11 = vmul.f32 1.442695, %v726_v44  ;;  %v743_v44 = vmul.f32 1.442695, %v729_v59 }
 0x20b   : > { %2306 = vmatpush3.bf16.msra.mxu1 %v933_v12  ;;  %2403 = vpow2.f32 %v799_v5  ;;  %v785_v17 = vpop.permute.xlu0 %784  ;;  %v735_v5 = vmul.f32 1.442695, %v725_v37 }
 0x20c   : > { %v794_v19 = vsub.f32 %v2687_v24, %v785_v17 }
 0x20d   : > { %v2398_v14 = vpop.eup %2397  ;;  %v780_v15 = vpop.permute.xlu1 %779 }
 0x20e   : > { %v827_v16 = vsel %vm690_vm2, %v2398_v14, 0.0  ;;  %v793_v13 = vsub.f32 %v2681_v21, %v780_v15  ;;  %v809_v39 = vmul.f32 1.442695, %v794_v19  ;;  %v812_v15 = vld [vmem:[#allocation3 + $0x8] sm:$0xff] }
 0x20f   : > { %828 = vadd.xlane.f32.xlu1 %v827_v16  ;;  %v929_v24 = vpop.permute.xlu0 %928  ;;  %v816_v19 = vld [vmem:[#allocation3 + $0x28] sm:$0xff] }
 0x210   : > { %v807_v25 = vmul.f32 1.442695, %v793_v13 }
 0x211   : > { %v770_v18 = vpop.permute.xlu1 %769 }
 0x212   : > { %v791_v20 = vsub.f32 %v2683_v22, %v770_v18 }
 0x213   : > { %v2400_v23 = vpop.eup %2399 }
 0x214   : > { %v803_v28 = vmul.f32 1.442695, %v791_v20  ;;  %v836_v29 = vsel %vm690_vm2, %v2400_v23, 0.0 }
 0x215   : > { %837 = vadd.xlane.f32.xlu1 %v836_v29  ;;  %v775_v30 = vpop.permute.xlu1 %774 }
 0x216   : > { %2405 = vpow2.f32 %v803_v28  ;;  %v792_v32 = vsub.f32 %v2693_v27, %v775_v30 }
 0x217   : > { %v2402_v35 = vpop.eup %2401  ;;  %2407 = vpow2.f32 %v807_v25 }
 0x218   : > { %v805_v43 = vmul.f32 1.442695, %v792_v32  ;;  %v830_v21 = vsel %vm690_vm2, %v2402_v35, 0.0  ;;  %v924_v48 = vpack.c.bf16 %v2402_v35, %v2398_v14  ;;  %v2404_v22 = vpop.eup %2403 }
 0x219   : > { %831 = vadd.xlane.f32.xlu0 %v830_v21  ;;  %v931_v53 = vpop.permute.xlu1 %930  ;;  %v833_v54 = vsel %vm690_vm2, %v2404_v22, 0.0  ;;  %v925_v27 = vpack.c.bf16 %v2400_v23, %v2404_v22  ;;  %v817_v23 = vld [vmem:[#allocation3 + $0x30] sm:$0xff] }
 0x21a   : > { %2409 = vpow2.f32 %v805_v43  ;;  %2307 = vmatprep.subr.bf16.mxu1 %v931_v53  ;;  %2311 = vmatprep.mubr.msk.bf16.mxu1 %vm690_vm2, %v924_v48  ;;  %v818_v43 = vld [vmem:[#allocation3 + $0x38] sm:$0xff] }
 0x21b   : > { %2411 = vpow2.f32 %v809_v39  ;;  %2308 = vmatpush3.bf16.msra.mxu1 %v931_v53  ;;  %v1118_v53 = vld [vmem:[%s3353_s3 + $0x10] sm:$0xff] }
 0x21c   : > { %2309 = vmatprep.subr.bf16.mxu1 %v929_v24  ;;  %2413 = vpow2.f32 %v733_v8 }
 0x21d   : > { %834 = vadd.xlane.f32.xlu0 %v833_v54  ;;  %2415 = vpow2.f32 %v731_v10 }
 0x21e   : > { %2417 = vpow2.f32 %v735_v5 }
 0x21f   : > { %2310 = vmatpush3.bf16.msra.mxu1 %v929_v24  ;;  %2419 = vpow2.f32 %v737_v11  ;;  %v1119_v24 = vld [vmem:[%s3353_s3 + $0x18] sm:$0xff] }
 0x220   : > { %2421 = vpow2.f32 %v739_v34  ;;  %v1125_v54 = vpack.c.bf16 %v1119_v24, %v1118_v53  ;;  %v868_v34 = vld [vmem:[#allocation4] sm:$0xff] }
 0x221   : > { %2423 = vpow2.f32 %v741_v42  ;;  %v872_v24 = vld [vmem:[#allocation4 + $0x20] sm:$0xff] }
 0x222   : > { %2312 = vmatmul.mubr.msk.bf16.vlgmr.msra.gmra.mxu1 %vm690_vm2, %v925_v27  ;;  %2425 = vpow2.f32 %v743_v44  ;;  %2319 = vmatprep.subr.bf16.mxu1 %v1125_v54 }
 0x223   : > { %v2406_v60 = vpop.eup %2405  ;;  %2427 = vpow2.f32 %v745_v46  ;;  %2320 = vmatpush3.bf16.msra.mxu1 %v1125_v54 }
 0x224   : > { %v839_v63 = vsel %vm690_vm2, %v2406_v60, 0.0  ;;  %v2408_v0 = vpop.eup %2407 }
 0x225   : > { %840 = vadd.xlane.f32.xlu0 %v839_v63  ;;  %v845_v3 = vsel %vm690_vm2, %v2408_v0, 0.0 }
 0x227   : > { %v2410_v1 = vpop.eup %2409 }
 0x228   : > { %v2412_v2 = vpop.eup %2411  ;;  %v842_v4 = vsel %vm690_vm2, %v2410_v1, 0.0  ;;  %v926_v6 = vpack.c.bf16 %v2410_v1, %v2406_v60 }
 0x229   : > { %846 = vadd.xlane.f32.xlu0 %v845_v3  ;;  %843 = vadd.xlane.f32.xlu1 %v842_v4  ;;  %v927_v7 = vpack.c.bf16 %v2412_v2, %v2408_v0  ;;  %v848_v9 = vsel %vm690_vm2, %v2412_v2, 0.0  ;;  %v2414_v40 = vpop.eup %2413 }
 0x22a   : > { %2315 = vmatprep.mubr.msk.bf16.mxu1 %vm690_vm2, %v926_v6  ;;  %v2416_v45 = vpop.eup %2415  ;;  %v820_v49 = vmul.f32 %v2414_v40, %v812_v15  ;;  %v1116_v6 = vld [vmem:[%s3353_s3] sm:$0xff]  ;;  %v869_v15 = vld [vmem:[#allocation4 + $0x8] sm:$0xff] }
 0x22b   : > { %2316 = vmatmul.mubr.msk.bf16.gmra.mxu1 %vm690_vm2, %v927_v7  ;;  %v2418_v47 = vpop.eup %2417  ;;  %v819_v41 = vmul.f32 %v2416_v45, %v811_v38  ;;  %v1117_v7 = vld [vmem:[%s3353_s3 + $0x8] sm:$0xff] }
 0x22c   : > { %v2420_v33 = vpop.eup %2419  ;;  %v821_v51 = vmul.f32 %v2418_v47, %v813_v52  ;;  %v1124_v8 = vpack.c.bf16 %v1117_v7, %v1116_v6 }
 0x22d   : > { %849 = vadd.xlane.f32.xlu1 %v848_v9  ;;  %v822_v12 = vmul.f32 %v2420_v33, %v814_v36  ;;  %v2422_v17 = vpop.eup %2421  ;;  %v871_v36 = vld [vmem:[#allocation4 + $0x18] sm:$0xff] }
 0x22e   : > { %v2424_v62 = vpop.eup %2423  ;;  %v823_v13 = vmul.f32 %v2422_v17, %v815_v57  ;;  %2321 = vmatprep.subr.bf16.mxu1 %v1124_v8 }
 0x22f   : > { %v2426_v18 = vpop.eup %2425  ;;  %v824_v30 = vmul.f32 %v2424_v62, %v816_v19  ;;  %2322 = vmatpush3.bf16.msra.mxu1 %v1124_v8  ;;  %v875_v19 = vld [vmem:[#allocation4 + $0x38] sm:$0xff] }
 0x230   : > { %v825_v29 = vmul.f32 %v2426_v18, %v817_v23  ;;  %v2428_v32 = vpop.eup %2427 }
 0x231   : > { %v826_v27 = vmul.f32 %v2428_v32, %v818_v43 }
 0x23e   : > { %883 = vperm.xlu1 %2380, %v2414_v40  }
 0x23f   : > { %878 = vperm.xlu0 %2379, %v2416_v45  }
 0x242   : > { %888 = vperm.xlu1 %2380, %v2418_v47  }
 0x243   : > { %893 = vperm.xlu0 %2379, %v2420_v33  }
 0x298   : > { %v829_v31 = vpop.xlane.xlu1 %828 }
 0x299   : > { %v851_v37 = vadd.f32 %v829_v31, %v819_v41  ;;  %v870_v41 = vld [vmem:[#allocation4 + $0x10] sm:$0xff] }
 0x29b   : > { %860 = vst.msk [vmem:[#allocation3] sm:$0xff] %vm510_vm1, %v851_v37 }
 0x29e   : > { %v838_v14 = vpop.xlane.xlu1 %837 }
 0x29f   : > { %v854_v16 = vadd.f32 %v838_v14, %v822_v12 }
 0x2a1   : > { %863 = vst.msk [vmem:[#allocation3 + $0x18] sm:$0xff] %vm510_vm1, %v854_v16 }
 0x2a2   : > { %v832_v50 = vpop.xlane.xlu0 %831  ;;  %v1052_v21 = vld [vmem:[#allocation3] sm:$0xff] }
 0x2a3   : > { %v852_v55 = vadd.f32 %v832_v50, %v820_v49 }
 0x2a5   : > { %861 = vst.msk [vmem:[#allocation3 + $0x8] sm:$0xff] %vm510_vm1, %v852_v55 }
 0x2a6   : > { %v835_v56 = vpop.xlane.xlu0 %834 }
 0x2a7   : > { %v853_v58 = vadd.f32 %v835_v56, %v821_v51 }
 0x2a8   : > { %v1055_v59 = vld [vmem:[#allocation3 + $0x18] sm:$0xff] }
 0x2a9   : > { %862 = vst.msk [vmem:[#allocation3 + $0x10] sm:$0xff] %vm510_vm1, %v853_v58  ;;  %2429 = vrcp.f32 %v1055_v59 }
 0x2ac   : > { %v1053_v61 = vld [vmem:[#allocation3 + $0x8] sm:$0xff] }
 0x2ad   : > { %2431 = vrcp.f32 %v1053_v61 }
 0x2ae   : > { %v841_v20 = vpop.xlane.xlu0 %840 }
 0x2af   : > { %v855_v25 = vadd.f32 %v841_v20, %v823_v13 }
 0x2b0   : > { %v1054_v28 = vld [vmem:[#allocation3 + $0x10] sm:$0xff] }
 0x2b1   : > { %864 = vst.msk [vmem:[#allocation3 + $0x20] sm:$0xff] %vm510_vm1, %v855_v25  ;;  %2433 = vrcp.f32 %v1054_v28 }
 0x2b2   : > { %v847_v35 = vpop.xlane.xlu0 %846  ;;  %v844_v39 = vpop.xlane.xlu1 %843  ;;  %2435 = vrcp.f32 %v1052_v21 }
 0x2b3   : > { %v857_v48 = vadd.f32 %v847_v35, %v825_v29  ;;  %v856_v22 = vadd.f32 %v844_v39, %v824_v30 }
 0x2b5   : > { %866 = vst.msk [vmem:[#allocation3 + $0x30] sm:$0xff] %vm510_vm1, %v857_v48  ;;  %865 = vst.msk [vmem:[#allocation3 + $0x28] sm:$0xff] %vm510_vm1, %v856_v22 }
 0x2b6   : > { %v2430_v60 = vpop.eup %2429  ;;  %v850_v63 = vpop.xlane.xlu1 %849 }
 0x2b7   : > { %v858_v0 = vadd.f32 %v850_v63, %v826_v27  ;;  %1085 = vperm.xlu0 %2379, %v2430_v60  }
 0x2b8   : > { %v1056_v3 = vld [vmem:[#allocation3 + $0x20] sm:$0xff] }
 0x2b9   : > { %867 = vst.msk [vmem:[#allocation3 + $0x38] sm:$0xff] %vm510_vm1, %v858_v0 }
 0x2ba   : > { %v2432_v1 = vpop.eup %2431  ;;  %v884_v33 = vpop.permute.xlu1 %883 }
 0x2bb   : > { %1075 = vperm.xlu0 %2379, %v2432_v1   ;;  %v879_v38 = vpop.permute.xlu0 %878  ;;  %v917_v52 = vmul.f32 %v884_v33, %v869_v15  ;;  %v874_v1 = vld [vmem:[#allocation4 + $0x30] sm:$0xff] }
 0x2bc   : > { %v1057_v2 = vld [vmem:[#allocation3 + $0x28] sm:$0xff]  ;;  %v1058_v5 = vld [vmem:[#allocation3 + $0x30] sm:$0xff]  ;;  %v916_v12 = vmul.f32 %v879_v38, %v868_v34 }
 0x2bd   : > { %2437 = vrcp.f32 %v1057_v2 }
 0x2be   : > { %v2434_v4 = vpop.eup %2433  ;;  %2439 = vrcp.f32 %v1056_v3  ;;  %v889_v31 = vpop.permute.xlu1 %888 }
 0x2bf   : > { %1080 = vperm.xlu1 %2380, %v2434_v4   ;;  %903 = vperm.xlu0 %2379, %v2424_v62   ;;  %v2436_v10 = vpop.eup %2435  ;;  %v918_v37 = vmul.f32 %v889_v31, %v870_v41  ;;  %v894_v42 = vpop.permute.xlu0 %893  ;;  %v873_v62 = vld [vmem:[#allocation4 + $0x28] sm:$0xff] }
 0x2c0   : > { %v1059_v9 = vld [vmem:[#allocation3 + $0x38] sm:$0xff]  ;;  %v919_v46 = vmul.f32 %v894_v42, %v871_v36  ;;  %v2182_v36 = vld [vmem:[%s3354_s4] ss:$0 sm:$0xff] }
 0x2c1   : > { %2441 = vrcp.f32 %v1059_v9 }
 0x2c2   : > { %2443 = vrcp.f32 %v1058_v5 }
 0x2c3   : > { %1070 = vperm.xlu1 %2380, %v2436_v10   ;;  %913 = vperm.xlu0 %2379, %v2428_v32  }
 0x2c7   : > { %898 = vperm.xlu1 %2380, %v2422_v17  }
 0x2ca   : > { %v2438_v11 = vpop.eup %2437 }
 0x2cb   : > { %908 = vperm.xlu1 %2380, %v2426_v18   ;;  %1095 = vperm.xlu0 %2379, %v2438_v11   ;;  %v2440_v40 = vpop.eup %2439 }
 0x2ce   : > { %v2442_v45 = vpop.eup %2441 }
 0x2cf   : > { %1090 = vperm.xlu1 %2380, %v2440_v40   ;;  %1105 = vperm.xlu0 %2379, %v2442_v45   ;;  %v2444_v47 = vpop.eup %2443 }
 0x2d3   : > { %1100 = vperm.xlu1 %2380, %v2444_v47  }
 0x2e2   : > { %v2313_v44 = vpop.f32.mrf.mxu1 }
 0x2e3   : > { %v1019_v14 = vadd.f32 %v2313_v44, %v918_v37 }
 0x2e4   : > { %v986_v16 = vpop.f32.mrf.mxu1 }
 0x2e5   : > { %1027 = vst.msk [vmem:[#allocation4 + $0x10] sm:$0xff] %vm527_vm0, %v1019_v14  ;;  %v1017_v49 = vadd.f32 %v986_v16, %v916_v12 }
 0x2e6   : > { %v2314_v50 = vpop.f32.mrf.mxu1 }
 0x2e7   : > { %1025 = vst.msk [vmem:[#allocation4] sm:$0xff] %vm527_vm0, %v1017_v49  ;;  %v1020_v55 = vadd.f32 %v2314_v50, %v919_v46 }
 0x2e8   : > { %v989_v51 = vpop.f32.mrf.mxu1 }
 0x2e9   : > { %1028 = vst.msk [vmem:[#allocation4 + $0x18] sm:$0xff] %vm527_vm0, %v1020_v55  ;;  %v1018_v56 = vadd.f32 %v989_v51, %v917_v52 }
 0x2eb   : > { %1026 = vst.msk [vmem:[#allocation4 + $0x8] sm:$0xff] %vm527_vm0, %v1018_v56  ;;  %v2317_v58 = vpop.f32.mrf.mxu1 }
 0x2ec   : > { %v1046_v28 = vld [vmem:[#allocation4 + $0x10] sm:$0xff] }
 0x2ed   : > { %v1002_v17 = vpop.f32.mrf.mxu1 }
 0x2ee   : > { %v1044_v35 = vld [vmem:[#allocation4] sm:$0xff] }
 0x2ef   : > { %v2318_v61 = vpop.f32.mrf.mxu1 }
 0x2f0   : > { %v1047_v43 = vld [vmem:[#allocation4 + $0x18] sm:$0xff] }
 0x2f1   : > { %v1005_v23 = vpop.f32.mrf.mxu1 }
 0x2f2   : > { %v1045_v29 = vld [vmem:[#allocation4 + $0x8] sm:$0xff] }
 0x332   : > { %v1086_v59 = vpop.permute.xlu0 %1085 }
 0x333   : > { %v1111_v53 = vmul.f32 %v1086_v59, %v1047_v43 }
 0x336   : > { %v1076_v57 = vpop.permute.xlu0 %1075 }
 0x337   : > { %v1109_v21 = vmul.f32 %v1076_v57, %v1045_v29 }
 0x33a   : > { %v904_v13 = vpop.permute.xlu0 %903  ;;  %v1081_v18 = vpop.permute.xlu1 %1080 }
 0x33b   : > { %v921_v20 = vmul.f32 %v904_v13, %v873_v62  ;;  %v1110_v30 = vmul.f32 %v1081_v18, %v1046_v28 }
 0x33d   : > { %v1022_v25 = vadd.f32 %v1005_v23, %v921_v20  ;;  %v1121_v60 = vpack.c.bf16 %v1111_v53, %v1110_v30 }
 0x33e   : > { %v914_v32 = vpop.permute.xlu0 %913  ;;  %v1071_v39 = vpop.permute.xlu1 %1070 }
 0x33f   : > { %1030 = vst.msk [vmem:[#allocation4 + $0x28] sm:$0xff] %vm527_vm0, %v1022_v25  ;;  %v923_v48 = vmul.f32 %v914_v32, %v875_v19  ;;  %v1108_v22 = vmul.f32 %v1071_v39, %v1044_v35 }
 0x341   : > { %v1024_v54 = vadd.f32 %v2318_v61, %v923_v48  ;;  %v1120_v27 = vpack.c.bf16 %v1109_v21, %v1108_v22 }
 0x342   : > { %v899_v63 = vpop.permute.xlu1 %898 }
 0x343   : > { %1032 = vst.msk [vmem:[#allocation4 + $0x38] sm:$0xff] %vm527_vm0, %v1024_v54  ;;  %v920_v0 = vmul.f32 %v899_v63, %v872_v24  ;;  %2323 = vmatprep.mubr.msk.bf16.mxu1 %vm527_vm0, %v1120_v27 }
 0x344   : > { %2324 = vmatmul.mubr.msk.bf16.vlgmr.msra.gmra.mxu1 %vm527_vm0, %v1121_v60 }
 0x345   : > { %v1021_v2 = vadd.f32 %v1002_v17, %v920_v0 }
 0x346   : > { %v909_v3 = vpop.permute.xlu1 %908  ;;  %v1096_v7 = vpop.permute.xlu0 %1095  ;;  %v1049_v8 = vld [vmem:[#allocation4 + $0x28] sm:$0xff] }
 0x347   : > { %1029 = vst.msk [vmem:[#allocation4 + $0x20] sm:$0xff] %vm527_vm0, %v1021_v2  ;;  %v922_v4 = vmul.f32 %v909_v3, %v874_v1  ;;  %v1113_v5 = vmul.f32 %v1096_v7, %v1049_v8 }
 0x349   : > { %v1023_v6 = vadd.f32 %v2317_v58, %v922_v4 }
 0x34a   : > { %v1091_v9 = vpop.permute.xlu1 %1090  ;;  %v1051_v40 = vld [vmem:[#allocation4 + $0x38] sm:$0xff]  ;;  %v1106_v45 = vpop.permute.xlu0 %1105 }
 0x34b   : > { %1031 = vst.msk [vmem:[#allocation4 + $0x30] sm:$0xff] %vm527_vm0, %v1023_v6  ;;  %v1115_v41 = vmul.f32 %v1106_v45, %v1051_v40 }
 0x34e   : > { %v1048_v10 = vld [vmem:[#allocation4 + $0x20] sm:$0xff]  ;;  %v1101_v38 = vpop.permute.xlu1 %1100 }
 0x34f   : > { %v1112_v11 = vmul.f32 %v1091_v9, %v1048_v10 }
 0x351   : > { %v1122_v47 = vpack.c.bf16 %v1113_v5, %v1112_v11 }
 0x352   : > { %v1050_v33 = vld [vmem:[#allocation4 + $0x30] sm:$0xff] }
 0x353   : > { %v1114_v31 = vmul.f32 %v1101_v38, %v1050_v33  ;;  %2327 = vmatprep.mubr.msk.bf16.mxu1 %vm527_vm0, %v1122_v47 }
 0x355   : > { %v1123_v34 = vpack.c.bf16 %v1115_v41, %v1114_v31 }
 0x357   : > { %2328 = vmatmul.mubr.msk.bf16.gmra.mxu1 %vm527_vm0, %v1123_v34 }
 0x358   : > { %1538 = vmatprep.mubr.bf16.mxu1 %v2538_v26 }
 0x404   : > { %v2325_v37 = vpop.f32.mrf.mxu1 }
 0x405   : > { %v1188_v49 = vadd.f32 %v2325_v37, %v2182_v36 }
 0x406   : > { %v1179_v42 = vpop.f32.mrf.mxu1 }
 0x407   : > { %v1180_v44 = vadd.f32 %v2182_v36, %v1179_v42  ;;  %v1218_v55 = vsel %vm527_vm0, %v1188_v49, 0.0  ;;  %v1366_v42 = vld [vmem:[%s3357_s7 + $0x28] sm:$0xff] }
 0x408   : > { %v2326_v12 = vpop.f32.mrf.mxu1 }
 0x409   : > { %v1191_v14 = vadd.f32 %v2326_v12, %v2182_v36  ;;  %v1212_v15 = vsel %vm527_vm0, %v1180_v44, 0.0 }
 0x40a   : > { %v1182_v16 = vpop.f32.mrf.mxu1  ;;  %1213 = vadd.xlane.f32.xlu1 %v1212_v15  ;;  %v1367_v15 = vld [vmem:[%s3357_s7 + $0x30] sm:$0xff] }
 0x40b   : > { %v1183_v46 = vadd.f32 %v2182_v36, %v1182_v16  ;;  %v1221_v52 = vsel %vm527_vm0, %v1191_v14, 0.0 }
 0x40d   : > { %v1215_v50 = vsel %vm527_vm0, %v1183_v46, 0.0 }
 0x40e   : > { %1216 = vadd.xlane.f32.xlu0 %v1215_v50  ;;  %1222 = vadd.xlane.f32.xlu1 %v1221_v52  ;;  %v1373_v52 = vld [vmem:[%s3357_s7 + $0x60] sm:$0xff] }
 0x412   : > { %1219 = vadd.xlane.f32.xlu0 %v1218_v55  ;;  %v1375_v55 = vld [vmem:[%s3357_s7 + $0x70] sm:$0xff] }
 0x417   : > { %v2329_v51 = vpop.f32.mrf.mxu1 }
 0x418   : > { %v1204_v17 = vadd.f32 %v2329_v51, %v2182_v36  ;;  %v1362_v51 = vld [vmem:[%s3357_s7 + $0x8] sm:$0xff] }
 0x419   : > { %v1195_v56 = vpop.f32.mrf.mxu1 }
 0x41a   : > { %v1196_v58 = vadd.f32 %v2182_v36, %v1195_v56  ;;  %v1230_v20 = vsel %vm527_vm0, %v1204_v17, 0.0  ;;  %v1387_v56 = vpack.c.bf16 %v1375_v55, %v1373_v52 }
 0x41b   : > { %v2330_v59 = vpop.f32.mrf.mxu1 }
 0x41c   : > { %v1224_v57 = vsel %vm527_vm0, %v1196_v58, 0.0  ;;  %v1207_v13 = vadd.f32 %v2330_v59, %v2182_v36  ;;  %v1361_v59 = vld [vmem:[%s3357_s7] sm:$0xff] }
 0x41d   : > { %v1198_v61 = vpop.f32.mrf.mxu1  ;;  %1225 = vadd.xlane.f32.xlu0 %v1224_v57 }
 0x41e   : > { %v1199_v62 = vadd.f32 %v2182_v36, %v1198_v61  ;;  %v1233_v23 = vsel %vm527_vm0, %v1207_v13, 0.0 }
 0x420   : > { %v1227_v18 = vsel %vm527_vm0, %v1199_v62, 0.0 }
 0x421   : > { %1228 = vadd.xlane.f32.xlu1 %v1227_v18  ;;  %1231 = vadd.xlane.f32.xlu0 %v1230_v20  ;;  %v1369_v20 = vld [vmem:[%s3357_s7 + $0x40] sm:$0xff] }
 0x425   : > { %1234 = vadd.xlane.f32.xlu1 %v1233_v23  ;;  %v1371_v23 = vld [vmem:[%s3357_s7 + $0x50] sm:$0xff] }
 0x493   : > { %v1214_v19 = vpop.xlane.xlu1 %1213 }
 0x494   : > { %v1237_v25 = vmul.f32 0.03125, %v1214_v19  ;;  %v2987_v19 = vld [vmem:[%s2963_s29] sm:$0xff]  }
 0x496   : > { %v2892_v28 = vsub.f32 %v1180_v44, %v1237_v25  ;;  %v1368_v44 = vld [vmem:[%s3357_s7 + $0x38] sm:$0xff]  ;;  %v1385_v25 = vpack.c.bf16 %v1371_v23, %v1369_v20 }
 0x497   : > { %v1217_v29 = vpop.xlane.xlu0 %1216  ;;  %v1223_v30 = vpop.xlane.xlu1 %1222  ;;  %v1380_v12 = vpack.c.bf16 %v1368_v44, %v1366_v42 }
 0x498   : > { %v1238_v32 = vmul.f32 0.03125, %v1217_v29  ;;  %v1240_v35 = vmul.f32 0.03125, %v1223_v30  ;;  %v1253_v39 = vmul.f32 %v2892_v28, %v2892_v28  ;;  %v1347_v29 = vld [vmem:[%s2963_s29 + $0x8] sm:$0xff]   ;;  %v1349_v30 = vld [vmem:[%s2963_s29 + $0x10] sm:$0xff]  }
 0x499   : > { %1518 = vmatprep.subr.bf16.mxu1 %v1380_v12 }
 0x49a   : > { %v2896_v43 = vsub.f32 %v1183_v46, %v1238_v32  ;;  %v2898_v21 = vsub.f32 %v1191_v14, %v1240_v35  ;;  %v1261_v48 = vsel %vm527_vm0, %v1253_v39, 0.0  ;;  %v1365_v14 = vld [vmem:[%s3357_s7 + $0x20] sm:$0xff]  ;;  %v1374_v46 = vld [vmem:[%s3357_s7 + $0x68] sm:$0xff]  ;;  %v1351_v32 = vld [vmem:[%s2963_s29 + $0x18] sm:$0xff]  }
 0x49b   : > { %v1220_v22 = vpop.xlane.xlu0 %1219  ;;  %1262 = vadd.xlane.f32.xlu0 %v1261_v48  ;;  %v1379_v16 = vpack.c.bf16 %v1367_v15, %v1365_v14 }
 0x49c   : > { %v1239_v53 = vmul.f32 0.03125, %v1220_v22  ;;  %v1254_v24 = vmul.f32 %v2896_v43, %v2896_v43  ;;  %v1256_v60 = vmul.f32 %v2898_v21, %v2898_v21 }
 0x49d   : > { %1519 = vmatpush1.bf16.msra.mxu1 %v1379_v16 }
 0x49e   : > { %v2903_v54 = vsub.f32 %v1188_v49, %v1239_v53  ;;  %v1264_v27 = vsel %vm527_vm0, %v1254_v24, 0.0  ;;  %v1270_v1 = vsel %vm527_vm0, %v1256_v60, 0.0  ;;  %v1376_v49 = vld [vmem:[%s3357_s7 + $0x78] sm:$0xff] }
 0x49f   : > { %1265 = vadd.xlane.f32.xlu1 %v1264_v27  ;;  %v1388_v50 = vpack.c.bf16 %v1376_v49, %v1374_v46 }
 0x4a0   : > { %v1255_v63 = vmul.f32 %v2903_v54, %v2903_v54 }
 0x4a1   : > { %1413 = vmatprep.subr.bf16.mxu0 %v1388_v50 }
 0x4a2   : > { %v1267_v0 = vsel %vm527_vm0, %v1255_v63, 0.0  ;;  %1414 = vmatpush1.bf16.msra.mxu0 %v1387_v56 }
 0x4a3   : > { %1268 = vadd.xlane.f32.xlu0 %v1267_v0  ;;  %1271 = vadd.xlane.f32.xlu1 %v1270_v1 }
 0x4a6   : > { %v1226_v2 = vpop.xlane.xlu0 %1225 }
 0x4a7   : > { %v1241_v3 = vmul.f32 0.03125, %v1226_v2 }
 0x4a9   : > { %v2912_v4 = vsub.f32 %v1196_v58, %v1241_v3  ;;  %v1364_v58 = vld [vmem:[%s3357_s7 + $0x18] sm:$0xff] }
 0x4aa   : > { %v1232_v6 = vpop.xlane.xlu0 %1231  ;;  %v1229_v7 = vpop.xlane.xlu1 %1228  ;;  %v1378_v57 = vpack.c.bf16 %v1364_v58, %v1362_v51 }
 0x4ab   : > { %v1243_v8 = vmul.f32 0.03125, %v1232_v6  ;;  %v1242_v9 = vmul.f32 0.03125, %v1229_v7  ;;  %v1257_v10 = vmul.f32 %v2912_v4, %v2912_v4 }
 0x4ac   : > { %1520 = vmatprep.subr.bf16.mxu1 %v1378_v57 }
 0x4ad   : > { %v2916_v5 = vsub.f32 %v1204_v17, %v1243_v8  ;;  %v2918_v11 = vsub.f32 %v1199_v62, %v1242_v9  ;;  %v1273_v40 = vsel %vm527_vm0, %v1257_v10, 0.0  ;;  %v1363_v17 = vld [vmem:[%s3357_s7 + $0x10] sm:$0xff]  ;;  %v1370_v62 = vld [vmem:[%s3357_s7 + $0x48] sm:$0xff]  ;;  %v2187_v8 = vld [vmem:[%s3355_s5] ss:$0 sm:$0xff] }
 0x4ae   : > { %1274 = vadd.xlane.f32.xlu0 %v1273_v40  ;;  %v1235_v45 = vpop.xlane.xlu1 %1234  ;;  %v1377_v61 = vpack.c.bf16 %v1363_v17, %v1361_v59 }
 0x4af   : > { %v1244_v47 = vmul.f32 0.03125, %v1235_v45  ;;  %v1259_v33 = vmul.f32 %v2916_v5, %v2916_v5  ;;  %v1258_v38 = vmul.f32 %v2918_v11, %v2918_v11 }
 0x4b0   : > { %1521 = vmatpush1.bf16.msra.mxu1 %v1377_v61 }
 0x4b1   : > { %v2925_v41 = vsub.f32 %v1207_v13, %v1244_v47  ;;  %v1279_v31 = vsel %vm527_vm0, %v1259_v33, 0.0  ;;  %v1276_v34 = vsel %vm527_vm0, %v1258_v38, 0.0  ;;  %v1372_v13 = vld [vmem:[%s3357_s7 + $0x58] sm:$0xff] }
 0x4b2   : > { %1280 = vadd.xlane.f32.xlu0 %v1279_v31  ;;  %1277 = vadd.xlane.f32.xlu1 %v1276_v34  ;;  %v1386_v18 = vpack.c.bf16 %v1372_v13, %v1370_v62 }
 0x4b3   : > { %v1260_v37 = vmul.f32 %v2925_v41, %v2925_v41  ;;  %2197 = vmatmul.mubr.msk.bf16.vlgmr.msra.gmra.mxu1 %vm527_vm0, %v2987_v19 }
 0x4b4   : > { %1415 = vmatprep.subr.bf16.mxu0 %v1386_v18  ;;  %1548 = vmatprep.mubr.bf16.mxu1 %v2538_v26 }
 0x4b5   : > { %v1282_v36 = vsel %vm527_vm0, %v1260_v37, 0.0  ;;  %1416 = vmatpush1.bf16.msra.mxu0 %v1385_v25 }
 0x4b6   : > { %1283 = vadd.xlane.f32.xlu1 %v1282_v36 }
 0x4bb   : > { %2198 = vmatmul.mubr.msk.bf16.gmra.mxu1 %vm527_vm0, %v1347_v29 }
 0x4bc   : > { %1558 = vmatprep.mubr.bf16.mxu1 %v2538_v26 }
 0x4c3   : > { %2199 = vmatmul.mubr.msk.bf16.gmra.mxu1 %vm527_vm0, %v1349_v30 }
 0x4c4   : > { %1568 = vmatprep.mubr.bf16.mxu1 %v2538_v26 }
 0x4cb   : > { %2200 = vmatmul.mubr.msk.bf16.gmra.mxu1 %vm527_vm0, %v1351_v32 }
 0x524   : > { %v1263_v35 = vpop.xlane.xlu0 %1262 }
 0x525   : > { %v1285_v39 = vmul.f32 0.03125, %v1263_v35 }
 0x527   : > { %v1293_v48 = vadd.f32 1e-05, %v1285_v39 }
 0x528   : > { %v1266_v22 = vpop.xlane.xlu1 %1265 }
 0x529   : > { %2445 = vrsqrt.f32 %v1293_v48  ;;  %v1286_v53 = vmul.f32 0.03125, %v1266_v22  ;;  %v1737_v22 = vld [vmem:[%s3358_s8 + $0x70] sm:$0xff] }
 0x52b   : > { %v1294_v24 = vadd.f32 1e-05, %v1286_v53 }
 0x52c   : > { %v1269_v27 = vpop.xlane.xlu0 %1268  ;;  %v1272_v60 = vpop.xlane.xlu1 %1271 }
 0x52d   : > { %2447 = vrsqrt.f32 %v1294_v24  ;;  %v1287_v63 = vmul.f32 0.03125, %v1269_v27  ;;  %v1288_v0 = vmul.f32 0.03125, %v1272_v60  ;;  %v1751_v24 = vld [vmem:[%s3358_s8 + $0xe0] sm:$0xff]  ;;  %v1752_v27 = vld [vmem:[%s3358_s8 + $0xe8] sm:$0xff] }
 0x52e   : > { %v1777_v60 = vpack.c.bf16 %v1752_v27, %v1751_v24 }
 0x52f   : > { %v1295_v1 = vadd.f32 1e-05, %v1287_v63  ;;  %v1296_v2 = vadd.f32 1e-05, %v1288_v0  ;;  %v1735_v63 = vld [vmem:[%s3358_s8 + $0x60] sm:$0xff]  ;;  %v1736_v0 = vld [vmem:[%s3358_s8 + $0x68] sm:$0xff] }
 0x531   : > { %2449 = vrsqrt.f32 %v1295_v1  ;;  %v1769_v1 = vpack.c.bf16 %v1736_v0, %v1735_v63 }
 0x532   : > { %2451 = vrsqrt.f32 %v1296_v2  ;;  %v1749_v2 = vld [vmem:[%s3358_s8 + $0xd0] sm:$0xff] }
 0x536   : > { %v2446_v3 = vpop.eup %2445 }
 0x537   : > { %v1309_v6 = vmul.f32 %v2446_v3, %v2892_v28  ;;  %v1275_v7 = vpop.xlane.xlu0 %1274  ;;  %v2188_v28 = vld [vmem:[%s3356_s6] ss:$0 sm:$0xff]  ;;  %v1750_v3 = vld [vmem:[%s3358_s8 + $0xd8] sm:$0xff] }
 0x538   : > { %v1289_v9 = vmul.f32 0.03125, %v1275_v7  ;;  %v1733_v7 = vld [vmem:[%s3358_s8 + $0x50] sm:$0xff] }
 0x539   : > { %v1323_v45 = vmul.f32 %v2187_v8, %v1309_v6  ;;  %v1776_v6 = vpack.c.bf16 %v1750_v3, %v1749_v2 }
 0x53a   : > { %v2448_v10 = vpop.eup %2447  ;;  %v1297_v40 = vadd.f32 1e-05, %v1289_v9 }
 0x53b   : > { %v1310_v47 = vmul.f32 %v2448_v10, %v2896_v43  ;;  %v1281_v33 = vpop.xlane.xlu0 %1280  ;;  %v1278_v38 = vpop.xlane.xlu1 %1277  ;;  %v1337_v15 = vadd.f32 %v2188_v28, %v1323_v45  ;;  %v1747_v10 = vld [vmem:[%s3358_s8 + $0xc0] sm:$0xff] }
 0x53c   : > { %2453 = vrsqrt.f32 %v1297_v40  ;;  %v1291_v31 = vmul.f32 0.03125, %v1281_v33  ;;  %v1290_v34 = vmul.f32 0.03125, %v1278_v38  ;;  %v1748_v40 = vld [vmem:[%s3358_s8 + $0xc8] sm:$0xff] }
 0x53d   : > { %v1324_v37 = vmul.f32 %v2187_v8, %v1310_v47  ;;  %v1775_v45 = vpack.c.bf16 %v1748_v40, %v1747_v10  ;;  %v1731_v47 = vld [vmem:[%s3358_s8 + $0x40] sm:$0xff]  ;;  %v1732_v33 = vld [vmem:[%s3358_s8 + $0x48] sm:$0xff] }
 0x53e   : > { %v2450_v36 = vpop.eup %2449  ;;  %v1298_v42 = vadd.f32 1e-05, %v1290_v34  ;;  %v1299_v12 = vadd.f32 1e-05, %v1291_v31  ;;  %v1767_v38 = vpack.c.bf16 %v1732_v33, %v1731_v47  ;;  %v1745_v31 = vld [vmem:[%s3358_s8 + $0xb0] sm:$0xff]  ;;  %v1746_v34 = vld [vmem:[%s3358_s8 + $0xb8] sm:$0xff] }
 0x53f   : > { %v2452_v44 = vpop.eup %2451  ;;  %v1284_v14 = vpop.xlane.xlu1 %1283  ;;  %v1338_v16 = vadd.f32 %v2188_v28, %v1324_v37  ;;  %v1311_v46 = vmul.f32 %v2450_v36, %v2903_v54  ;;  %v1729_v37 = vld [vmem:[%s3358_s8 + $0x30] sm:$0xff]  ;;  %v1730_v36 = vld [vmem:[%s3358_s8 + $0x38] sm:$0xff] }
 0x540   : > { %v1292_v43 = vmul.f32 0.03125, %v1284_v14  ;;  %v1312_v49 = vmul.f32 %v2452_v44, %v2898_v21  ;;  %2455 = vrsqrt.f32 %v1298_v42  ;;  %v1766_v42 = vpack.c.bf16 %v1730_v36, %v1729_v37  ;;  %v1743_v44 = vld [vmem:[%s3358_s8 + $0xa0] sm:$0xff] }
 0x541   : > { %v1381_v50 = vpack.c.bf16 %v1338_v16, %v1337_v15  ;;  %v1325_v52 = vmul.f32 %v2187_v8, %v1311_v46  ;;  %2457 = vrsqrt.f32 %v1299_v12  ;;  %v1744_v12 = vld [vmem:[%s3358_s8 + $0xa8] sm:$0xff]  ;;  %v1727_v15 = vld [vmem:[%s3358_s8 + $0x20] sm:$0xff] }
 0x542   : > { %v1300_v55 = vadd.f32 1e-05, %v1292_v43  ;;  %v1326_v51 = vmul.f32 %v2187_v8, %v1312_v49  ;;  %v1773_v14 = vpack.c.bf16 %v1744_v12, %v1743_v44  ;;  %v1728_v16 = vld [vmem:[%s3358_s8 + $0x28] sm:$0xff]  ;;  %v1741_v43 = vld [vmem:[%s3358_s8 + $0x90] sm:$0xff]  ;;  %v1742_v49 = vld [vmem:[%s3358_s8 + $0x98] sm:$0xff] }
 0x543   : > { %2189 = vmatmul.mubr.msk.bf16.vlgmr.msra.gmra.mxu0 %vm527_vm0, %v1381_v50  ;;  %v1339_v56 = vadd.f32 %v2188_v28, %v1325_v52  ;;  %v1765_v46 = vpack.c.bf16 %v1728_v16, %v1727_v15  ;;  %v1772_v50 = vpack.c.bf16 %v1742_v49, %v1741_v43  ;;  %v1725_v52 = vld [vmem:[%s3358_s8 + $0x10] sm:$0xff] }
 0x544   : > { %2459 = vrsqrt.f32 %v1300_v55  ;;  %1443 = vmatprep.mubr.bf16.mxu0 %v2538_v26  ;;  %v1340_v58 = vadd.f32 %v2188_v28, %v1326_v51  ;;  %v1726_v55 = vld [vmem:[%s3358_s8 + $0x18] sm:$0xff] }
 0x545   : > { %v1764_v51 = vpack.c.bf16 %v1726_v55, %v1725_v52 }
 0x546   : > { %v1382_v17 = vpack.c.bf16 %v1340_v58, %v1339_v56  ;;  %v1739_v56 = vld [vmem:[%s3358_s8 + $0x80] sm:$0xff]  ;;  %v1740_v58 = vld [vmem:[%s3358_s8 + $0x88] sm:$0xff] }
 0x549   : > { %v2454_v59 = vpop.eup %2453 }
 0x54a   : > { %v1313_v54 = vmul.f32 %v2454_v59, %v2912_v4  ;;  %v1771_v59 = vpack.c.bf16 %v1740_v58, %v1739_v56 }
 0x54b   : > { %2190 = vmatmul.mubr.msk.bf16.gmra.mxu0 %vm527_vm0, %v1382_v17  ;;  %v1723_v17 = vld [vmem:[%s3358_s8] sm:$0xff] }
 0x54c   : > { %1453 = vmatprep.mubr.bf16.mxu0 %v2538_v26  ;;  %v1327_v61 = vmul.f32 %v2187_v8, %v1313_v54  ;;  %v1724_v54 = vld [vmem:[%s3358_s8 + $0x8] sm:$0xff] }
 0x54d   : > { %v2456_v21 = vpop.eup %2455 }
 0x54e   : > { %v1314_v57 = vmul.f32 %v2456_v21, %v2918_v11  ;;  %v2458_v62 = vpop.eup %2457  ;;  %v1341_v23 = vadd.f32 %v2188_v28, %v1327_v61  ;;  %v1763_v21 = vpack.c.bf16 %v1724_v54, %v1723_v17 }
 0x54f   : > { %v1315_v29 = vmul.f32 %v2458_v62, %v2916_v5  ;;  %v1754_v5 = vld [vmem:[%s3358_s8 + $0xf8] sm:$0xff] }
 0x550   : > { %v1328_v18 = vmul.f32 %v2187_v8, %v1314_v57 }
 0x551   : > { %v2460_v13 = vpop.eup %2459  ;;  %v1329_v4 = vmul.f32 %v2187_v8, %v1315_v29 }
 0x552   : > { %v1316_v20 = vmul.f32 %v2460_v13, %v2925_v41  ;;  %v1342_v25 = vadd.f32 %v2188_v28, %v1328_v18  ;;  %v1753_v41 = vld [vmem:[%s3358_s8 + $0xf0] sm:$0xff] }
 0x553   : > { %v1343_v39 = vadd.f32 %v2188_v28, %v1329_v4  ;;  %v1778_v48 = vpack.c.bf16 %v1754_v5, %v1753_v41 }
 0x554   : > { %v1383_v30 = vpack.c.bf16 %v1342_v25, %v1341_v23  ;;  %v1330_v32 = vmul.f32 %v2187_v8, %v1316_v20  ;;  %v1734_v8 = vld [vmem:[%s3358_s8 + $0x58] sm:$0xff] }
 0x555   : > { %2247 = vmatprep.subr.bf16.mxu0 %v1778_v48  ;;  %2331 = vmatprep.subr.bf16.mxu1 %v1778_v48  ;;  %v1768_v9 = vpack.c.bf16 %v1734_v8, %v1733_v7 }
 0x556   : > { %2191 = vmatmul.mubr.msk.bf16.gmra.mxu0 %vm527_vm0, %v1383_v30  ;;  %v1344_v35 = vadd.f32 %v2188_v28, %v1330_v32  ;;  %v1774_v28 = vpack.c.bf16 %v1746_v34, %v1745_v31 }
 0x557   : > { %1463 = vmatprep.mubr.bf16.mxu0 %v2538_v26  ;;  %v1738_v26 = vld [vmem:[%s3358_s8 + $0x78] sm:$0xff] }
 0x558   : > { %v1384_v11 = vpack.c.bf16 %v1344_v35, %v1343_v39  ;;  %v1770_v53 = vpack.c.bf16 %v1738_v26, %v1737_v22 }
 0x55a   : > { %2248 = vmatpush3.bf16.msra.mxu0 %v1770_v53  ;;  %2339 = vmatpush3.bf16.msra.mxu1 %v1770_v53 }
 0x55b   : > { %2249 = vmatprep.subr.bf16.mxu0 %v1777_v60  ;;  %2332 = vmatprep.subr.bf16.mxu1 %v1777_v60 }
 0x55e   : > { %2192 = vmatmul.mubr.msk.bf16.gmra.mxu0 %vm527_vm0, %v1384_v11  ;;  %2340 = vmatpush3.bf16.msra.mxu1 %v1769_v1 }
 0x55f   : > { %2250 = vmatpush3.bf16.msra.mxu0 %v1769_v1  ;;  %2333 = vmatprep.subr.bf16.mxu1 %v1776_v6 }
 0x560   : > { %2251 = vmatprep.subr.bf16.mxu0 %v1776_v6 }
 0x562   : > { %2341 = vmatpush3.bf16.msra.mxu1 %v1768_v9 }
 0x563   : > { %2252 = vmatpush3.bf16.msra.mxu0 %v1768_v9  ;;  %2334 = vmatprep.subr.bf16.mxu1 %v1775_v45 }
 0x564   : > { %2253 = vmatprep.subr.bf16.mxu0 %v1775_v45 }
 0x566   : > { %2342 = vmatpush3.bf16.msra.mxu1 %v1767_v38 }
 0x567   : > { %2254 = vmatpush3.bf16.msra.mxu0 %v1767_v38  ;;  %2335 = vmatprep.subr.bf16.mxu1 %v1774_v28 }
 0x568   : > { %2255 = vmatprep.subr.bf16.mxu0 %v1774_v28 }
 0x56a   : > { %2343 = vmatpush3.bf16.msra.mxu1 %v1766_v42 }
 0x56b   : > { %2256 = vmatpush3.bf16.msra.mxu0 %v1766_v42  ;;  %2336 = vmatprep.subr.bf16.mxu1 %v1773_v14 }
 0x56c   : > { %2257 = vmatprep.subr.bf16.mxu0 %v1773_v14 }
 0x56e   : > { %2344 = vmatpush3.bf16.msra.mxu1 %v1765_v46 }
 0x56f   : > { %2258 = vmatpush3.bf16.msra.mxu0 %v1765_v46  ;;  %2337 = vmatprep.subr.bf16.mxu1 %v1772_v50 }
 0x570   : > { %2259 = vmatprep.subr.bf16.mxu0 %v1772_v50 }
 0x572   : > { %2345 = vmatpush3.bf16.msra.mxu1 %v1764_v51 }
 0x573   : > { %2260 = vmatpush3.bf16.msra.mxu0 %v1764_v51  ;;  %2338 = vmatprep.subr.bf16.mxu1 %v1771_v59  ;;  %v1540_v57 = vpop.f32.mrf.mxu1 }
 0x574   : > { %2261 = vmatprep.subr.bf16.mxu0 %v1771_v59 }
 0x575   : > { %v1542_v61 = vpop.f32.mrf.mxu1 }
 0x576   : > { %2346 = vmatpush3.bf16.msra.mxu1 %v1763_v21 }
 0x577   : > { %2262 = vmatpush3.bf16.msra.mxu0 %v1763_v21  ;;  %v1544_v62 = vpop.f32.mrf.mxu1 }
 0x579   : > { %v1546_v13 = vpop.f32.mrf.mxu1 }
 0x57b   : > { %v1550_v18 = vpop.f32.mrf.mxu1 }
 0x57d   : > { %v1552_v20 = vpop.f32.mrf.mxu1 }
 0x57f   : > { %v1554_v23 = vpop.f32.mrf.mxu1 }
 0x581   : > { %v1556_v32 = vpop.f32.mrf.mxu1 }
 0x583   : > { %v1560_v22 = vpop.f32.mrf.mxu1 }
 0x585   : > { %v1562_v7 = vpop.f32.mrf.mxu1 }
 0x587   : > { %v1564_v42 = vpop.f32.mrf.mxu1 }
 0x589   : > { %v1566_v55 = vpop.f32.mrf.mxu1 }
 0x603   : > { %v1435_v25 = vpop.f32.mrf.mxu0 }
 0x604   : > { %v3117_v29 = vadd.f32 %v1540_v57, %v1435_v25 }
 0x605   : > { %v1437_v30 = vpop.f32.mrf.mxu0 }
 0x606   : > { %v1595_v4 = vmul.f32 0.044715, %v3117_v29  ;;  %v3120_v35 = vadd.f32 %v1542_v61, %v1437_v30 }
 0x607   : > { %v1439_v39 = vpop.f32.mrf.mxu0 }
 0x608   : > { %v1611_v11 = vmul.f32 %v1595_v4, %v3117_v29  ;;  %v1596_v41 = vmul.f32 0.044715, %v3120_v35  ;;  %v3124_v5 = vadd.f32 %v1544_v62, %v1439_v39 }
 0x609   : > { %v1441_v48 = vpop.f32.mrf.mxu0 }
 0x60a   : > { %v1627_v26 = vmul.f32 %v1611_v11, %v3117_v29  ;;  %v1612_v53 = vmul.f32 %v1596_v41, %v3120_v35  ;;  %v1597_v24 = vmul.f32 0.044715, %v3124_v5  ;;  %v3129_v27 = vadd.f32 %v1546_v13, %v1441_v48 }
 0x60b   : > { %v1445_v60 = vpop.f32.mrf.mxu0 }
 0x60c   : > { %v1643_v63 = vadd.f32 %v1627_v26, %v3117_v29  ;;  %v1628_v0 = vmul.f32 %v1612_v53, %v3120_v35  ;;  %v1613_v1 = vmul.f32 %v1597_v24, %v3124_v5  ;;  %v3134_v2 = vadd.f32 %v1550_v18, %v1445_v60  ;;  %v1570_v18 = vpop.f32.mrf.mxu1 }
 0x60d   : > { %v1598_v3 = vmul.f32 0.044715, %v3129_v27  ;;  %v1447_v6 = vpop.f32.mrf.mxu0 }
 0x60e   : > { %v1659_v8 = vmul.f32 0.7978846, %v1643_v63  ;;  %v1629_v9 = vmul.f32 %v1613_v1, %v3124_v5  ;;  %v1599_v10 = vmul.f32 0.044715, %v3134_v2  ;;  %v3139_v40 = vadd.f32 %v1552_v20, %v1447_v6 }
 0x60f   : > { %v1614_v45 = vmul.f32 %v1598_v3, %v3129_v27  ;;  %v1449_v47 = vpop.f32.mrf.mxu0  ;;  %v1644_v33 = vadd.f32 %v1628_v0, %v3120_v35  ;;  %v1579_v0 = vmul.f32 0.5, %v3117_v29  ;;  %v1580_v6 = vmul.f32 0.5, %v3120_v35 }
 0x610   : > { %v1645_v38 = vadd.f32 %v1629_v9, %v3124_v5  ;;  %v1615_v31 = vmul.f32 %v1599_v10, %v3134_v2  ;;  %v1600_v34 = vmul.f32 0.044715, %v3139_v40  ;;  %2461 = vtanh.f32 %v1659_v8 }
 0x611   : > { %v1630_v28 = vmul.f32 %v1614_v45, %v3129_v27  ;;  %v3147_v37 = vadd.f32 %v1554_v23, %v1449_v47  ;;  %v1451_v36 = vpop.f32.mrf.mxu0  ;;  %v1660_v44 = vmul.f32 0.7978846, %v1644_v33  ;;  %v1581_v33 = vmul.f32 0.5, %v3124_v5 }
 0x612   : > { %v1661_v12 = vmul.f32 0.7978846, %v1645_v38  ;;  %v1631_v14 = vmul.f32 %v1615_v31, %v3134_v2  ;;  %v1616_v15 = vmul.f32 %v1600_v34, %v3139_v40  ;;  %v3151_v16 = vadd.f32 %v1556_v32, %v1451_v36 }
 0x613   : > { %v1601_v46 = vmul.f32 0.044715, %v3147_v37  ;;  %v1646_v43 = vadd.f32 %v1630_v28, %v3129_v27  ;;  %2463 = vtanh.f32 %v1660_v44  ;;  %v1582_v34 = vmul.f32 0.5, %v3129_v27 }
 0x614   : > { %2465 = vtanh.f32 %v1661_v12  ;;  %v1632_v49 = vmul.f32 %v1616_v15, %v3139_v40  ;;  %v1602_v50 = vmul.f32 0.044715, %v3151_v16  ;;  %v1647_v56 = vadd.f32 %v1631_v14, %v3134_v2 }
 0x615   : > { %v1617_v52 = vmul.f32 %v1601_v46, %v3147_v37  ;;  %v1662_v51 = vmul.f32 0.7978846, %v1646_v43  ;;  %v3190_v35 = vmul.f32 0.5, %v3134_v2  ;;  %v1585_v44 = vmul.f32 0.5, %v3147_v37 }
 0x616   : > { %v1618_v58 = vmul.f32 %v1602_v50, %v3151_v16  ;;  %v1648_v59 = vadd.f32 %v1632_v49, %v3139_v40  ;;  %v1455_v54 = vpop.f32.mrf.mxu0  ;;  %v1663_v21 = vmul.f32 0.7978846, %v1647_v56 }
 0x617   : > { %v1633_v17 = vmul.f32 %v1617_v52, %v3147_v37  ;;  %2467 = vtanh.f32 %v1662_v51  ;;  %v3163_v61 = vadd.f32 %v1560_v22, %v1455_v54  ;;  %v1572_v22 = vpop.f32.mrf.mxu1 }
 0x618   : > { %v1634_v57 = vmul.f32 %v1618_v58, %v3151_v16  ;;  %v1664_v62 = vmul.f32 0.7978846, %v1648_v59  ;;  %v1457_v13 = vpop.f32.mrf.mxu0  ;;  %2469 = vtanh.f32 %v1663_v21 }
 0x619   : > { %v1649_v20 = vadd.f32 %v1633_v17, %v3147_v37  ;;  %v1603_v23 = vmul.f32 0.044715, %v3163_v61  ;;  %v3167_v25 = vadd.f32 %v1562_v7, %v1457_v13  ;;  %v1574_v38 = vpop.f32.mrf.mxu1 }
 0x61a   : > { %v1650_v30 = vadd.f32 %v1634_v57, %v3151_v16  ;;  %v1459_v32 = vpop.f32.mrf.mxu0  ;;  %2471 = vtanh.f32 %v1664_v62 }
 0x61b   : > { %v1665_v4 = vmul.f32 0.7978846, %v1649_v20  ;;  %v1619_v39 = vmul.f32 %v1603_v23, %v3163_v61  ;;  %v1604_v11 = vmul.f32 0.044715, %v3167_v25  ;;  %v3172_v41 = vadd.f32 %v1564_v42, %v1459_v32  ;;  %v1576_v51 = vpop.f32.mrf.mxu1 }
 0x61c   : > { %v1666_v48 = vmul.f32 0.7978846, %v1650_v30  ;;  %v1461_v26 = vpop.f32.mrf.mxu0 }
 0x61d   : > { %2473 = vtanh.f32 %v1665_v4  ;;  %v2462_v53 = vpop.eup %2461  ;;  %v1635_v24 = vmul.f32 %v1619_v39, %v3163_v61  ;;  %v1620_v60 = vmul.f32 %v1604_v11, %v3167_v25  ;;  %v1605_v63 = vmul.f32 0.044715, %v3172_v41 }
 0x61e   : > { %v3178_v1 = vadd.f32 %v1566_v55, %v1461_v26  ;;  %v1465_v3 = vpop.f32.mrf.mxu0  ;;  %2475 = vtanh.f32 %v1666_v48  ;;  %v1691_v15 = vadd.f32 1.0, %v2462_v53 }
 0x61f   : > { %v1651_v8 = vadd.f32 %v1635_v24, %v3163_v61  ;;  %v1636_v9 = vmul.f32 %v1620_v60, %v3167_v25  ;;  %v1621_v10 = vmul.f32 %v1605_v63, %v3172_v41  ;;  %v3184_v45 = vadd.f32 %v1570_v18, %v1465_v3 }
 0x620   : > { %v2464_v7 = vpop.eup %2463  ;;  %v1606_v29 = vmul.f32 0.044715, %v3178_v1  ;;  %v1467_v31 = vpop.f32.mrf.mxu0  ;;  %v1707_v20 = vmul.f32 %v1691_v15, %v1579_v0 }
 0x621   : > { %v2466_v47 = vpop.eup %2465  ;;  %v1637_v28 = vmul.f32 %v1621_v10, %v3172_v41  ;;  %v1607_v36 = vmul.f32 0.044715, %v3184_v45  ;;  %v3194_v42 = vadd.f32 %v1572_v22, %v1467_v31  ;;  %v1692_v14 = vadd.f32 1.0, %v2464_v7 }
 0x622   : > { %v1622_v12 = vmul.f32 %v1606_v29, %v3178_v1  ;;  %v1469_v5 = vpop.f32.mrf.mxu0  ;;  %v1693_v46 = vadd.f32 1.0, %v2466_v47  ;;  %v1667_v49 = vmul.f32 0.7978846, %v1651_v8  ;;  %v1652_v50 = vadd.f32 %v1636_v9, %v3167_v25 }
 0x623   : > { %v1653_v27 = vadd.f32 %v1637_v28, %v3172_v41  ;;  %v1608_v2 = vmul.f32 0.044715, %v3194_v42  ;;  %v1623_v55 = vmul.f32 %v1607_v36, %v3184_v45  ;;  %v3203_v37 = vadd.f32 %v1574_v38, %v1469_v5 }
 0x624   : > { %v2468_v43 = vpop.eup %2467  ;;  %v1638_v52 = vmul.f32 %v1622_v12, %v3178_v1  ;;  %v1471_v56 = vpop.f32.mrf.mxu0  ;;  %v1709_v21 = vmul.f32 %v1693_v46, %v1581_v33  ;;  %v1708_v13 = vmul.f32 %v1692_v14, %v1580_v6  ;;  %v1668_v24 = vmul.f32 0.7978846, %v1652_v50 }
 0x625   : > { %v1694_v58 = vadd.f32 1.0, %v2468_v43  ;;  %v1669_v59 = vmul.f32 0.7978846, %v1653_v27  ;;  %v1624_v17 = vmul.f32 %v1608_v2, %v3194_v42  ;;  %v3206_v54 = vadd.f32 %v1576_v51, %v1471_v56  ;;  %v2470_v57 = vpop.eup %2469 }
 0x626   : > { %v1609_v62 = vmul.f32 0.044715, %v3203_v37  ;;  %v1654_v4 = vadd.f32 %v1638_v52, %v3178_v1  ;;  %v1639_v39 = vmul.f32 %v1623_v55, %v3184_v45  ;;  %v1755_v53 = vpack.c.bf16 %v1709_v21, %v1707_v20 }
 0x627   : > { %v1710_v18 = vmul.f32 %v1694_v58, %v1582_v34  ;;  %v2472_v23 = vpop.eup %2471  ;;  %2477 = vtanh.f32 %v1669_v59  ;;  %v1640_v30 = vmul.f32 %v1624_v17, %v3194_v42  ;;  %v1610_v32 = vmul.f32 0.044715, %v3206_v54 }
 0x628   : > { %2479 = vtanh.f32 %v1667_v49  ;;  %v1625_v11 = vmul.f32 %v1609_v62, %v3203_v37  ;;  %v1670_v60 = vmul.f32 0.7978846, %v1654_v4  ;;  %v1696_v0 = vadd.f32 1.0, %v2472_v23 }
 0x629   : > { %v1756_v48 = vpack.c.bf16 %v1710_v18, %v1708_v13  ;;  %v1626_v26 = vmul.f32 %v1610_v32, %v3206_v54  ;;  %v1695_v3 = vadd.f32 1.0, %v2470_v57  ;;  %v1584_v9 = vmul.f32 0.5, %v3139_v40 }
 0x62a   : > { %v2474_v22 = vpop.eup %2473  ;;  %v1641_v63 = vmul.f32 %v1625_v11, %v3203_v37  ;;  %2481 = vtanh.f32 %v1668_v24  ;;  %v1656_v10 = vadd.f32 %v1640_v30, %v3194_v42  ;;  %v1586_v47 = vmul.f32 0.5, %v3151_v16 }
 0x62b   : > { %1811 = vmatprep.mubr.bf16.mxu0 %v1756_v48  ;;  %v1697_v6 = vadd.f32 1.0, %v2474_v22  ;;  %v2476_v7 = vpop.eup %2475  ;;  %v1642_v8 = vmul.f32 %v1626_v26, %v3206_v54  ;;  %2483 = vtanh.f32 %v1670_v60  ;;  %v1655_v34 = vadd.f32 %v1639_v39, %v3184_v45 }
 0x62c   : > { %1812 = vmatmul.mubr.bf16.vlgmr.msra.gmra.mxu0 %v1755_v53  ;;  %v1698_v33 = vadd.f32 1.0, %v2476_v7  ;;  %v1672_v31 = vmul.f32 0.7978846, %v1656_v10  ;;  %v1657_v28 = vadd.f32 %v1641_v63, %v3203_v37  ;;  %v1712_v36 = vmul.f32 %v1696_v0, %v1584_v9 }
 0x62d   : > { %v1713_v29 = vmul.f32 %v1697_v6, %v1585_v44  ;;  %v1658_v38 = vadd.f32 %v1642_v8, %v3206_v54  ;;  %v1711_v5 = vmul.f32 %v1695_v3, %v3190_v35  ;;  %v1671_v14 = vmul.f32 0.7978846, %v1655_v34 }
 0x62e   : > { %v1714_v12 = vmul.f32 %v1698_v33, %v1586_v47  ;;  %2485 = vtanh.f32 %v1672_v31  ;;  %v1673_v15 = vmul.f32 0.7978846, %v1657_v28  ;;  %v1589_v50 = vmul.f32 0.5, %v3172_v41 }
 0x62f   : > { %v1674_v40 = vmul.f32 0.7978846, %v1658_v38  ;;  %v1757_v16 = vpack.c.bf16 %v1713_v29, %v1711_v5  ;;  %v1588_v55 = vmul.f32 0.5, %v3167_v25  ;;  %v1590_v51 = vmul.f32 0.5, %v3178_v1 }
 0x630   : > { %v1758_v46 = vpack.c.bf16 %v1714_v12, %v1712_v36  ;;  %v1587_v58 = vmul.f32 0.5, %v3163_v61  ;;  %v1592_v41 = vmul.f32 0.5, %v3194_v42  ;;  %v1594_v32 = vmul.f32 0.5, %v3206_v54 }
 0x631   : > { %2487 = vtanh.f32 %v1674_v40  ;;  %v1593_v1 = vmul.f32 0.5, %v3203_v37  ;;  %v1591_v26 = vmul.f32 0.5, %v3184_v45 }
 0x632   : > { %1819 = vmatprep.mubr.bf16.mxu0 %v1758_v46  ;;  %2489 = vtanh.f32 %v1671_v14 }
 0x633   : > { %2491 = vtanh.f32 %v1673_v15 }
 0x634   : > { %1820 = vmatmul.mubr.bf16.gmra.mxu0 %v1757_v16  ;;  %v2478_v44 = vpop.eup %2477 }
 0x635   : > { %v2480_v43 = vpop.eup %2479  ;;  %v1701_v49 = vadd.f32 1.0, %v2478_v44 }
 0x636   : > { %v1699_v35 = vadd.f32 1.0, %v2480_v43 }
 0x637   : > { %v2482_v27 = vpop.eup %2481  ;;  %v1717_v59 = vmul.f32 %v1701_v49, %v1589_v50 }
 0x638   : > { %v2484_v2 = vpop.eup %2483  ;;  %v1700_v52 = vadd.f32 1.0, %v2482_v27  ;;  %v1715_v62 = vmul.f32 %v1699_v35, %v1587_v58 }
 0x639   : > { %v1702_v56 = vadd.f32 1.0, %v2484_v2 }
 0x63a   : > { %v1716_v21 = vmul.f32 %v1700_v52, %v1588_v55  ;;  %v1759_v30 = vpack.c.bf16 %v1717_v59, %v1715_v62 }
 0x63b   : > { %v2486_v17 = vpop.eup %2485  ;;  %v1718_v57 = vmul.f32 %v1702_v56, %v1590_v51 }
 0x63c   : > { %v1704_v13 = vadd.f32 1.0, %v2486_v17 }
 0x63d   : > { %v1760_v20 = vpack.c.bf16 %v1718_v57, %v1716_v21 }
 0x63e   : > { %v2488_v18 = vpop.eup %2487  ;;  %v1720_v61 = vmul.f32 %v1704_v13, %v1592_v41 }
 0x63f   : > { %v2490_v23 = vpop.eup %2489  ;;  %v1706_v25 = vadd.f32 1.0, %v2488_v18  ;;  %1827 = vmatprep.mubr.bf16.mxu1 %v1760_v20 }
 0x640   : > { %v2492_v4 = vpop.eup %2491  ;;  %1828 = vmatmul.mubr.bf16.vlgmr.msra.gmra.mxu1 %v1759_v30  ;;  %v1703_v11 = vadd.f32 1.0, %v2490_v23 }
 0x641   : > { %v1722_v39 = vmul.f32 %v1706_v25, %v1594_v32  ;;  %v1705_v48 = vadd.f32 1.0, %v2492_v4 }
 0x642   : > { %v1719_v24 = vmul.f32 %v1703_v11, %v1591_v26 }
 0x643   : > { %v1762_v22 = vpack.c.bf16 %v1722_v39, %v1720_v61  ;;  %v1721_v53 = vmul.f32 %v1705_v48, %v1593_v1 }
 0x645   : > { %1835 = vmatprep.mubr.bf16.mxu1 %v1762_v22  ;;  %v1761_v60 = vpack.c.bf16 %v1721_v53, %v1719_v24 }
 0x648   : > { %1836 = vmatmul.mubr.bf16.gmra.mxu1 %v1761_v60 }
 0x6ec   : > { %v2263_v42 = vpop.f32.mrf.mxu0 }
 0x6ee   : > { %v2264_v54 = vpop.f32.mrf.mxu0 }
 0x6ef   : > { %v2265_v63 = vadd.f32 %v2264_v54, %v2263_v42 }
 0x6f0   : > { %v2266_v0 = vpop.f32.mrf.mxu0 }
 0x6f1   : > { %v1846_v3 = vsel %vm527_vm0, %v2265_v63, 0.0 }
 0x6f2   : > { %v2267_v37 = vpop.f32.mrf.mxu0  ;;  %1847 = vadd.xlane.f32.xlu0 %v1846_v3 }
 0x6f3   : > { %v2268_v6 = vadd.f32 %v2267_v37, %v2266_v0 }
 0x6f4   : > { %v2269_v7 = vpop.f32.mrf.mxu0 }
 0x6f5   : > { %v1849_v8 = vsel %vm527_vm0, %v2268_v6, 0.0 }
 0x6f6   : > { %v2270_v9 = vpop.f32.mrf.mxu0  ;;  %1850 = vadd.xlane.f32.xlu1 %v1849_v8 }
 0x6f7   : > { %v2271_v45 = vadd.f32 %v2270_v9, %v2269_v7 }
 0x6f8   : > { %v2272_v10 = vpop.f32.mrf.mxu0 }
 0x6f9   : > { %v1852_v47 = vsel %vm527_vm0, %v2271_v45, 0.0 }
 0x6fa   : > { %v2273_v33 = vpop.f32.mrf.mxu0  ;;  %1853 = vadd.xlane.f32.xlu0 %v1852_v47 }
 0x6fb   : > { %v2274_v29 = vadd.f32 %v2273_v33, %v2272_v10 }
 0x6fd   : > { %v1855_v38 = vsel %vm527_vm0, %v2274_v29, 0.0 }
 0x6fe   : > { %1856 = vadd.xlane.f32.xlu1 %v1855_v38 }
 0x700   : > { %v2275_v31 = vpop.f32.mrf.mxu1 }
 0x702   : > { %v2276_v34 = vpop.f32.mrf.mxu1 }
 0x703   : > { %v2277_v28 = vadd.f32 %v2276_v34, %v2275_v31 }
 0x704   : > { %v2278_v36 = vpop.f32.mrf.mxu1 }
 0x705   : > { %v1858_v12 = vsel %vm527_vm0, %v2277_v28, 0.0 }
 0x706   : > { %v2279_v5 = vpop.f32.mrf.mxu1  ;;  %1859 = vadd.xlane.f32.xlu0 %v1858_v12 }
 0x707   : > { %v2280_v40 = vadd.f32 %v2279_v5, %v2278_v36 }
 0x708   : > { %v2281_v14 = vpop.f32.mrf.mxu1 }
 0x709   : > { %v1861_v15 = vsel %vm527_vm0, %v2280_v40, 0.0 }
 0x70a   : > { %v2282_v46 = vpop.f32.mrf.mxu1  ;;  %1862 = vadd.xlane.f32.xlu1 %v1861_v15  ;;  %v3289_v15 = vld [vmem:[%s3360_s10] ss:$0 sm:$0xff] }
 0x70b   : > { %v2283_v16 = vadd.f32 %v2282_v46, %v2281_v14  ;;  %v1353_v46 = vunpack.c.l.bf16 %v2987_v19 }
 0x70c   : > { %v2284_v44 = vpop.f32.mrf.mxu1 }
 0x70d   : > { %v1864_v43 = vsel %vm527_vm0, %v2283_v16, 0.0 }
 0x70e   : > { %v2285_v49 = vpop.f32.mrf.mxu1  ;;  %1865 = vadd.xlane.f32.xlu0 %v1864_v43 }
 0x70f   : > { %v2286_v27 = vadd.f32 %v2285_v49, %v2284_v44 }
 0x711   : > { %v1867_v2 = vsel %vm527_vm0, %v2286_v27, 0.0 }
 0x712   : > { %1868 = vadd.xlane.f32.xlu1 %v1867_v2 }
 0x77b   : > { %v1848_v50 = vpop.xlane.xlu0 %1847 }
 0x77c   : > { %v1870_v52 = vmul.f32 0.03125, %v1848_v50  ;;  %v2509_v50 = vld [vmem:[%s2963_s29] sm:$0xff]  }
 0x77e   : > { %v3240_v35 = vsub.f32 %v2265_v63, %v1870_v52  ;;  %v1354_v52 = vunpack.c.h.bf16 %v2509_v50 }
 0x77f   : > { %v1851_v55 = vpop.xlane.xlu1 %1850 }
 0x780   : > { %v1871_v51 = vmul.f32 0.03125, %v1851_v55  ;;  %v1886_v56 = vmul.f32 %v3240_v35, %v3240_v35 }
 0x782   : > { %v3244_v58 = vsub.f32 %v2268_v6, %v1871_v51  ;;  %v1894_v59 = vsel %vm527_vm0, %v1886_v56, 0.0 }
 0x783   : > { %1895 = vadd.xlane.f32.xlu0 %v1894_v59  ;;  %v1854_v17 = vpop.xlane.xlu0 %1853 }
 0x784   : > { %v1872_v21 = vmul.f32 0.03125, %v1854_v17  ;;  %v1887_v57 = vmul.f32 %v3244_v58, %v3244_v58 }
 0x786   : > { %v3249_v62 = vsub.f32 %v2271_v45, %v1872_v21  ;;  %v1897_v13 = vsel %vm527_vm0, %v1887_v57, 0.0  ;;  %v2510_v57 = vld [vmem:[%s2963_s29 + $0x8] sm:$0xff]  }
 0x787   : > { %1898 = vadd.xlane.f32.xlu1 %v1897_v13  ;;  %v1857_v18 = vpop.xlane.xlu1 %1856  ;;  %v1355_v13 = vunpack.c.l.bf16 %v2510_v57 }
 0x788   : > { %v1873_v20 = vmul.f32 0.03125, %v1857_v18  ;;  %v1888_v23 = vmul.f32 %v3249_v62, %v3249_v62 }
 0x78a   : > { %v3254_v30 = vsub.f32 %v2274_v29, %v1873_v20  ;;  %v1900_v41 = vsel %vm527_vm0, %v1888_v23, 0.0 }
 0x78b   : > { %1901 = vadd.xlane.f32.xlu0 %v1900_v41 }
 0x78c   : > { %v1889_v32 = vmul.f32 %v3254_v30, %v3254_v30 }
 0x78e   : > { %v1903_v25 = vsel %vm527_vm0, %v1889_v32, 0.0 }
 0x78f   : > { %1904 = vadd.xlane.f32.xlu1 %v1903_v25  ;;  %v1860_v4 = vpop.xlane.xlu0 %1859 }
 0x790   : > { %v1874_v1 = vmul.f32 0.03125, %v1860_v4 }
 0x792   : > { %v3260_v61 = vsub.f32 %v2277_v28, %v1874_v1 }
 0x793   : > { %v1863_v39 = vpop.xlane.xlu1 %1862 }
 0x794   : > { %v1875_v11 = vmul.f32 0.03125, %v1863_v39  ;;  %v1890_v48 = vmul.f32 %v3260_v61, %v3260_v61  ;;  %v1356_v39 = vunpack.c.h.bf16 %v2510_v57 }
 0x796   : > { %v3264_v22 = vsub.f32 %v2280_v40, %v1875_v11  ;;  %v1906_v26 = vsel %vm527_vm0, %v1890_v48, 0.0  ;;  %v3283_v40 = vld [vmem:[%s3359_s9] ss:$0 sm:$0xff] }
 0x797   : > { %1907 = vadd.xlane.f32.xlu0 %v1906_v26  ;;  %v1866_v53 = vpop.xlane.xlu0 %1865 }
 0x798   : > { %v1876_v24 = vmul.f32 0.03125, %v1866_v53  ;;  %v1891_v60 = vmul.f32 %v3264_v22, %v3264_v22 }
 0x79a   : > { %v3269_v42 = vsub.f32 %v2283_v16, %v1876_v24  ;;  %v1909_v54 = vsel %vm527_vm0, %v1891_v60, 0.0 }
 0x79b   : > { %1910 = vadd.xlane.f32.xlu1 %v1909_v54  ;;  %v1869_v63 = vpop.xlane.xlu1 %1868 }
 0x79c   : > { %v1877_v0 = vmul.f32 0.03125, %v1869_v63  ;;  %v1892_v3 = vmul.f32 %v3269_v42, %v3269_v42 }
 0x79e   : > { %v3274_v37 = vsub.f32 %v2286_v27, %v1877_v0  ;;  %v1912_v6 = vsel %vm527_vm0, %v1892_v3, 0.0 }
 0x79f   : > { %1913 = vadd.xlane.f32.xlu0 %v1912_v6 }
 0x7a0   : > { %v1893_v7 = vmul.f32 %v3274_v37, %v3274_v37 }
 0x7a2   : > { %v1915_v8 = vsel %vm527_vm0, %v1893_v7, 0.0  ;;  %v2511_v7 = vld [vmem:[%s2963_s29 + $0x10] sm:$0xff]  }
 0x7a3   : > { %1916 = vadd.xlane.f32.xlu1 %v1915_v8  ;;  %v1357_v8 = vunpack.c.l.bf16 %v2511_v7 }
 0x80c   : > { %v1896_v9 = vpop.xlane.xlu0 %1895 }
 0x80d   : > { %v1918_v45 = vmul.f32 0.03125, %v1896_v9 }
 0x80f   : > { %v1926_v10 = vadd.f32 1e-05, %v1918_v45 }
 0x810   : > { %v1899_v47 = vpop.xlane.xlu1 %1898 }
 0x811   : > { %2493 = vrsqrt.f32 %v1926_v10  ;;  %v1919_v33 = vmul.f32 0.03125, %v1899_v47 }
 0x813   : > { %v1927_v29 = vadd.f32 1e-05, %v1919_v33 }
 0x814   : > { %v1902_v38 = vpop.xlane.xlu0 %1901 }
 0x815   : > { %2495 = vrsqrt.f32 %v1927_v29  ;;  %v1920_v31 = vmul.f32 0.03125, %v1902_v38  ;;  %v1358_v38 = vunpack.c.h.bf16 %v2511_v7 }
 0x817   : > { %v1928_v34 = vadd.f32 1e-05, %v1920_v31 }
 0x818   : > { %v1905_v28 = vpop.xlane.xlu1 %1904 }
 0x819   : > { %2497 = vrsqrt.f32 %v1928_v34  ;;  %v1921_v36 = vmul.f32 0.03125, %v1905_v28 }
 0x81b   : > { %v1929_v12 = vadd.f32 1e-05, %v1921_v36  ;;  %v2512_v36 = vld [vmem:[%s2963_s29 + $0x18] sm:$0xff]  }
 0x81d   : > { %2499 = vrsqrt.f32 %v1929_v12  ;;  %v1359_v12 = vunpack.c.l.bf16 %v2512_v36 }
 0x81e   : > { %v2494_v5 = vpop.eup %2493 }
 0x81f   : > { %v1942_v14 = vmul.f32 %v2494_v5, %v3240_v35 }
 0x820   : > { %v1908_v43 = vpop.xlane.xlu0 %1907 }
 0x821   : > { %v1956_v16 = vmul.f32 %v3283_v40, %v1942_v14  ;;  %v1922_v2 = vmul.f32 0.03125, %v1908_v43  ;;  %v1360_v43 = vunpack.c.h.bf16 %v2512_v36 }
 0x822   : > { %v2496_v44 = vpop.eup %2495 }
 0x823   : > { %v1970_v49 = vadd.f32 %v3289_v15, %v1956_v16  ;;  %v1943_v27 = vmul.f32 %v2496_v44, %v3244_v58  ;;  %v1930_v51 = vadd.f32 1e-05, %v1922_v2 }
 0x824   : > { %v1911_v19 = vpop.xlane.xlu1 %1910 }
 0x825   : > { %v1978_v35 = vadd.f32 %v1970_v49, %v1353_v46  ;;  %v1957_v55 = vmul.f32 %v3283_v40, %v1943_v27  ;;  %2501 = vrsqrt.f32 %v1930_v51  ;;  %v1923_v21 = vmul.f32 0.03125, %v1911_v19 }
 0x826   : > { %v2498_v56 = vpop.eup %2497 }
 0x827   : > { %v2217_v59 = vpack.c.bf16 %v1978_v35, %v1978_v35  ;;  %v1971_v58 = vadd.f32 %v3289_v15, %v1957_v55  ;;  %v1944_v17 = vmul.f32 %v2498_v56, %v3249_v62  ;;  %v1931_v41 = vadd.f32 1e-05, %v1923_v21 }
 0x828   : > { %v1914_v32 = vpop.xlane.xlu0 %1913 }
 0x829   : > { %2019 = vst.msk [vmem:[%s3301_s15] sm:$0xf] %vm2018_vm3, %v2217_v59  ;;  %v1979_v18 = vadd.f32 %v1971_v58, %v1354_v52  ;;  %v1958_v20 = vmul.f32 %v3283_v40, %v1944_v17  ;;  %v1924_v62 = vmul.f32 0.03125, %v1914_v32  ;;  %2503 = vrsqrt.f32 %v1931_v41 }
 0x82a   : > { %v2500_v23 = vpop.eup %2499 }
 0x82b   : > { %v2218_v25 = vpack.c.bf16 %v1979_v18, %v1979_v18  ;;  %v1972_v4 = vadd.f32 %v3289_v15, %v1958_v20  ;;  %v1945_v1 = vmul.f32 %v2500_v23, %v3254_v30  ;;  %v1932_v26 = vadd.f32 1e-05, %v1924_v62 }
 0x82c   : > { %v1917_v53 = vpop.xlane.xlu1 %1916 }
 0x82d   : > { %2020 = vst.msk [vmem:[%s3301_s15 + $0x4] sm:$0xf] %vm2018_vm3, %v2218_v25  ;;  %v1980_v11 = vadd.f32 %v1972_v4, %v1355_v13  ;;  %v1959_v48 = vmul.f32 %v3283_v40, %v1945_v1  ;;  %2505 = vrsqrt.f32 %v1932_v26  ;;  %v1925_v54 = vmul.f32 0.03125, %v1917_v53 }
 0x82f   : > { %v2219_v24 = vpack.c.bf16 %v1980_v11, %v1980_v11  ;;  %v1973_v60 = vadd.f32 %v3289_v15, %v1959_v48  ;;  %v1933_v63 = vadd.f32 1e-05, %v1925_v54 }
 0x831   : > { %2021 = vst.msk [vmem:[%s3301_s15 + $0x8] sm:$0xf] %vm2018_vm3, %v2219_v24  ;;  %v1981_v30 = vadd.f32 %v1973_v60, %v1356_v39  ;;  %2507 = vrsqrt.f32 %v1933_v63 }
 0x832   : > { %v2502_v3 = vpop.eup %2501 }
 0x833   : > { %v2220_v0 = vpack.c.bf16 %v1981_v30, %v1981_v30  ;;  %v1946_v6 = vmul.f32 %v2502_v3, %v3260_v61 }
 0x835   : > { %2022 = vst.msk [vmem:[%s3301_s15 + $0xc] sm:$0xf] %vm2018_vm3, %v2220_v0  ;;  %v1960_v9 = vmul.f32 %v3283_v40, %v1946_v6 }
 0x836   : > { %v2504_v45 = vpop.eup %2503 }
 0x837   : > { %v1974_v10 = vadd.f32 %v3289_v15, %v1960_v9  ;;  %v1947_v47 = vmul.f32 %v2504_v45, %v3264_v22 }
 0x839   : > { %v1982_v33 = vadd.f32 %v1974_v10, %v1357_v8  ;;  %v1961_v31 = vmul.f32 %v3283_v40, %v1947_v47 }
 0x83a   : > { %v2506_v29 = vpop.eup %2505 }
 0x83b   : > { %v2221_v34 = vpack.c.bf16 %v1982_v33, %v1982_v33  ;;  %v1948_v28 = vmul.f32 %v2506_v29, %v3269_v42  ;;  %v1975_v61 = vadd.f32 %v3289_v15, %v1961_v31 }
 0x83d   : > { %2023 = vst.msk [vmem:[%s3301_s15 + $0x10] sm:$0xf] %vm2018_vm3, %v2221_v34  ;;  %v1962_v5 = vmul.f32 %v3283_v40, %v1948_v28  ;;  %v1983_v14 = vadd.f32 %v1975_v61, %v1358_v38 }
 0x83e   : > { %v2508_v22 = vpop.eup %2507 }
 0x83f   : > { %v1976_v46 = vadd.f32 %v3289_v15, %v1962_v5  ;;  %v1949_v16 = vmul.f32 %v2508_v22, %v3274_v37  ;;  %v2222_v44 = vpack.c.bf16 %v1983_v14, %v1983_v14 }
 0x841   : > { %v1984_v49 = vadd.f32 %v1976_v46, %v1359_v12  ;;  %v1963_v42 = vmul.f32 %v3283_v40, %v1949_v16  ;;  %2024 = vst.msk [vmem:[%s3301_s15 + $0x14] sm:$0xf] %vm2018_vm3, %v2222_v44 }
 0x843   : > { %v2223_v27 = vpack.c.bf16 %v1984_v49, %v1984_v49  ;;  %v1977_v2 = vadd.f32 %v3289_v15, %v1963_v42 }
 0x845   : > { %2025 = vst.msk [vmem:[%s3301_s15 + $0x18] sm:$0xf] %vm2018_vm3, %v2223_v27  ;;  %v1985_v50 = vadd.f32 %v1977_v2, %v1360_v43 }
 0x847   : > { %v2224_v52 = vpack.c.bf16 %v1985_v50, %v1985_v50 }
 0x849   : > { %2026 = vst.msk [vmem:[%s3301_s15 + $0x1c] sm:$0xf] %vm2018_vm3, %v2224_v52 }
 0x84a PF: > { %s21_s19 = sadd.s32 1, %s2535_s19   ;;  %s3362_s17 = smov %s2531_s18 }
 0x84b   : > { %p18_p5 = scmp.ge.s32.totalorder %s21_s19, 6   ;;  %s3363_s18 = smov %s3365_s20 }
 0x84d   :  { %20 = sbr.rel (!%p18_p5) target bundleno = 2 (0x2), region = 108 }

// kernel: gmsf_forward.21
= control target key start
LH: loop header
LB: loop body
LE: loop exit
PB: predicated region body
PF: predicated region fallthrough
CT: control target
= control target key end

     0   :  { %s1375_s24 = smov 0   ;;  %s1377_s25 = smov 0   ;;  %s1515_s0 = inlined_call_operand.vmem [shape: bf16[2,64,32], index: 0, kind: input, shape index: {}, may-alias: {0,1}]   ;;  %s1516_s1 = inlined_call_operand.vmem [shape: bf16[2,64,32], index: 1, kind: input, shape index: {}, may-alias: {0,1}]   ;;  %s1517_s2 = inlined_call_operand.vmem [shape: f32[2,3,64], index: 2, kind: input, shape index: {}]   ;;  %s1518_s3 = inlined_call_operand.vmem [shape: f32[32,32], index: 3, kind: input, shape index: {}]   ;;  %s1519_s4 = inlined_call_operand.vmem [shape: f32[1,32], index: 4, kind: input, shape index: {}]   ;;  %s1520_s5 = inlined_call_operand.vmem [shape: f32[32,32], index: 5, kind: input, shape index: {}]   ;;  %s1521_s6 = inlined_call_operand.vmem [shape: f32[1,32], index: 6, kind: input, shape index: {}]   ;;  %s1522_s7 = inlined_call_operand.vmem [shape: f32[2,3,64], index: 7, kind: output, shape index: {}]  }
   0x1   :  { %s1379_s26 = smov 0  }
   0x2 LB: > { %s36_s27 = sadd.s32 1, %s1326_s25  ;;  %p1102_p0 = scmp.ge.s32.totalorder %s1330_s26, 1  ;;  %s1330_s26 = sphi %s1379_s26, %s17_s26   ;;  %s1326_s25 = sphi %s1377_s25, %s1524_s25   ;;  %s1322_s24 = sphi %s1375_s24, %s1523_s24  }
   0x3   : > { %p38_p1 = scmp.ge.s32.totalorder %s36_s27, 2  ;;  %p296_p2 = scmp.lt.s32.totalorder %s1330_s26, 3 }
   0x5   : > { %s1526_s27 = smov (%p38_p1, %s36_s27), 0  ;;  %p297_p3 = pnand %p1102_p0, %p296_p2 }
   0x6   : > { %p351_p4 = scmp.lt.s32.totalorder (!%p297_p3), %s1322_s24, 1 }
   0x7   : > { %300 = sbr.rel (%p297_p3) target bundleno = 749 (0x2ed), region = 48 }
   0xc   : > { %v404_v0 = vld [vmem:[%s1518_s3 + $0x10] sm:$0xff]  ;;  %v405_v1 = vld [vmem:[%s1518_s3 + $0x18] sm:$0xff]  ;;  %v402_v2 = vld [vmem:[%s1518_s3] sm:$0xff]  ;;  %s1528_s24 = smov (!%p351_p4, %s1322_s24), 1  ;;  %vm435_vm0 = vcmask 261120   ;;  %vm553_vm1 = vcmask 257024  }
   0xd   : > { %v407_v3 = vpack.c.bf16 %v405_v1, %v404_v0  ;;  %v403_v4 = vld [vmem:[%s1518_s3 + $0x8] sm:$0xff]  ;;  %v572_v6 = vld [vmem:[%s1520_s5 + $0x10] sm:$0xff]  ;;  %v573_v7 = vld [vmem:[%s1520_s5 + $0x18] sm:$0xff]  ;;  %s1147_s17 = sshll.u32 %s1528_s24, 5  ;;  %vm389_vm2 = vcmask 516096   ;;  %vm392_vm3 = vcmask 518144  }
   0xe   : > { %v406_v5 = vpack.c.bf16 %v403_v4, %v402_v2  ;;  %s358_s20 = scalar_lea.vmem %s1515_s0, %s1147_s17  ;;  %v575_v8 = vpack.c.bf16 %v573_v7, %v572_v6  ;;  %v570_v9 = vld [vmem:[%s1520_s5] sm:$0xff]  ;;  %v571_v10 = vld [vmem:[%s1520_s5 + $0x8] sm:$0xff]  ;;  %s368_s8 = scalar_lea.vmem %s1516_s1, %s1147_s17  ;;  %vm1334_vm4 = vmmov 0   ;;  %vm803_vm5 = vcmask 523264  }
   0xf   : > { %1186 = vmatprep.subr.bf16.mxu1 %v407_v3  ;;  %v1276_v11 = vld [vmem:[%s358_s20] sm:$0xff]   ;;  %v1277_v12 = vld [vmem:[%s358_s20 + $0x8] sm:$0xff]   ;;  %v1278_v13 = vld [vmem:[%s358_s20 + $0x10] sm:$0xff]   ;;  %v574_v14 = vpack.c.bf16 %v571_v10, %v570_v9  ;;  %s1107_s13 = sshll.u32 %s1528_s24, 2 }
  0x10   : > { %1187 = vmatpush3.bf16.msra.mxu1 %v407_v3  ;;  %1190 = vmatprep.mubr.msk.bf16.mxu1 %vm435_vm0, %v1276_v11  ;;  %v1279_v15 = vld [vmem:[%s358_s20 + $0x18] sm:$0xff]   ;;  %v1280_v16 = vld [vmem:[%s368_s8] sm:$0xff]   ;;  %v1281_v17 = vld [vmem:[%s368_s8 + $0x8] sm:$0xff]   ;;  %s376_s16 = scalar_lea.vmem %s1517_s2, %s1107_s13  ;;  %s383_s19 = scalar_lea.vmem %s1522_s7, %s1107_s13 }
  0x11   : > { %1188 = vmatprep.subr.bf16.mxu1 %v406_v5  ;;  %v1282_v18 = vld [vmem:[%s368_s8 + $0x10] sm:$0xff]   ;;  %v1283_v19 = vld [vmem:[%s368_s8 + $0x18] sm:$0xff]   ;;  %v1109_v20 = vld [vmem:[%s1519_s4] ss:$0 sm:$0xff] }
  0x12   : > { %v1126_v53 = vld [vmem:[%s1521_s6] ss:$0 sm:$0xff] }
  0x14   : > { %1189 = vmatpush3.bf16.msra.mxu1 %v406_v5 }
  0x15   : > { %1198 = vmatprep.subr.bf16.mxu1 %v575_v8 }
  0x17   : > { %1191 = vmatmul.mubr.msk.bf16.vlgmr.msra.gmra.mxu1 %vm435_vm0, %v1277_v12 }
  0x18   : > { %1194 = vmatprep.mubr.msk.bf16.mxu1 %vm435_vm0, %v1278_v13  ;;  %1199 = vmatpush3.bf16.msra.mxu1 %v575_v8 }
  0x19   : > { %1200 = vmatprep.subr.bf16.mxu1 %v574_v14 }
  0x1c   : > { %1201 = vmatpush3.bf16.msra.mxu1 %v574_v14 }
  0x1f   : > { %1195 = vmatmul.mubr.msk.bf16.gmra.mxu1 %vm435_vm0, %v1279_v15 }
  0x20   : > { %1202 = vmatprep.mubr.msk.bf16.mxu1 %vm435_vm0, %v1280_v16 }
  0x27   : > { %1203 = vmatmul.mubr.msk.bf16.vlgmr.msra.gmra.mxu1 %vm435_vm0, %v1281_v17 }
  0x28   : > { %1206 = vmatprep.mubr.msk.bf16.mxu1 %vm435_vm0, %v1282_v18  ;;  %v1332_v18 = vmov -inf  }
  0x29   : > { %390 = vst.msk [vmem:[#allocation2] sm:$0x1] %vm389_vm2, %v1332_v18 }
  0x2f   : > { %1207 = vmatmul.mubr.msk.bf16.gmra.mxu1 %vm435_vm0, %v1283_v19  ;;  %v1333_v19 = vmov 0.0  }
  0x30   : > { %391 = vst.msk [vmem:[#allocation3] sm:$0x1] %vm389_vm2, %v1333_v19  ;;  %1226 = vmatprep.subr.mxu1 %v1333_v19  ;;  %1242 = vmatprep.mubr.msk.f32.mxu1 %vm1334_vm4, %v1333_v19 }
  0x31   : > { %393 = vst.msk [vmem:[#allocation4] sm:$0x7] %vm392_vm3, %v1333_v19 }
  0xd7   : > { %v1192_v21 = vpop.f32.mrf.mxu1 }
  0xd8   : > { %v491_v22 = vadd.f32 %v1192_v21, %v1109_v20 }
  0xd9   : > { %v482_v23 = vpop.f32.mrf.mxu1 }
  0xda   : > { %v515_v24 = vmul.f32 0.17677669, %v491_v22  ;;  %v483_v25 = vadd.f32 %v1109_v20, %v482_v23 }
  0xdb   : > { %v1193_v26 = vpop.f32.mrf.mxu1 }
  0xdc   : > { %v1151_v27 = vpack.c.bf16 %v515_v24, %v515_v24  ;;  %v513_v28 = vmul.f32 0.17677669, %v483_v25  ;;  %v494_v29 = vadd.f32 %v1193_v26, %v1109_v20 }
  0xdd   : > { %v485_v30 = vpop.f32.mrf.mxu1 }
  0xde   : > { %556 = vst.msk [vmem:[#allocation5 + $0x8] sm:$0xf] %vm553_vm1, %v1151_v27  ;;  %v1149_v31 = vpack.c.bf16 %v513_v28, %v513_v28  ;;  %v516_v32 = vmul.f32 0.17677669, %v494_v29  ;;  %v486_v33 = vadd.f32 %v1109_v20, %v485_v30 }
  0xdf   : > { %v1196_v34 = vpop.f32.mrf.mxu1 }
  0xe0   : > { %554 = vst.msk [vmem:[#allocation5] sm:$0xf] %vm553_vm1, %v1149_v31  ;;  %v1152_v35 = vpack.c.bf16 %v516_v32, %v516_v32  ;;  %v514_v36 = vmul.f32 0.17677669, %v486_v33  ;;  %v507_v37 = vadd.f32 %v1196_v34, %v1109_v20 }
  0xe1   : > { %v498_v38 = vpop.f32.mrf.mxu1 }
  0xe2   : > { %557 = vst.msk [vmem:[#allocation5 + $0xc] sm:$0xf] %vm553_vm1, %v1152_v35  ;;  %v1150_v39 = vpack.c.bf16 %v514_v36, %v514_v36  ;;  %v519_v40 = vmul.f32 0.17677669, %v507_v37  ;;  %v499_v41 = vadd.f32 %v1109_v20, %v498_v38 }
  0xe3   : > { %v1197_v42 = vpop.f32.mrf.mxu1 }
  0xe4   : > { %555 = vst.msk [vmem:[#allocation5 + $0x4] sm:$0xf] %vm553_vm1, %v1150_v39  ;;  %v1155_v43 = vpack.c.bf16 %v519_v40, %v519_v40  ;;  %v517_v44 = vmul.f32 0.17677669, %v499_v41  ;;  %v510_v45 = vadd.f32 %v1197_v42, %v1109_v20 }
  0xe5   : > { %v501_v46 = vpop.f32.mrf.mxu1 }
  0xe6   : > { %560 = vst.msk [vmem:[#allocation5 + $0x18] sm:$0xf] %vm553_vm1, %v1155_v43  ;;  %v1153_v47 = vpack.c.bf16 %v517_v44, %v517_v44  ;;  %v520_v48 = vmul.f32 0.17677669, %v510_v45  ;;  %v502_v49 = vadd.f32 %v1109_v20, %v501_v46  ;;  %v830_v45 = vlaneseq }
  0xe7   : > { %v1204_v50 = vpop.f32.mrf.mxu1 }
  0xe8   : > { %558 = vst.msk [vmem:[#allocation5 + $0x10] sm:$0xf] %vm553_vm1, %v1153_v47  ;;  %v1156_v51 = vpack.c.bf16 %v520_v48, %v520_v48  ;;  %v518_v52 = vmul.f32 0.17677669, %v502_v49  ;;  %v659_v11 = vadd.f32 %v1204_v50, %v1126_v53  ;;  %v831_v48 = vshrl.u32 %v830_v45, 7 }
  0xe9   : > { %v650_v54 = vpop.f32.mrf.mxu1  ;;  %v1286_v1 = vld [vmem:[#allocation5 + $0x8] sm:$0xff]   ;;  %v802_v50 = vld [vmem:[#allocation2] sm:$0x1] }
  0xea   : > { %561 = vst.msk [vmem:[#allocation5 + $0x1c] sm:$0xf] %vm553_vm1, %v1156_v51  ;;  %v1154_v55 = vpack.c.bf16 %v518_v52, %v518_v52  ;;  %v651_v57 = vadd.f32 %v1126_v53, %v650_v54  ;;  %v729_v4 = vsel %vm435_vm0, %v1286_v1, 0  ;;  %v832_v52 = vsub.s32 0, %v831_v48 }
  0xeb   : > { %v1205_v56 = vpop.f32.mrf.mxu1  ;;  %v1287_v5 = vld [vmem:[#allocation5] sm:$0xff]  }
  0xec   : > { %559 = vst.msk [vmem:[#allocation5 + $0x14] sm:$0xf] %vm553_vm1, %v1154_v55  ;;  %v726_v8 = vsel %vm435_vm0, %v1287_v5, 0  ;;  %v662_v12 = vadd.f32 %v1205_v56, %v1126_v53 }
  0xed   : > { %v653_v58 = vpop.f32.mrf.mxu1 }
  0xee   : > { %v654_v59 = vadd.f32 %v1126_v53, %v653_v58  ;;  %v682_v14 = vpack.c.bf16 %v662_v12, %v659_v11 }
  0xef   : > { %v1208_v2 = vpop.f32.mrf.mxu1 }
  0xf0   : > { %v681_v60 = vpack.c.bf16 %v654_v59, %v651_v57  ;;  %v675_v15 = vadd.f32 %v1208_v2, %v1126_v53 }
  0xf1   : > { %v1284_v61 = vld [vmem:[#allocation5 + $0x18] sm:$0xff]   ;;  %v666_v3 = vpop.f32.mrf.mxu1 }
  0xf2   : > { %1218 = vmatprep.mubr.msk.bf16.mxu0 %vm435_vm0, %v681_v60  ;;  %1245 = vmatprep.subr.msk.bf16.mxu0 %vm435_vm0, %v1284_v61  ;;  %v735_v62 = vsel %vm435_vm0, %v1284_v61, 0  ;;  %v667_v9 = vadd.f32 %v1126_v53, %v666_v3 }
  0xf3   : > { %v1285_v63 = vld [vmem:[#allocation5 + $0x10] sm:$0xff]   ;;  %1211 = vmatpush3.bf16.xpose.msra.mxu0 %v735_v62  ;;  %v1209_v6 = vpop.f32.mrf.mxu1 }
  0xf4   : > { %1246 = vmatprep.subr.msk.bf16.mxu0 %vm435_vm0, %v1285_v63  ;;  %v732_v0 = vsel %vm435_vm0, %v1285_v63, 0  ;;  %v678_v16 = vadd.f32 %v1209_v6, %v1126_v53 }
  0xf5   : > { %v669_v7 = vpop.f32.mrf.mxu1 }
  0xf6   : > { %v670_v10 = vadd.f32 %v1126_v53, %v669_v7  ;;  %v684_v17 = vpack.c.bf16 %v678_v16, %v675_v15 }
  0xf8   : > { %v683_v13 = vpack.c.bf16 %v670_v10, %v667_v9 }
  0xfb   : > { %1213 = vmatpush3.bf16.xpose.msra.mxu0 %v732_v0 }
  0xfc   : > { %1247 = vmatprep.subr.msk.bf16.mxu0 %vm435_vm0, %v1286_v1 }
 0x103   : > { %1215 = vmatpush3.bf16.xpose.msra.mxu0 %v729_v4 }
 0x104   : > { %1248 = vmatprep.subr.msk.bf16.mxu0 %vm435_vm0, %v1287_v5 }
 0x10b   : > { %1217 = vmatpush3.bf16.xpose.msra.mxu0 %v726_v8 }
 0x112   : > { %1219 = vmatmul.mubr.msk.bf16.vlgmr.msra.gmra.mxu0 %vm435_vm0, %v682_v14 }
 0x113   : > { %1222 = vmatprep.mubr.msk.bf16.mxu0 %vm435_vm0, %v683_v13 }
 0x11a   : > { %1223 = vmatmul.mubr.msk.bf16.gmra.mxu0 %vm435_vm0, %v684_v17 }
 0x1d2   : > { %v1220_v20 = vpop.f32.mrf.mxu0 }
 0x1d3   : > { %v806_v33 = vsel %vm803_vm5, %v1220_v20, -inf }
 0x1d4   : > { %v771_v21 = vpop.f32.mrf.mxu0 }
 0x1d5   : > { %v804_v34 = vsel %vm803_vm5, %v771_v21, -inf }
 0x1d6   : > { %v1221_v22 = vpop.f32.mrf.mxu0 }
 0x1d7   : > { %v807_v27 = vsel %vm803_vm5, %v1221_v22, -inf }
 0x1d8   : > { %v774_v23 = vpop.f32.mrf.mxu0 }
 0x1d9   : > { %v805_v35 = vsel %vm803_vm5, %v774_v23, -inf }
 0x1da   : > { %v1224_v24 = vpop.f32.mrf.mxu0 }
 0x1db   : > { %v812_v28 = vsel %vm803_vm5, %v1224_v24, -inf }
 0x1dc   : > { %v787_v25 = vpop.f32.mrf.mxu0  ;;  %v813_v37 = vmax.f32 %v806_v33, %v812_v28 }
 0x1dd   : > { %v808_v29 = vsel %vm803_vm5, %v787_v25, -inf }
 0x1de   : > { %v1225_v26 = vpop.f32.mrf.mxu0  ;;  %v809_v38 = vmax.f32 %v804_v34, %v808_v29 }
 0x1df   : > { %v814_v30 = vsel %vm803_vm5, %v1225_v26, -inf }
 0x1e0   : > { %v815_v31 = vmax.f32 %v807_v27, %v814_v30  ;;  %v790_v32 = vpop.f32.mrf.mxu0 }
 0x1e1   : > { %v810_v36 = vsel %vm803_vm5, %v790_v32, -inf }
 0x1e2   : > { %v811_v39 = vmax.f32 %v805_v35, %v810_v36  ;;  %v817_v40 = vmax.f32 %v813_v37, %v815_v31  ;;  %v893_v37 = vld [vmem:[%s376_s16] sm:$0x7] }
 0x1e4   : > { %v816_v41 = vmax.f32 %v809_v38, %v811_v39 }
 0x1e6   : > { %v818_v42 = vmax.f32 %v816_v41, %v817_v40  ;;  %v859_v40 = vld [vmem:[#allocation3] sm:$0x1] }
 0x1e8   : > { %v819_v43 = vrot.slane %v818_v42, 4 }
 0x1ea   : > { %v820_v44 = vmax.f32 %v818_v42, %v819_v43 }
 0x1ec   : > { %v821_v46 = vrot.slane %v820_v44, 2 }
 0x1ee   : > { %v822_v47 = vmax.f32 %v820_v44, %v821_v46  ;;  %v885_v46 = vld [vmem:[#allocation4] sm:$0x7] }
 0x1f0   : > { %v823_v49 = vrot.slane %v822_v47, 1 }
 0x1f2   : > { %v824_v51 = vmax.f32 %v822_v47, %v823_v49 }
 0x1f4   : > { %v825_v53 = vmax.f32 %v802_v50, %v824_v51 }
 0x1f6   : > { %v826_v54 = vsub.f32 %v802_v50, %v825_v53  ;;  %v833_v55 = vrot.slane %v825_v53, %v832_v52  ;;  %970 = vst.msk [vmem:[#allocation2] sm:$0x1] %vm389_vm2, %v825_v53 }
 0x1f8   : > { %v827_v56 = vmul.f32 1.442695, %v826_v54  ;;  %v835_v57 = vsub.f32 %v771_v21, %v833_v55  ;;  %v836_v58 = vsub.f32 %v774_v23, %v833_v55  ;;  %v837_v59 = vsub.f32 %v1220_v20, %v833_v55 }
 0x1f9   : > { %v838_v60 = vsub.f32 %v1221_v22, %v833_v55  ;;  %v839_v61 = vsub.f32 %v787_v25, %v833_v55  ;;  %v840_v62 = vsub.f32 %v790_v32, %v833_v55  ;;  %v842_v2 = vsub.f32 %v1225_v26, %v833_v55 }
 0x1fa   : > { %v843_v63 = vmul.f32 1.442695, %v835_v57  ;;  %v845_v0 = vmul.f32 1.442695, %v836_v58  ;;  %v847_v1 = vmul.f32 1.442695, %v837_v59  ;;  %1288 = vpow2.f32 %v827_v56 }
 0x1fb   : > { %v849_v3 = vmul.f32 1.442695, %v838_v60  ;;  %v841_v4 = vsub.f32 %v1224_v24, %v833_v55  ;;  %v851_v5 = vmul.f32 1.442695, %v839_v61  ;;  %v853_v6 = vmul.f32 1.442695, %v840_v62 }
 0x1fc   : > { %1290 = vpow2.f32 %v843_v63  ;;  %v857_v7 = vmul.f32 1.442695, %v842_v2 }
 0x1fd   : > { %1292 = vpow2.f32 %v845_v0  ;;  %v855_v8 = vmul.f32 1.442695, %v841_v4 }
 0x1fe   : > { %1294 = vpow2.f32 %v847_v1 }
 0x1ff   : > { %1296 = vpow2.f32 %v849_v3 }
 0x200   : > { %1298 = vpow2.f32 %v851_v5 }
 0x201   : > { %1300 = vpow2.f32 %v853_v6 }
 0x202   : > { %1302 = vpow2.f32 %v857_v7 }
 0x203   : > { %1304 = vpow2.f32 %v855_v8 }
 0x207   : > { %v1289_v9 = vpop.eup %1288 }
 0x208   : > { %v890_v11 = vrot.slane %v1289_v9, %v832_v52  ;;  %v860_v43 = vmul.f32 %v1289_v9, %v859_v40 }
 0x209   : > { %v1291_v10 = vpop.eup %1290 }
 0x20a   : > { %v1293_v12 = vpop.eup %1292  ;;  %v861_v13 = vsel %vm803_vm5, %v1291_v10, 0.0  ;;  %v892_v47 = vmul.f32 %v890_v11, %v885_v46 }
 0x20b   : > { %v1295_v14 = vpop.eup %1294  ;;  %v862_v15 = vsel %vm803_vm5, %v1293_v12, 0.0 }
 0x20c   : > { %v1297_v16 = vpop.eup %1296  ;;  %v863_v17 = vadd.f32 %v862_v15, %v861_v13  ;;  %v864_v18 = vsel %vm803_vm5, %v1295_v14, 0.0 }
 0x20d   : > { %v1299_v20 = vpop.eup %1298  ;;  %v866_v23 = vsel %vm803_vm5, %v1297_v16, 0.0 }
 0x20e   : > { %v865_v21 = vadd.f32 %v864_v18, %v863_v17  ;;  %v1301_v22 = vpop.eup %1300  ;;  %v868_v26 = vsel %vm803_vm5, %v1299_v20, 0.0 }
 0x20f   : > { %v1303_v24 = vpop.eup %1302  ;;  %v870_v29 = vsel %vm803_vm5, %v1301_v22, 0.0 }
 0x210   : > { %v867_v25 = vadd.f32 %v866_v23, %v865_v21  ;;  %1227 = vmatpush3.msra.mxu1 %v1303_v24  ;;  %v1305_v27 = vpop.eup %1304  ;;  %v874_v33 = vsel %vm803_vm5, %v1303_v24, 0.0 }
 0x211   : > { %1228 = vmatprep.subr.mxu1 %v1333_v19  ;;  %v872_v31 = vsel %vm803_vm5, %v1305_v27, 0.0 }
 0x212   : > { %v869_v28 = vadd.f32 %v868_v26, %v867_v25  ;;  %1229 = vmatpush3.msra.mxu1 %v1305_v27 }
 0x213   : > { %1230 = vmatprep.subr.mxu1 %v1333_v19 }
 0x214   : > { %v871_v30 = vadd.f32 %v870_v29, %v869_v28  ;;  %1231 = vmatpush3.msra.mxu1 %v1301_v22 }
 0x215   : > { %1232 = vmatprep.subr.mxu1 %v1333_v19 }
 0x216   : > { %v873_v32 = vadd.f32 %v872_v31, %v871_v30  ;;  %1233 = vmatpush3.msra.mxu1 %v1299_v20 }
 0x217   : > { %1234 = vmatprep.subr.mxu1 %v1333_v19 }
 0x218   : > { %v875_v34 = vadd.f32 %v874_v33, %v873_v32  ;;  %1235 = vmatpush3.msra.mxu1 %v1297_v16 }
 0x219   : > { %1236 = vmatprep.subr.mxu1 %v1333_v19 }
 0x21a   : > { %v876_v35 = vrot.slane %v875_v34, 4  ;;  %1237 = vmatpush3.msra.mxu1 %v1295_v14 }
 0x21b   : > { %1238 = vmatprep.subr.mxu1 %v1333_v19 }
 0x21c   : > { %v877_v36 = vadd.f32 %v876_v35, %v875_v34  ;;  %1239 = vmatpush3.msra.mxu1 %v1293_v12 }
 0x21d   : > { %1240 = vmatprep.subr.mxu1 %v1333_v19 }
 0x21e   : > { %v878_v38 = vrot.slane %v877_v36, 2  ;;  %1241 = vmatpush3.msra.mxu1 %v1291_v10 }
 0x21f   : > { %1243 = vmatmul.mubr.msk.f32.vlgmr.msra.gmra.mxu1 %vm803_vm5, %v893_v37 }
 0x220   : > { %v879_v39 = vadd.f32 %v878_v38, %v877_v36 }
 0x222   : > { %v880_v41 = vrot.slane %v879_v39, 1 }
 0x224   : > { %v881_v42 = vadd.f32 %v880_v41, %v879_v39 }
 0x226   : > { %v882_v44 = vadd.f32 %v881_v42, %v860_v43 }
 0x228   : > { %884 = vst.msk [vmem:[#allocation3] sm:$0x1] %vm389_vm2, %v882_v44 }
 0x22f   : > { %v1144_v45 = vld [vmem:[#allocation3] ss:$0 sm:$0xff] }
 0x230   : > { %1306 = vrcp.f32 %v1144_v45 }
 0x23d   : > { %v1307_v19 = vpop.eup %1306 }
 0x2df   : > { %v963_v48 = vpop.f32.mrf.mxu1 }
 0x2e0   : > { %v967_v49 = vadd.f32 %v963_v48, %v892_v47 }
 0x2e1   : > { %v1244_v50 = vpop.f32.mrf.mxu1 }
 0x2e2   : > { %969 = vst.msk [vmem:[#allocation4] sm:$0x7] %vm392_vm3, %v967_v49 }
 0x2e9   : > { %v974_v51 = vld [vmem:[#allocation4] sm:$0x7] }
 0x2ea   : > { %v983_v52 = vmul.f32 %v1307_v19, %v974_v51 }
 0x2ec   : > { %984 = vst.msk [vmem:[%s383_s19] sm:$0x7] %vm392_vm3, %v983_v52 }
 0x2ed PF: > { %s17_s26 = sadd.s32 1, %s1330_s26   ;;  %s1523_s24 = smov %s1326_s25 }
 0x2ee   : > { %p14_p5 = scmp.ge.s32.totalorder %s17_s26, 4   ;;  %s1524_s25 = smov %s1526_s27 }
 0x2f0   :  { %16 = sbr.rel (!%p14_p5) target bundleno = 2 (0x2), region = 92 }

</bundles_post_ra>
